<compile_context>
chip_gen: v6e
topology: v6e:2x2x1
jax: 0.10.0
libtpu: 0.0.40
codegen_flags: <defaults>
</compile_context>

<pallas_src>
import functools

import jax
import jax.numpy as jnp
from jax.experimental import pallas as pl
from jax.experimental.pallas import tpu as pltpu

LRELU_SLOPE = 0.1
BN_EPS = 1e-5
CPAD = 128                       # lane-dense padded output-channel count
VMEM_LIMIT = 32 * 1024 * 1024    # modest request; fits v7x's 64 MiB/TC budget
ROW_TILE_TARGET = 256            # target output rows per grid step (bounds acc)


# ----------------------------- Pallas kernels ------------------------------

def _stats_kernel(x_ref, o_ref):
    """Per-tile partial (sum, sum of squares) over rows of a lane-dense block."""
    x = x_ref[...].astype(jnp.float32)
    o_ref[0, 0:1, :] = jnp.sum(x, axis=0, keepdims=True)
    o_ref[0, 1:2, :] = jnp.sum(x * x, axis=0, keepdims=True)


def _make_conv3x3_kernel(*, stride, Ho, Wo, Th, num_row_tiles, Cin, Cp,
                         apply_affine, slope_in, res_mode, res_affine,
                         slope_res, emit_stats, out_dtype):
    """3x3 conv (pad=1) with fused BN+LeakyReLU prologue (optional), fused
    residual matmul (optional), per-channel sum/sumsq side output (optional),
    tiled over output spatial rows via grid axis 1."""
    P = stride * stride
    pe = 2 // stride
    Hq, Wq = Ho + pe, Wo + pe
    Trows = Th * Wo

    # Tap grouping along the MXU contraction (K) dim.  For Cin that is a
    # multiple of 128 (conv2) taps are concatenated in pairs (128-aligned lane
    # concat) so each matmul runs with K=2*Cin.
    # TODO(synk): a full 9-tap K-concat for small Cin (conv1 of early groups)
    # needs an unaligned lane concatenate / lane-offset scatter, which is not
    # portably supported; keep K=Cin per tap there.
    gsz = 2 if (Cin % 128 == 0) else 1
    groups = []
    t = 0
    while t < 9:
        g = min(gsz, 9 - t)
        groups.append((t, g))
        t += g

    def kernel(*refs):
        i = 0
        x_ref = refs[i]; i += 1
        scale_ref = shift_ref = None
        if apply_affine:
            scale_ref = refs[i]; i += 1
            shift_ref = refs[i]; i += 1
        w_ref = refs[i]; i += 1
        rz_ref = rs_ref = rsh_ref = rw_ref = None
        if res_mode == "matmul":
            rz_ref = refs[i]; i += 1
            if res_affine:
                rs_ref = refs[i]; i += 1
                rsh_ref = refs[i]; i += 1
            rw_ref = refs[i]; i += 1
        out_ref = refs[i]; i += 1
        stats_ref = None
        if emit_stats:
            stats_ref = refs[i]; i += 1
        scr_ref = refs[i]

        r = pl.program_id(1)

        # --- BN(+LeakyReLU) prologue into a bf16 scratch, once per batch n.
        # The conv's zero-pad ring is re-zeroed with an iota mask so padding
        # is applied AFTER the activation (as PyTorch's conv does).
        @pl.when(r == 0)
        def _prologue():
            if apply_affine:
                ri = jax.lax.broadcasted_iota(jnp.int32, (Hq, Wq, Cin), 0)
                ci = jax.lax.broadcasted_iota(jnp.int32, (Hq, Wq, Cin), 1)
            for p in range(P):
                xp = (x_ref[0] if stride == 1 else x_ref[p]).astype(jnp.float32)
                if apply_affine:
                    y = xp * scale_ref[...] + shift_ref[...]
                    y = jnp.where(y > 0, y, slope_in * y)
                    if stride == 1:
                        r_lo, r_hi = 1, Hq - 1
                        c_lo, c_hi = 1, Wq - 1
                    else:
                        a, b = p // stride, p % stride
                        r_lo, r_hi = (1, Hq) if a == 0 else (0, Hq - 1)
                        c_lo, c_hi = (1, Wq) if b == 0 else (0, Wq - 1)
                    valid = ((ri >= r_lo) & (ri < r_hi) &
                             (ci >= c_lo) & (ci < c_hi))
                    y = jnp.where(valid, y, 0.0)
                else:
                    y = xp            # identity prologue: pad ring already zero
                if stride == 1:
                    scr_ref[...] = y.astype(jnp.bfloat16)
                else:
                    scr_ref[p] = y.astype(jnp.bfloat16)

        h0 = 0 if num_row_tiles == 1 else r * Th   # output spatial-row offset

        # --- 3x3 conv = accumulated MXU matmuls on statically shifted windows
        acc = jnp.zeros((Trows, Cp), jnp.float32)
        for t0, g in groups:
            parts = []
            for t in range(t0, t0 + g):
                kh, kw = t // 3, t % 3
                dh, dw = kh // stride, kw // stride
                if stride == 1:
                    patch = scr_ref[pl.ds(h0 + dh, Th), dw:dw + Wo, :]
                else:
                    pi = (kh % stride) * stride + (kw % stride)
                    patch = scr_ref[pi, pl.ds(h0 + dh, Th), dw:dw + Wo, :]
                parts.append(patch.reshape(Trows, Cin))
            lhs = parts[0] if g == 1 else jnp.concatenate(parts, axis=-1)
            acc = acc + jnp.dot(lhs, w_ref[t0 * Cin:(t0 + g) * Cin, :],
                                preferred_element_type=jnp.float32)

        # --- fused residual (identity residual via identity-padded weight, or
        # the 1x1 convShortcut matmul with its optional BN+LeakyReLU prologue)
        if res_mode == "matmul":
            rz = rz_ref[...].astype(jnp.float32)
            if res_affine:
                rz = rz * rs_ref[...] + rsh_ref[...]
                rz = jnp.where(rz > 0, rz, slope_res * rz)
            acc = acc + jnp.dot(rz.astype(jnp.bfloat16), rw_ref[...],
                                preferred_element_type=jnp.float32)

        out_ref[...] = acc.astype(out_dtype)        # lane-dense (Trows, 128)

        if emit_stats:
            stats_ref[0, 0:1, :] = jnp.sum(acc, axis=0, keepdims=True)
            stats_ref[0, 1:2, :] = jnp.sum(acc * acc, axis=0, keepdims=True)

    return kernel


# ----------------------------- helpers / wrappers ----------------------------

def _bn_fold(psum, psumsq, count, gamma, beta):
    """Fold batch stats + affine params into per-channel scale/shift (f32).
    NOTE: padded output channels have var==0; their scale collapses to 0 only
    because gamma is zero-padded -- keep gamma/beta zero padding."""
    mean = psum / count
    var = psumsq / count - mean * mean
    inv = jax.lax.rsqrt(var + BN_EPS)
    scale = gamma * inv
    shift = beta - mean * scale
    return scale, shift


def bn_scale_shift(x_nhwc, gamma, beta):
    """Training-mode BN stats via a tiled, lane-dense Pallas reduction."""
    N, H, W, C = x_nhwc.shape
    xw = x_nhwc.reshape(N * H, W * C)                   # lane-dense layout
    M, L = xw.shape
    tm = M
    if M % 2 == 0 and (M // 2) % 8 == 0:
        tm = M // 2                                     # >=2 grid steps (megacore)
    while tm > 512 and tm % 2 == 0 and (tm // 2) % 8 == 0:
        tm //= 2
    nsteps = M // tm
    part = pl.pallas_call(
        _stats_kernel,
        out_shape=jax.ShapeDtypeStruct((nsteps, 2, L), jnp.float32),
        grid=(nsteps,),
        in_specs=[pl.BlockSpec((tm, L), lambda i: (i, 0))],
        out_specs=pl.BlockSpec((1, 2, L), lambda i: (i, 0, 0)),
        compiler_params=pltpu.CompilerParams(
            dimension_semantics=("parallel",), vmem_limit_bytes=VMEM_LIMIT),
    )(xw)
    psum = jnp.sum(part[:, 0, :].reshape(nsteps, W, C), axis=(0, 1))
    psumsq = jnp.sum(part[:, 1, :].reshape(nsteps, W, C), axis=(0, 1))
    scale, shift = _bn_fold(psum, psumsq, float(N * H * W),
                            gamma.reshape(-1), beta.reshape(-1))
    return scale.reshape(1, C), shift.reshape(1, C)


def _phase_planes_stacked(x_nhwc):
    """Zero-pad by 1 and split into the 4 stride-2 polyphase planes, stacked
    as (N*4, Hq, Wq, C).  Requires even H, W."""
    N, H, W, C = x_nhwc.shape
    xp = jnp.pad(x_nhwc, ((0, 0), (1, 1), (1, 1), (0, 0)))
    planes = [xp[:, a::2, b::2, :] for a in range(2) for b in range(2)]
    stacked = jnp.stack(planes, axis=1)                 # (N, 4, Ho+1, Wo+1, C)
    return stacked.reshape(N * 4, H // 2 + 1, W // 2 + 1, C)


def _pick_row_tiling(Ho, Wo):
    """Pick Th output spatial rows per grid step: Th | Ho, (Th*Wo) % 8 == 0,
    targeting ~ROW_TILE_TARGET output rows per step."""
    target = max(1, ROW_TILE_TARGET // max(Wo, 1))
    best = None
    for th in range(1, Ho + 1):
        if Ho % th or (th * Wo) % 8:
            continue
        if best is None or abs(th - target) < abs(best - target):
            best = th
    if best is None:
        best = Ho
    return best, Ho // best


def _prep_conv3x3_weight(w_oihw, cin_kernel, cp):
    """(Cout,Cin,3,3) -> flat (9*cin_kernel, cp) bf16, taps (kh,kw)-major."""
    Cout, Cin, KH, KW = w_oihw.shape
    w = jnp.transpose(w_oihw, (2, 3, 1, 0)).reshape(KH * KW, Cin, Cout)
    w = jnp.pad(w, ((0, 0), (0, cin_kernel - Cin), (0, cp - Cout)))
    return w.reshape(KH * KW * cin_kernel, cp).astype(jnp.bfloat16)


def _prep_shortcut_weight(w_oihw, cp):
    Cout, Cin = w_oihw.shape[0], w_oihw.shape[1]
    w = jnp.transpose(w_oihw[:, :, 0, 0], (1, 0))       # (Cin, Cout)
    return jnp.pad(w, ((0, 0), (0, cp - Cout))).astype(jnp.bfloat16)


def _identity_residual_weight(c, cp):
    return jnp.pad(jnp.eye(c, dtype=jnp.float32),
                   ((0, 0), (0, cp - c))).astype(jnp.bfloat16)


def conv3x3(x_nhwc, w_flat, *, stride, apply_affine, scale=None, shift=None,
            slope_in=LRELU_SLOPE, residual=None, emit_stats=False,
            out_dtype=jnp.float32):
    """Fused (BN+LReLU prologue) 3x3 conv, optional fused residual / stats."""
    N, H, W, Cin = x_nhwc.shape
    Cp = w_flat.shape[1]
    Ho = (H - 1) // stride + 1
    Wo = (W - 1) // stride + 1
    Th, R = _pick_row_tiling(Ho, Wo)
    Trows = Th * Wo
    assert Trows % 8 == 0 or (R == 1 and N == 1), "row tile must be 8-aligned"
    P = stride * stride

    # TODO(synk): the conv zero-padding / polyphase split still materializes a
    # spatially padded copy of the input in HBM (~1.1-2x of the small input
    # tensor); writing the activated plane at an interior scratch offset would
    # remove it but needs unaligned sublane stores.
    if stride == 1:
        Hq, Wq = H + 2, W + 2
        xin = jnp.pad(x_nhwc, ((0, 0), (1, 1), (1, 1), (0, 0)))
        x_spec = pl.BlockSpec((1, Hq, Wq, Cin), lambda n, r: (n, 0, 0, 0))
        scr = pltpu.VMEM((Hq, Wq, Cin), jnp.bfloat16)
    else:
        assert stride == 2 and H % 2 == 0 and W % 2 == 0
        Hq, Wq = Ho + 1, Wo + 1
        xin = _phase_planes_stacked(x_nhwc)             # (N*4, Hq, Wq, Cin)
        x_spec = pl.BlockSpec((P, Hq, Wq, Cin), lambda n, r: (n, 0, 0, 0))
        scr = pltpu.VMEM((P, Hq, Wq, Cin), jnp.bfloat16)

    in_specs = [x_spec]
    args = [xin]
    if apply_affine:
        in_specs += [pl.BlockSpec((1, Cin), lambda n, r: (0, 0)),
                     pl.BlockSpec((1, Cin), lambda n, r: (0, 0))]
        args += [scale, shift]
    # TODO(synk): grid-invariant operands (scale/shift/weights) could be
    # single-buffered (pl.Buffered(1)) to shave VMEM on v7x.
    in_specs.append(pl.BlockSpec((9 * Cin, Cp), lambda n, r: (0, 0)))
    args.append(w_flat)

    res_mode, res_affine, slope_res = "none", False, 1.0
    if residual is not None:
        res_mode = "matmul"
        rz = residual["rz"]                              # (N*Ho*Wo, Cres), un-padded
        Cres = rz.shape[1]
        res_affine = residual.get("affine", False)
        slope_res = residual.get("slope", 1.0)
        in_specs.append(pl.BlockSpec((Trows, Cres), lambda n, r: (n * R + r, 0)))
        args.append(rz)
        if res_affine:
            in_specs += [pl.BlockSpec((1, Cres), lambda n, r: (0, 0)),
                         pl.BlockSpec((1, Cres), lambda n, r: (0, 0))]
            args += [residual["scale"], residual["shift"]]
        in_specs.append(pl.BlockSpec((Cres, Cp), lambda n, r: (0, 0)))
        args.append(residual["weight"])

    out_shapes = [jax.ShapeDtypeStruct((N * Ho * Wo, Cp), out_dtype)]
    out_specs = [pl.BlockSpec((Trows, Cp), lambda n, r: (n * R + r, 0))]
    if emit_stats:
        out_shapes.append(jax.ShapeDtypeStruct((N * R, 2, Cp), jnp.float32))
        out_specs.append(pl.BlockSpec((1, 2, Cp), lambda n, r: (n * R + r, 0, 0)))

    kernel = _make_conv3x3_kernel(
        stride=stride, Ho=Ho, Wo=Wo, Th=Th, num_row_tiles=R, Cin=Cin, Cp=Cp,
        apply_affine=apply_affine, slope_in=slope_in, res_mode=res_mode,
        res_affine=res_affine, slope_res=slope_res, emit_stats=emit_stats,
        out_dtype=out_dtype)

    outs = pl.pallas_call(
        kernel,
        out_shape=tuple(out_shapes) if emit_stats else out_shapes[0],
        grid=(N, R),
        in_specs=in_specs,
        out_specs=tuple(out_specs) if emit_stats else out_specs[0],
        scratch_shapes=[scr],
        compiler_params=pltpu.CompilerParams(
            dimension_semantics=("parallel", "arbitrary"),
            vmem_limit_bytes=VMEM_LIMIT),
    )(*args)
    if emit_stats:
        return outs[0], outs[1], Ho, Wo
    return outs, Ho, Wo


# ------------------------------- BasicBlock ---------------------------------

def init_basic_block_params(key, in_planes, out_planes):
    k1, k2, k3, k4, k5, k6, k7 = jax.random.split(key, 7)
    params = {
        "bn1_gamma": 1.0 + 0.1 * jax.random.normal(k1, (1, in_planes), jnp.float32),
        "bn1_beta": 0.1 * jax.random.normal(k2, (1, in_planes), jnp.float32),
        "conv1_w": 0.1 * jax.random.normal(k3, (out_planes, in_planes, 3, 3), jnp.float32),
        "bn2_gamma": 1.0 + 0.1 * jax.random.normal(k4, (1, out_planes), jnp.float32),
        "bn2_beta": 0.1 * jax.random.normal(k5, (1, out_planes), jnp.float32),
        "conv2_w": 0.1 * jax.random.normal(k6, (out_planes, out_planes, 3, 3), jnp.float32),
    }
    if in_planes != out_planes:
        params["convShortcut_w"] = 0.1 * jax.random.normal(
            k7, (out_planes, in_planes, 1, 1), jnp.float32)
    return params


def basic_block_forward(x_nchw, params, *, stride, drop_rate=0.0,
                        activate_before_residual=False):
    in_planes = x_nchw.shape[1]
    out_planes = params["conv1_w"].shape[0]
    equal_in_out = in_planes == out_planes
    Cp = CPAD

    # TODO(synk): keep activations NHWC and 128-channel padded between blocks
    # so the NCHW<->NHWC transposes and channel slices hoist to once per net.
    x = jnp.transpose(x_nchw, (0, 2, 3, 1)).astype(jnp.float32)
    N, H, W, _ = x.shape

    # relu1(bn1(.)) folded to per-channel scale/shift applied inside the conv
    # kernel.  When in!=out and activate_before_residual is False, conv1 and
    # the shortcut consume RAW x: bn1's output is unused and both the stats
    # pass and the in-kernel prologue are skipped entirely.
    need_act1 = equal_in_out or activate_before_residual
    if need_act1:
        scale1, shift1 = bn_scale_shift(x, params["bn1_gamma"], params["bn1_beta"])
    else:
        scale1 = shift1 = None

    # conv1 (+ fused bn1/relu1 prologue, + bn2 partial-stats side output),
    # intermediate written in bf16.
    w1 = _prep_conv3x3_weight(params["conv1_w"], in_planes, Cp)
    h2d, stats2, Ho, Wo = conv3x3(
        x, w1, stride=stride, apply_affine=need_act1, scale=scale1, shift=shift1,
        slope_in=LRELU_SLOPE, emit_stats=True, out_dtype=jnp.bfloat16)

    # relu2(bn2(.)) folded to scale/shift from the fused stats side output.
    g2 = jnp.pad(params["bn2_gamma"].reshape(-1), (0, Cp - out_planes))
    b2 = jnp.pad(params["bn2_beta"].reshape(-1), (0, Cp - out_planes))
    scale2, shift2 = _bn_fold(jnp.sum(stats2[:, 0, :], axis=0),
                              jnp.sum(stats2[:, 1, :], axis=0),
                              float(N * Ho * Wo), g2, b2)
    scale2 = scale2.reshape(1, Cp)
    shift2 = shift2.reshape(1, Cp)

    if drop_rate > 0:
        # TODO(synk): F.dropout not implemented; module default drop_rate=0.0
        # makes it a no-op.
        pass

    # conv2 (+ fused bn2/relu2 prologue + fused residual matmul)
    h = h2d.reshape(N, Ho, Wo, Cp)
    w2 = _prep_conv3x3_weight(params["conv2_w"], Cp, Cp)
    if equal_in_out:
        assert stride == 1, "identity residual requires stride 1 (as in PyTorch)"
        residual = {
            "rz": x.reshape(N * H * W, in_planes).astype(jnp.bfloat16),
            "weight": _identity_residual_weight(in_planes, Cp),
            "affine": False,
        }
    else:
        z_sub = x[:, ::stride, ::stride, :]             # 1x1/stride-s sampling
        residual = {
            "rz": z_sub.reshape(N * Ho * Wo, in_planes),
            "weight": _prep_shortcut_weight(params["convShortcut_w"], Cp),
            "affine": bool(activate_before_residual),
        }
        if activate_before_residual:
            residual.update(scale=scale1, shift=shift1, slope=LRELU_SLOPE)

    out2d, _, _ = conv3x3(h, w2, stride=1, apply_affine=True,
                          scale=scale2, shift=shift2, slope_in=LRELU_SLOPE,
                          residual=residual, out_dtype=jnp.float32)

    out = out2d.reshape(N, Ho, Wo, Cp)[:, :, :, :out_planes]
    return jnp.transpose(out, (0, 3, 1, 2))             # back to NCHW


# ------------------------------ pure-JAX reference ---------------------------

def _ref_bn_lrelu(x, gamma, beta):
    mean = jnp.mean(x, axis=(0, 1, 2))
    var = jnp.mean(jnp.square(x - mean), axis=(0, 1, 2))
    y = (x - mean) * jax.lax.rsqrt(var + BN_EPS) * gamma.reshape(-1) + beta.reshape(-1)
    return jnp.where(y > 0, y, LRELU_SLOPE * y)


def _ref_conv(x, w_oihw, stride, pad):
    return jax.lax.conv_general_dilated(
        x, jnp.transpose(w_oihw, (2, 3, 1, 0)),
        window_strides=(stride, stride), padding=[(pad, pad), (pad, pad)],
        dimension_numbers=("NHWC", "HWIO", "NHWC"),
        precision=jax.lax.Precision.HIGHEST,
        preferred_element_type=jnp.float32)


def ref_basic_block(x_nchw, params, *, stride, activate_before_residual=False):
    x = jnp.transpose(x_nchw, (0, 2, 3, 1)).astype(jnp.float32)
    in_planes = x.shape[-1]
    out_planes = params["conv1_w"].shape[0]
    equal = in_planes == out_planes
    act = _ref_bn_lrelu(x, params["bn1_gamma"], params["bn1_beta"])
    if (not equal) and activate_before_residual:
        x = act
    h = _ref_conv(act if equal else x, params["conv1_w"], stride, 1)
    h = _ref_bn_lrelu(h, params["bn2_gamma"], params["bn2_beta"])
    out = _ref_conv(h, params["conv2_w"], 1, 1)
    res = x if equal else _ref_conv(x, params["convShortcut_w"], stride, 0)
    return jnp.transpose(out + res, (0, 3, 1, 2))


# ----------------------------------- main ------------------------------------

if __name__ == "__main__":
    key = jax.random.PRNGKey(0)
    k_x, k_p1, k_p2 = jax.random.split(key, 3)

    # Config 1: first block of a widening group: in != out, stride 2,
    # activate_before_residual=True (fused 1x1 convShortcut path).
    N, in_planes, H, W = 2, 8, 16, 16
    out_planes, stride = 16, 2
    x = jax.random.normal(k_x, (N, in_planes, H, W), jnp.float32)
    params1 = init_basic_block_params(k_p1, in_planes, out_planes)

    fwd1 = jax.jit(functools.partial(basic_block_forward, stride=stride,
                                     activate_before_residual=True))
    y1 = jax.block_until_ready(fwd1(x, params1))
    assert y1.shape == (N, out_planes, H // stride, W // stride)
    assert bool(jnp.isfinite(y1).all())
    r1 = jax.block_until_ready(
        ref_basic_block(x, params1, stride=stride, activate_before_residual=True))
    err1 = float(jnp.max(jnp.abs(y1 - r1)))
    assert err1 < 0.1, f"config1 max abs err {err1}"

    # Config 2: identity block: in == out, stride 1 (fused identity-residual path).
    params2 = init_basic_block_params(k_p2, out_planes, out_planes)
    fwd2 = jax.jit(functools.partial(basic_block_forward, stride=1,
                                     activate_before_residual=False))
    y2 = jax.block_until_ready(fwd2(y1, params2))
    assert y2.shape == y1.shape
    assert bool(jnp.isfinite(y2).all())
    r2 = jax.block_until_ready(
        ref_basic_block(y1, params2, stride=1, activate_before_residual=False))
    err2 = float(jnp.max(jnp.abs(y2 - r2)))
    assert err2 < 0.1, f"config2 max abs err {err2}"

    print("KERNEL_OK")
</pallas_src>

<mosaic_0001>
module attributes {stable_mosaic.version = 11 : i64} {
  func.func @_stats_kernel(%arg0: i32, %arg1: memref<16x128xf32, #tpu.memory_space<vmem>>, %arg2: memref<1x2x128xf32, #tpu.memory_space<vmem>>) attributes {dimension_semantics = [#tpu.dimension_semantics<parallel>], iteration_bounds = array<i64: 2>, scalar_prefetch = 0 : i64, scratch_operands = 0 : i64, tpu.core_type = #tpu.core_type<tc>, window_params = [{transform_indices = @transform_0, window_bounds = array<i64: 16, 128>}, {transform_indices = @transform_1, window_bounds = array<i64: 1, 2, 128>}]} {
    %c0 = arith.constant 0 : index
    %c0_0 = arith.constant 0 : index
    %0 = vector.load %arg1[%c0, %c0_0] : memref<16x128xf32, #tpu.memory_space<vmem>>, vector<16x128xf32>
    %cst = arith.constant dense<0.000000e+00> : vector<128xf32>
    %1 = vector.multi_reduction <add>, %0, %cst [0] : vector<16x128xf32> to vector<128xf32>
    %2 = vector.shape_cast %1 : vector<128xf32> to vector<1x128xf32>
    %c0_1 = arith.constant 0 : index
    %c0_2 = arith.constant 0 : index
    %c0_3 = arith.constant 0 : index
    %3 = vector.load %arg2[%c0_1, %c0_2, %c0_3] : memref<1x2x128xf32, #tpu.memory_space<vmem>>, vector<1x1x128xf32>
    %4 = vector.shape_cast %3 : vector<1x1x128xf32> to vector<1x128xf32>
    %5 = vector.shape_cast %2 : vector<1x128xf32> to vector<1x1x128xf32>
    tpu.vector_store %arg2[%c0_1, %c0_2, %c0_3], %5 {strides = array<i32>} : memref<1x2x128xf32, #tpu.memory_space<vmem>>, vector<1x1x128xf32>,
    %6 = arith.mulf %0, %0 : vector<16x128xf32>
    %cst_4 = arith.constant dense<0.000000e+00> : vector<128xf32>
    %7 = vector.multi_reduction <add>, %6, %cst_4 [0] : vector<16x128xf32> to vector<128xf32>
    %8 = vector.shape_cast %7 : vector<128xf32> to vector<1x128xf32>
    %c0_5 = arith.constant 0 : index
    %c1 = arith.constant 1 : index
    %c0_6 = arith.constant 0 : index
    %9 = vector.load %arg2[%c0_5, %c1, %c0_6] : memref<1x2x128xf32, #tpu.memory_space<vmem>>, vector<1x1x128xf32>
    %10 = vector.shape_cast %9 : vector<1x1x128xf32> to vector<1x128xf32>
    %11 = vector.shape_cast %8 : vector<1x128xf32> to vector<1x1x128xf32>
    tpu.vector_store %arg2[%c0_5, %c1, %c0_6], %11 {strides = array<i32>} : memref<1x2x128xf32, #tpu.memory_space<vmem>>, vector<1x1x128xf32>,
    return
  }
  func.func @transform_0(%arg0: i32) -> (i32, i32) {
    %c0_i32 = arith.constant 0 : i32
    %c0_i32_0 = arith.constant 0 : i32
    return %arg0, %c0_i32 : i32, i32
  }
  func.func @transform_1(%arg0: i32) -> (i32, i32, i32) {
    %c0_i32 = arith.constant 0 : i32
    %c0_i32_0 = arith.constant 0 : i32
    %c0_i32_1 = arith.constant 0 : i32
    return %arg0, %c0_i32, %c0_i32_0 : i32, i32, i32
  }
}

module attributes {stable_mosaic.version = 11 : i64} {
  func.func @kernel(%arg0: i32, %arg1: i32, %arg2: memref<4x9x9x8xf32, #tpu.memory_space<vmem>>, %arg3: memref<1x8xf32, #tpu.memory_space<vmem>>, %arg4: memref<1x8xf32, #tpu.memory_space<vmem>>, %arg5: memref<72x128xbf16, #tpu.memory_space<vmem>>, %arg6: memref<64x128xbf16, #tpu.memory_space<vmem>>, %arg7: memref<1x2x128xf32, #tpu.memory_space<vmem>>, %arg8: memref<4x9x9x8xbf16, #tpu.memory_space<vmem>>) attributes {dimension_semantics = [#tpu.dimension_semantics<parallel>, #tpu.dimension_semantics<arbitrary>], iteration_bounds = array<i64: 2, 1>, scalar_prefetch = 0 : i64, scratch_operands = 1 : i64, tpu.core_type = #tpu.core_type<tc>, window_params = [{transform_indices = @transform_0, window_bounds = array<i64: 4, 9, 9, 8>}, {pipeline_mode = #tpu.pipeline_mode<synchronous>, transform_indices = @transform_1, window_bounds = array<i64: 1, 8>}, {pipeline_mode = #tpu.pipeline_mode<synchronous>, transform_indices = @transform_2, window_bounds = array<i64: 1, 8>}, {pipeline_mode = #tpu.pipeline_mode<synchronous>, transform_indices = @transform_3, window_bounds = array<i64: 72, 128>}, {transform_indices = @transform_4, window_bounds = array<i64: 64, 128>}, {transform_indices = @transform_5, window_bounds = array<i64: 1, 2, 128>}]} {
    %c0_i32 = arith.constant 0 : i32
    %0 = arith.cmpi eq, %arg1, %c0_i32 : i32
    %1 = arith.extui %0 : i1 to i32
    %c0_i32_0 = arith.constant 0 : i32
    %2 = arith.cmpi ne, %1, %c0_i32_0 : i32
    scf.if %2 {
      %71 = tpu.iota {dimensions = array<i32: 0>} : vector<9x9x8xi32>
      %72 = tpu.iota {dimensions = array<i32: 1>} : vector<9x9x8xi32>
      %c0_62 = arith.constant 0 : index
      %c0_63 = arith.constant 0 : index
      %c0_64 = arith.constant 0 : index
      %c0_65 = arith.constant 0 : index
      %73 = vector.load %arg2[%c0_62, %c0_63, %c0_64, %c0_65] : memref<4x9x9x8xf32, #tpu.memory_space<vmem>>, vector<1x9x9x8xf32>
      %74 = vector.shape_cast %73 : vector<1x9x9x8xf32> to vector<9x9x8xf32>
      %c0_66 = arith.constant 0 : index
      %c0_67 = arith.constant 0 : index
      %75 = vector.load %arg3[%c0_66, %c0_67] : memref<1x8xf32, #tpu.memory_space<vmem>>, vector<1x8xf32>
      %76 = vector.shape_cast %75 : vector<1x8xf32> to vector<1x1x8xf32>
      %77 = vector.broadcast %76 : vector<1x1x8xf32> to vector<9x9x8xf32>
      %78 = arith.mulf %74, %77 : vector<9x9x8xf32>
      %c0_68 = arith.constant 0 : index
      %c0_69 = arith.constant 0 : index
      %79 = vector.load %arg4[%c0_68, %c0_69] : memref<1x8xf32, #tpu.memory_space<vmem>>, vector<1x8xf32>
      %80 = vector.shape_cast %79 : vector<1x8xf32> to vector<1x1x8xf32>
      %81 = vector.broadcast %80 : vector<1x1x8xf32> to vector<9x9x8xf32>
      %82 = arith.addf %78, %81 : vector<9x9x8xf32>
      %cst_70 = arith.constant 0.000000e+00 : f32
      %83 = vector.broadcast %cst_70 : f32 to vector<9x9x8xf32>
      %84 = arith.cmpf ogt, %82, %83 : vector<9x9x8xf32>
      %cst_71 = arith.constant 1.000000e-01 : f32
      %85 = vector.broadcast %cst_71 : f32 to vector<9x9x8xf32>
      %86 = arith.mulf %85, %82 : vector<9x9x8xf32>
      %87 = arith.select %84, %82, %86 : vector<9x9x8xi1>, vector<9x9x8xf32>
      %c1_i32 = arith.constant 1 : i32
      %88 = vector.broadcast %c1_i32 : i32 to vector<9x9x8xi32>
      %89 = arith.cmpi sge, %71, %88 : vector<9x9x8xi32>
      %c9_i32 = arith.constant 9 : i32
      %90 = vector.broadcast %c9_i32 : i32 to vector<9x9x8xi32>
      %91 = arith.cmpi slt, %71, %90 : vector<9x9x8xi32>
      %92 = arith.andi %89, %91 : vector<9x9x8xi1>
      %c1_i32_72 = arith.constant 1 : i32
      %93 = vector.broadcast %c1_i32_72 : i32 to vector<9x9x8xi32>
      %94 = arith.cmpi sge, %72, %93 : vector<9x9x8xi32>
      %95 = arith.andi %92, %94 : vector<9x9x8xi1>
      %c9_i32_73 = arith.constant 9 : i32
      %96 = vector.broadcast %c9_i32_73 : i32 to vector<9x9x8xi32>
      %97 = arith.cmpi slt, %72, %96 : vector<9x9x8xi32>
      %98 = arith.andi %95, %97 : vector<9x9x8xi1>
      %cst_74 = arith.constant 0.000000e+00 : f32
      %99 = vector.broadcast %cst_74 : f32 to vector<9x9x8xf32>
      %100 = arith.select %98, %87, %99 : vector<9x9x8xi1>, vector<9x9x8xf32>
      %101 = arith.truncf %100 : vector<9x9x8xf32> to vector<9x9x8xbf16>
      %c0_75 = arith.constant 0 : index
      %c0_76 = arith.constant 0 : index
      %c0_77 = arith.constant 0 : index
      %c0_78 = arith.constant 0 : index
      %102 = vector.load %arg8[%c0_75, %c0_76, %c0_77, %c0_78] : memref<4x9x9x8xbf16, #tpu.memory_space<vmem>>, vector<1x9x9x8xbf16>
      %103 = vector.shape_cast %102 : vector<1x9x9x8xbf16> to vector<9x9x8xbf16>
      %104 = vector.shape_cast %101 : vector<9x9x8xbf16> to vector<1x9x9x8xbf16>
      tpu.vector_store %arg8[%c0_75, %c0_76, %c0_77, %c0_78], %104 {strides = array<i32>} : memref<4x9x9x8xbf16, #tpu.memory_space<vmem>>, vector<1x9x9x8xbf16>,
      %c1_79 = arith.constant 1 : index
      %c0_80 = arith.constant 0 : index
      %c0_81 = arith.constant 0 : index
      %c0_82 = arith.constant 0 : index
      %105 = vector.load %arg2[%c1_79, %c0_80, %c0_81, %c0_82] : memref<4x9x9x8xf32, #tpu.memory_space<vmem>>, vector<1x9x9x8xf32>
      %106 = vector.shape_cast %105 : vector<1x9x9x8xf32> to vector<9x9x8xf32>
      %c0_83 = arith.constant 0 : index
      %c0_84 = arith.constant 0 : index
      %107 = vector.load %arg3[%c0_83, %c0_84] : memref<1x8xf32, #tpu.memory_space<vmem>>, vector<1x8xf32>
      %108 = vector.shape_cast %107 : vector<1x8xf32> to vector<1x1x8xf32>
      %109 = vector.broadcast %108 : vector<1x1x8xf32> to vector<9x9x8xf32>
      %110 = arith.mulf %106, %109 : vector<9x9x8xf32>
      %c0_85 = arith.constant 0 : index
      %c0_86 = arith.constant 0 : index
      %111 = vector.load %arg4[%c0_85, %c0_86] : memref<1x8xf32, #tpu.memory_space<vmem>>, vector<1x8xf32>
      %112 = vector.shape_cast %111 : vector<1x8xf32> to vector<1x1x8xf32>
      %113 = vector.broadcast %112 : vector<1x1x8xf32> to vector<9x9x8xf32>
      %114 = arith.addf %110, %113 : vector<9x9x8xf32>
      %cst_87 = arith.constant 0.000000e+00 : f32
      %115 = vector.broadcast %cst_87 : f32 to vector<9x9x8xf32>
      %116 = arith.cmpf ogt, %114, %115 : vector<9x9x8xf32>
      %cst_88 = arith.constant 1.000000e-01 : f32
      %117 = vector.broadcast %cst_88 : f32 to vector<9x9x8xf32>
      %118 = arith.mulf %117, %114 : vector<9x9x8xf32>
      %119 = arith.select %116, %114, %118 : vector<9x9x8xi1>, vector<9x9x8xf32>
      %c1_i32_89 = arith.constant 1 : i32
      %120 = vector.broadcast %c1_i32_89 : i32 to vector<9x9x8xi32>
      %121 = arith.cmpi sge, %71, %120 : vector<9x9x8xi32>
      %c9_i32_90 = arith.constant 9 : i32
      %122 = vector.broadcast %c9_i32_90 : i32 to vector<9x9x8xi32>
      %123 = arith.cmpi slt, %71, %122 : vector<9x9x8xi32>
      %124 = arith.andi %121, %123 : vector<9x9x8xi1>
      %c0_i32_91 = arith.constant 0 : i32
      %125 = vector.broadcast %c0_i32_91 : i32 to vector<9x9x8xi32>
      %126 = arith.cmpi sge, %72, %125 : vector<9x9x8xi32>
      %127 = arith.andi %124, %126 : vector<9x9x8xi1>
      %c8_i32 = arith.constant 8 : i32
      %128 = vector.broadcast %c8_i32 : i32 to vector<9x9x8xi32>
      %129 = arith.cmpi slt, %72, %128 : vector<9x9x8xi32>
      %130 = arith.andi %127, %129 : vector<9x9x8xi1>
      %cst_92 = arith.constant 0.000000e+00 : f32
      %131 = vector.broadcast %cst_92 : f32 to vector<9x9x8xf32>
      %132 = arith.select %130, %119, %131 : vector<9x9x8xi1>, vector<9x9x8xf32>
      %133 = arith.truncf %132 : vector<9x9x8xf32> to vector<9x9x8xbf16>
      %c1_93 = arith.constant 1 : index
      %c0_94 = arith.constant 0 : index
      %c0_95 = arith.constant 0 : index
      %c0_96 = arith.constant 0 : index
      %134 = vector.load %arg8[%c1_93, %c0_94, %c0_95, %c0_96] : memref<4x9x9x8xbf16, #tpu.memory_space<vmem>>, vector<1x9x9x8xbf16>
      %135 = vector.shape_cast %134 : vector<1x9x9x8xbf16> to vector<9x9x8xbf16>
      %136 = vector.shape_cast %133 : vector<9x9x8xbf16> to vector<1x9x9x8xbf16>
      tpu.vector_store %arg8[%c1_93, %c0_94, %c0_95, %c0_96], %136 {strides = array<i32>} : memref<4x9x9x8xbf16, #tpu.memory_space<vmem>>, vector<1x9x9x8xbf16>,
      %c2_97 = arith.constant 2 : index
      %c0_98 = arith.constant 0 : index
      %c0_99 = arith.constant 0 : index
      %c0_100 = arith.constant 0 : index
      %137 = vector.load %arg2[%c2_97, %c0_98, %c0_99, %c0_100] : memref<4x9x9x8xf32, #tpu.memory_space<vmem>>, vector<1x9x9x8xf32>
      %138 = vector.shape_cast %137 : vector<1x9x9x8xf32> to vector<9x9x8xf32>
      %c0_101 = arith.constant 0 : index
      %c0_102 = arith.constant 0 : index
      %139 = vector.load %arg3[%c0_101, %c0_102] : memref<1x8xf32, #tpu.memory_space<vmem>>, vector<1x8xf32>
      %140 = vector.shape_cast %139 : vector<1x8xf32> to vector<1x1x8xf32>
      %141 = vector.broadcast %140 : vector<1x1x8xf32> to vector<9x9x8xf32>
      %142 = arith.mulf %138, %141 : vector<9x9x8xf32>
      %c0_103 = arith.constant 0 : index
      %c0_104 = arith.constant 0 : index
      %143 = vector.load %arg4[%c0_103, %c0_104] : memref<1x8xf32, #tpu.memory_space<vmem>>, vector<1x8xf32>
      %144 = vector.shape_cast %143 : vector<1x8xf32> to vector<1x1x8xf32>
      %145 = vector.broadcast %144 : vector<1x1x8xf32> to vector<9x9x8xf32>
      %146 = arith.addf %142, %145 : vector<9x9x8xf32>
      %cst_105 = arith.constant 0.000000e+00 : f32
      %147 = vector.broadcast %cst_105 : f32 to vector<9x9x8xf32>
      %148 = arith.cmpf ogt, %146, %147 : vector<9x9x8xf32>
      %cst_106 = arith.constant 1.000000e-01 : f32
      %149 = vector.broadcast %cst_106 : f32 to vector<9x9x8xf32>
      %150 = arith.mulf %149, %146 : vector<9x9x8xf32>
      %151 = arith.select %148, %146, %150 : vector<9x9x8xi1>, vector<9x9x8xf32>
      %c0_i32_107 = arith.constant 0 : i32
      %152 = vector.broadcast %c0_i32_107 : i32 to vector<9x9x8xi32>
      %153 = arith.cmpi sge, %71, %152 : vector<9x9x8xi32>
      %c8_i32_108 = arith.constant 8 : i32
      %154 = vector.broadcast %c8_i32_108 : i32 to vector<9x9x8xi32>
      %155 = arith.cmpi slt, %71, %154 : vector<9x9x8xi32>
      %156 = arith.andi %153, %155 : vector<9x9x8xi1>
      %c1_i32_109 = arith.constant 1 : i32
      %157 = vector.broadcast %c1_i32_109 : i32 to vector<9x9x8xi32>
      %158 = arith.cmpi sge, %72, %157 : vector<9x9x8xi32>
      %159 = arith.andi %156, %158 : vector<9x9x8xi1>
      %c9_i32_110 = arith.constant 9 : i32
      %160 = vector.broadcast %c9_i32_110 : i32 to vector<9x9x8xi32>
      %161 = arith.cmpi slt, %72, %160 : vector<9x9x8xi32>
      %162 = arith.andi %159, %161 : vector<9x9x8xi1>
      %cst_111 = arith.constant 0.000000e+00 : f32
      %163 = vector.broadcast %cst_111 : f32 to vector<9x9x8xf32>
      %164 = arith.select %162, %151, %163 : vector<9x9x8xi1>, vector<9x9x8xf32>
      %165 = arith.truncf %164 : vector<9x9x8xf32> to vector<9x9x8xbf16>
      %c2_112 = arith.constant 2 : index
      %c0_113 = arith.constant 0 : index
      %c0_114 = arith.constant 0 : index
      %c0_115 = arith.constant 0 : index
      %166 = vector.load %arg8[%c2_112, %c0_113, %c0_114, %c0_115] : memref<4x9x9x8xbf16, #tpu.memory_space<vmem>>, vector<1x9x9x8xbf16>
      %167 = vector.shape_cast %166 : vector<1x9x9x8xbf16> to vector<9x9x8xbf16>
      %168 = vector.shape_cast %165 : vector<9x9x8xbf16> to vector<1x9x9x8xbf16>
      tpu.vector_store %arg8[%c2_112, %c0_113, %c0_114, %c0_115], %168 {strides = array<i32>} : memref<4x9x9x8xbf16, #tpu.memory_space<vmem>>, vector<1x9x9x8xbf16>,
      %c3_116 = arith.constant 3 : index
      %c0_117 = arith.constant 0 : index
      %c0_118 = arith.constant 0 : index
      %c0_119 = arith.constant 0 : index
      %169 = vector.load %arg2[%c3_116, %c0_117, %c0_118, %c0_119] : memref<4x9x9x8xf32, #tpu.memory_space<vmem>>, vector<1x9x9x8xf32>
      %170 = vector.shape_cast %169 : vector<1x9x9x8xf32> to vector<9x9x8xf32>
      %c0_120 = arith.constant 0 : index
      %c0_121 = arith.constant 0 : index
      %171 = vector.load %arg3[%c0_120, %c0_121] : memref<1x8xf32, #tpu.memory_space<vmem>>, vector<1x8xf32>
      %172 = vector.shape_cast %171 : vector<1x8xf32> to vector<1x1x8xf32>
      %173 = vector.broadcast %172 : vector<1x1x8xf32> to vector<9x9x8xf32>
      %174 = arith.mulf %170, %173 : vector<9x9x8xf32>
      %c0_122 = arith.constant 0 : index
      %c0_123 = arith.constant 0 : index
      %175 = vector.load %arg4[%c0_122, %c0_123] : memref<1x8xf32, #tpu.memory_space<vmem>>, vector<1x8xf32>
      %176 = vector.shape_cast %175 : vector<1x8xf32> to vector<1x1x8xf32>
      %177 = vector.broadcast %176 : vector<1x1x8xf32> to vector<9x9x8xf32>
      %178 = arith.addf %174, %177 : vector<9x9x8xf32>
      %cst_124 = arith.constant 0.000000e+00 : f32
      %179 = vector.broadcast %cst_124 : f32 to vector<9x9x8xf32>
      %180 = arith.cmpf ogt, %178, %179 : vector<9x9x8xf32>
      %cst_125 = arith.constant 1.000000e-01 : f32
      %181 = vector.broadcast %cst_125 : f32 to vector<9x9x8xf32>
      %182 = arith.mulf %181, %178 : vector<9x9x8xf32>
      %183 = arith.select %180, %178, %182 : vector<9x9x8xi1>, vector<9x9x8xf32>
      %c0_i32_126 = arith.constant 0 : i32
      %184 = vector.broadcast %c0_i32_126 : i32 to vector<9x9x8xi32>
      %185 = arith.cmpi sge, %71, %184 : vector<9x9x8xi32>
      %c8_i32_127 = arith.constant 8 : i32
      %186 = vector.broadcast %c8_i32_127 : i32 to vector<9x9x8xi32>
      %187 = arith.cmpi slt, %71, %186 : vector<9x9x8xi32>
      %188 = arith.andi %185, %187 : vector<9x9x8xi1>
      %c0_i32_128 = arith.constant 0 : i32
      %189 = vector.broadcast %c0_i32_128 : i32 to vector<9x9x8xi32>
      %190 = arith.cmpi sge, %72, %189 : vector<9x9x8xi32>
      %191 = arith.andi %188, %190 : vector<9x9x8xi1>
      %c8_i32_129 = arith.constant 8 : i32
      %192 = vector.broadcast %c8_i32_129 : i32 to vector<9x9x8xi32>
      %193 = arith.cmpi slt, %72, %192 : vector<9x9x8xi32>
      %194 = arith.andi %191, %193 : vector<9x9x8xi1>
      %cst_130 = arith.constant 0.000000e+00 : f32
      %195 = vector.broadcast %cst_130 : f32 to vector<9x9x8xf32>
      %196 = arith.select %194, %183, %195 : vector<9x9x8xi1>, vector<9x9x8xf32>
      %197 = arith.truncf %196 : vector<9x9x8xf32> to vector<9x9x8xbf16>
      %c3_131 = arith.constant 3 : index
      %c0_132 = arith.constant 0 : index
      %c0_133 = arith.constant 0 : index
      %c0_134 = arith.constant 0 : index
      %198 = vector.load %arg8[%c3_131, %c0_132, %c0_133, %c0_134] : memref<4x9x9x8xbf16, #tpu.memory_space<vmem>>, vector<1x9x9x8xbf16>
      %199 = vector.shape_cast %198 : vector<1x9x9x8xbf16> to vector<9x9x8xbf16>
      %200 = vector.shape_cast %197 : vector<9x9x8xbf16> to vector<1x9x9x8xbf16>
      tpu.vector_store %arg8[%c3_131, %c0_132, %c0_133, %c0_134], %200 {strides = array<i32>} : memref<4x9x9x8xbf16, #tpu.memory_space<vmem>>, vector<1x9x9x8xbf16>,
    } else {
    }
    %cst = arith.constant 0.000000e+00 : f32
    %3 = vector.broadcast %cst : f32 to vector<64x128xf32>
    %c0 = arith.constant 0 : index
    %c0_1 = arith.constant 0 : index
    %c0_2 = arith.constant 0 : index
    %c0_3 = arith.constant 0 : index
    %4 = vector.load %arg8[%c0, %c0_1, %c0_2, %c0_3] : memref<4x9x9x8xbf16, #tpu.memory_space<vmem>>, vector<1x8x8x8xbf16>
    %5 = vector.shape_cast %4 : vector<1x8x8x8xbf16> to vector<8x8x8xbf16>
    %6 = vector.shape_cast %5 : vector<8x8x8xbf16> to vector<64x8xbf16>
    %c0_4 = arith.constant 0 : index
    %c0_5 = arith.constant 0 : index
    %7 = vector.load %arg5[%c0_4, %c0_5] : memref<72x128xbf16, #tpu.memory_space<vmem>>, vector<8x128xbf16>
    %cst_6 = arith.constant dense<0.000000e+00> : vector<64x128xf32>
    %8 = tpu.matmul %6, %7, %cst_6 {dimension_numbers = #tpu.dot_dimension_numbers<[1], [0], [0], [1], [0, 0, 1, 1], [], []>} : vector<64x8xbf16>, vector<8x128xbf16>, vector<64x128xf32> -> vector<64x128xf32>
    %9 = arith.addf %3, %8 : vector<64x128xf32>
    %c1 = arith.constant 1 : index
    %c0_7 = arith.constant 0 : index
    %c0_8 = arith.constant 0 : index
    %c0_9 = arith.constant 0 : index
    %10 = vector.load %arg8[%c1, %c0_7, %c0_8, %c0_9] : memref<4x9x9x8xbf16, #tpu.memory_space<vmem>>, vector<1x8x8x8xbf16>
    %11 = vector.shape_cast %10 : vector<1x8x8x8xbf16> to vector<8x8x8xbf16>
    %12 = vector.shape_cast %11 : vector<8x8x8xbf16> to vector<64x8xbf16>
    %c8 = arith.constant 8 : index
    %c0_10 = arith.constant 0 : index
    %13 = vector.load %arg5[%c8, %c0_10] : memref<72x128xbf16, #tpu.memory_space<vmem>>, vector<8x128xbf16>
    %cst_11 = arith.constant dense<0.000000e+00> : vector<64x128xf32>
    %14 = tpu.matmul %12, %13, %cst_11 {dimension_numbers = #tpu.dot_dimension_numbers<[1], [0], [0], [1], [0, 0, 1, 1], [], []>} : vector<64x8xbf16>, vector<8x128xbf16>, vector<64x128xf32> -> vector<64x128xf32>
    %15 = arith.addf %9, %14 : vector<64x128xf32>
    %c0_12 = arith.constant 0 : index
    %c0_13 = arith.constant 0 : index
    %c1_14 = arith.constant 1 : index
    %c0_15 = arith.constant 0 : index
    %16 = vector.load %arg8[%c0_12, %c0_13, %c1_14, %c0_15] : memref<4x9x9x8xbf16, #tpu.memory_space<vmem>>, vector<1x8x8x8xbf16>
    %17 = vector.shape_cast %16 : vector<1x8x8x8xbf16> to vector<8x8x8xbf16>
    %18 = vector.shape_cast %17 : vector<8x8x8xbf16> to vector<64x8xbf16>
    %c16 = arith.constant 16 : index
    %c0_16 = arith.constant 0 : index
    %19 = vector.load %arg5[%c16, %c0_16] : memref<72x128xbf16, #tpu.memory_space<vmem>>, vector<8x128xbf16>
    %cst_17 = arith.constant dense<0.000000e+00> : vector<64x128xf32>
    %20 = tpu.matmul %18, %19, %cst_17 {dimension_numbers = #tpu.dot_dimension_numbers<[1], [0], [0], [1], [0, 0, 1, 1], [], []>} : vector<64x8xbf16>, vector<8x128xbf16>, vector<64x128xf32> -> vector<64x128xf32>
    %21 = arith.addf %15, %20 : vector<64x128xf32>
    %c2 = arith.constant 2 : index
    %c0_18 = arith.constant 0 : index
    %c0_19 = arith.constant 0 : index
    %c0_20 = arith.constant 0 : index
    %22 = vector.load %arg8[%c2, %c0_18, %c0_19, %c0_20] : memref<4x9x9x8xbf16, #tpu.memory_space<vmem>>, vector<1x8x8x8xbf16>
    %23 = vector.shape_cast %22 : vector<1x8x8x8xbf16> to vector<8x8x8xbf16>
    %24 = vector.shape_cast %23 : vector<8x8x8xbf16> to vector<64x8xbf16>
    %c24 = arith.constant 24 : index
    %c0_21 = arith.constant 0 : index
    %25 = vector.load %arg5[%c24, %c0_21] : memref<72x128xbf16, #tpu.memory_space<vmem>>, vector<8x128xbf16>
    %cst_22 = arith.constant dense<0.000000e+00> : vector<64x128xf32>
    %26 = tpu.matmul %24, %25, %cst_22 {dimension_numbers = #tpu.dot_dimension_numbers<[1], [0], [0], [1], [0, 0, 1, 1], [], []>} : vector<64x8xbf16>, vector<8x128xbf16>, vector<64x128xf32> -> vector<64x128xf32>
    %27 = arith.addf %21, %26 : vector<64x128xf32>
    %c3 = arith.constant 3 : index
    %c0_23 = arith.constant 0 : index
    %c0_24 = arith.constant 0 : index
    %c0_25 = arith.constant 0 : index
    %28 = vector.load %arg8[%c3, %c0_23, %c0_24, %c0_25] : memref<4x9x9x8xbf16, #tpu.memory_space<vmem>>, vector<1x8x8x8xbf16>
    %29 = vector.shape_cast %28 : vector<1x8x8x8xbf16> to vector<8x8x8xbf16>
    %30 = vector.shape_cast %29 : vector<8x8x8xbf16> to vector<64x8xbf16>
    %c32 = arith.constant 32 : index
    %c0_26 = arith.constant 0 : index
    %31 = vector.load %arg5[%c32, %c0_26] : memref<72x128xbf16, #tpu.memory_space<vmem>>, vector<8x128xbf16>
    %cst_27 = arith.constant dense<0.000000e+00> : vector<64x128xf32>
    %32 = tpu.matmul %30, %31, %cst_27 {dimension_numbers = #tpu.dot_dimension_numbers<[1], [0], [0], [1], [0, 0, 1, 1], [], []>} : vector<64x8xbf16>, vector<8x128xbf16>, vector<64x128xf32> -> vector<64x128xf32>
    %33 = arith.addf %27, %32 : vector<64x128xf32>
    %c2_28 = arith.constant 2 : index
    %c0_29 = arith.constant 0 : index
    %c1_30 = arith.constant 1 : index
    %c0_31 = arith.constant 0 : index
    %34 = vector.load %arg8[%c2_28, %c0_29, %c1_30, %c0_31] : memref<4x9x9x8xbf16, #tpu.memory_space<vmem>>, vector<1x8x8x8xbf16>
    %35 = vector.shape_cast %34 : vector<1x8x8x8xbf16> to vector<8x8x8xbf16>
    %36 = vector.shape_cast %35 : vector<8x8x8xbf16> to vector<64x8xbf16>
    %c40 = arith.constant 40 : index
    %c0_32 = arith.constant 0 : index
    %37 = vector.load %arg5[%c40, %c0_32] : memref<72x128xbf16, #tpu.memory_space<vmem>>, vector<8x128xbf16>
    %cst_33 = arith.constant dense<0.000000e+00> : vector<64x128xf32>
    %38 = tpu.matmul %36, %37, %cst_33 {dimension_numbers = #tpu.dot_dimension_numbers<[1], [0], [0], [1], [0, 0, 1, 1], [], []>} : vector<64x8xbf16>, vector<8x128xbf16>, vector<64x128xf32> -> vector<64x128xf32>
    %39 = arith.addf %33, %38 : vector<64x128xf32>
    %c0_34 = arith.constant 0 : index
    %c1_35 = arith.constant 1 : index
    %c0_36 = arith.constant 0 : index
    %c0_37 = arith.constant 0 : index
    %40 = vector.load %arg8[%c0_34, %c1_35, %c0_36, %c0_37] : memref<4x9x9x8xbf16, #tpu.memory_space<vmem>>, vector<1x8x8x8xbf16>
    %41 = vector.shape_cast %40 : vector<1x8x8x8xbf16> to vector<8x8x8xbf16>
    %42 = vector.shape_cast %41 : vector<8x8x8xbf16> to vector<64x8xbf16>
    %c48 = arith.constant 48 : index
    %c0_38 = arith.constant 0 : index
    %43 = vector.load %arg5[%c48, %c0_38] : memref<72x128xbf16, #tpu.memory_space<vmem>>, vector<8x128xbf16>
    %cst_39 = arith.constant dense<0.000000e+00> : vector<64x128xf32>
    %44 = tpu.matmul %42, %43, %cst_39 {dimension_numbers = #tpu.dot_dimension_numbers<[1], [0], [0], [1], [0, 0, 1, 1], [], []>} : vector<64x8xbf16>, vector<8x128xbf16>, vector<64x128xf32> -> vector<64x128xf32>
    %45 = arith.addf %39, %44 : vector<64x128xf32>
    %c1_40 = arith.constant 1 : index
    %c1_41 = arith.constant 1 : index
    %c0_42 = arith.constant 0 : index
    %c0_43 = arith.constant 0 : index
    %46 = vector.load %arg8[%c1_40, %c1_41, %c0_42, %c0_43] : memref<4x9x9x8xbf16, #tpu.memory_space<vmem>>, vector<1x8x8x8xbf16>
    %47 = vector.shape_cast %46 : vector<1x8x8x8xbf16> to vector<8x8x8xbf16>
    %48 = vector.shape_cast %47 : vector<8x8x8xbf16> to vector<64x8xbf16>
    %c56 = arith.constant 56 : index
    %c0_44 = arith.constant 0 : index
    %49 = vector.load %arg5[%c56, %c0_44] : memref<72x128xbf16, #tpu.memory_space<vmem>>, vector<8x128xbf16>
    %cst_45 = arith.constant dense<0.000000e+00> : vector<64x128xf32>
    %50 = tpu.matmul %48, %49, %cst_45 {dimension_numbers = #tpu.dot_dimension_numbers<[1], [0], [0], [1], [0, 0, 1, 1], [], []>} : vector<64x8xbf16>, vector<8x128xbf16>, vector<64x128xf32> -> vector<64x128xf32>
    %51 = arith.addf %45, %50 : vector<64x128xf32>
    %c0_46 = arith.constant 0 : index
    %c1_47 = arith.constant 1 : index
    %c1_48 = arith.constant 1 : index
    %c0_49 = arith.constant 0 : index
    %52 = vector.load %arg8[%c0_46, %c1_47, %c1_48, %c0_49] : memref<4x9x9x8xbf16, #tpu.memory_space<vmem>>, vector<1x8x8x8xbf16>
    %53 = vector.shape_cast %52 : vector<1x8x8x8xbf16> to vector<8x8x8xbf16>
    %54 = vector.shape_cast %53 : vector<8x8x8xbf16> to vector<64x8xbf16>
    %c64 = arith.constant 64 : index
    %c0_50 = arith.constant 0 : index
    %55 = vector.load %arg5[%c64, %c0_50] : memref<72x128xbf16, #tpu.memory_space<vmem>>, vector<8x128xbf16>
    %cst_51 = arith.constant dense<0.000000e+00> : vector<64x128xf32>
    %56 = tpu.matmul %54, %55, %cst_51 {dimension_numbers = #tpu.dot_dimension_numbers<[1], [0], [0], [1], [0, 0, 1, 1], [], []>} : vector<64x8xbf16>, vector<8x128xbf16>, vector<64x128xf32> -> vector<64x128xf32>
    %57 = arith.addf %51, %56 : vector<64x128xf32>
    %58 = arith.truncf %57 : vector<64x128xf32> to vector<64x128xbf16>
    %c0_52 = arith.constant 0 : index
    %c0_53 = arith.constant 0 : index
    %59 = vector.load %arg6[%c0_52, %c0_53] : memref<64x128xbf16, #tpu.memory_space<vmem>>, vector<64x128xbf16>
    tpu.vector_store %arg6[%c0_52, %c0_53], %58 {strides = array<i32>} : memref<64x128xbf16, #tpu.memory_space<vmem>>, vector<64x128xbf16>,
    %cst_54 = arith.constant dense<0.000000e+00> : vector<128xf32>
    %60 = vector.multi_reduction <add>, %57, %cst_54 [0] : vector<64x128xf32> to vector<128xf32>
    %61 = vector.shape_cast %60 : vector<128xf32> to vector<1x128xf32>
    %c0_55 = arith.constant 0 : index
    %c0_56 = arith.constant 0 : index
    %c0_57 = arith.constant 0 : index
    %62 = vector.load %arg7[%c0_55, %c0_56, %c0_57] : memref<1x2x128xf32, #tpu.memory_space<vmem>>, vector<1x1x128xf32>
    %63 = vector.shape_cast %62 : vector<1x1x128xf32> to vector<1x128xf32>
    %64 = vector.shape_cast %61 : vector<1x128xf32> to vector<1x1x128xf32>
    tpu.vector_store %arg7[%c0_55, %c0_56, %c0_57], %64 {strides = array<i32>} : memref<1x2x128xf32, #tpu.memory_space<vmem>>, vector<1x1x128xf32>,
    %65 = arith.mulf %57, %57 : vector<64x128xf32>
    %cst_58 = arith.constant dense<0.000000e+00> : vector<128xf32>
    %66 = vector.multi_reduction <add>, %65, %cst_58 [0] : vector<64x128xf32> to vector<128xf32>
    %67 = vector.shape_cast %66 : vector<128xf32> to vector<1x128xf32>
    %c0_59 = arith.constant 0 : index
    %c1_60 = arith.constant 1 : index
    %c0_61 = arith.constant 0 : index
    %68 = vector.load %arg7[%c0_59, %c1_60, %c0_61] : memref<1x2x128xf32, #tpu.memory_space<vmem>>, vector<1x1x128xf32>
    %69 = vector.shape_cast %68 : vector<1x1x128xf32> to vector<1x128xf32>
    %70 = vector.shape_cast %67 : vector<1x128xf32> to vector<1x1x128xf32>
    tpu.vector_store %arg7[%c0_59, %c1_60, %c0_61], %70 {strides = array<i32>} : memref<1x2x128xf32, #tpu.memory_space<vmem>>, vector<1x1x128xf32>,
    return
  }
  func.func @transform_0(%arg0: i32, %arg1: i32) -> (i32, i32, i32, i32) {
    %c0_i32 = arith.constant 0 : i32
    %c0_i32_0 = arith.constant 0 : i32
    %c0_i32_1 = arith.constant 0 : i32
    %c0_i32_2 = arith.constant 0 : i32
    return %arg0, %c0_i32, %c0_i32_0, %c0_i32_1 : i32, i32, i32, i32
  }
  func.func @transform_1(%arg0: i32, %arg1: i32) -> (i32, i32) {
    %c0_i32 = arith.constant 0 : i32
    %c0_i32_0 = arith.constant 0 : i32
    %c0_i32_1 = arith.constant 0 : i32
    return %c0_i32, %c0_i32_0 : i32, i32
  }
  func.func @transform_2(%arg0: i32, %arg1: i32) -> (i32, i32) {
    %c0_i32 = arith.constant 0 : i32
    %c0_i32_0 = arith.constant 0 : i32
    %c0_i32_1 = arith.constant 0 : i32
    return %c0_i32, %c0_i32_0 : i32, i32
  }
  func.func @transform_3(%arg0: i32, %arg1: i32) -> (i32, i32) {
    %c0_i32 = arith.constant 0 : i32
    %c0_i32_0 = arith.constant 0 : i32
    %c0_i32_1 = arith.constant 0 : i32
    return %c0_i32, %c0_i32_0 : i32, i32
  }
  func.func @transform_4(%arg0: i32, %arg1: i32) -> (i32, i32) {
    %c1_i32 = arith.constant 1 : i32
    %0 = arith.muli %arg0, %c1_i32 : i32
    %1 = arith.addi %0, %arg1 : i32
    %c0_i32 = arith.constant 0 : i32
    %c0_i32_0 = arith.constant 0 : i32
    return %1, %c0_i32 : i32, i32
  }
  func.func @transform_5(%arg0: i32, %arg1: i32) -> (i32, i32, i32) {
    %c1_i32 = arith.constant 1 : i32
    %0 = arith.muli %arg0, %c1_i32 : i32
    %1 = arith.addi %0, %arg1 : i32
    %c0_i32 = arith.constant 0 : i32
    %c0_i32_0 = arith.constant 0 : i32
    %c0_i32_1 = arith.constant 0 : i32
    return %1, %c0_i32, %c0_i32_0 : i32, i32, i32
  }
}

module attributes {stable_mosaic.version = 11 : i64} {
  func.func @kernel(%arg0: i32, %arg1: i32, %arg2: memref<1x10x10x128xbf16, #tpu.memory_space<vmem>>, %arg3: memref<1x128xf32, #tpu.memory_space<vmem>>, %arg4: memref<1x128xf32, #tpu.memory_space<vmem>>, %arg5: memref<1152x128xbf16, #tpu.memory_space<vmem>>, %arg6: memref<64x8xf32, #tpu.memory_space<vmem>>, %arg7: memref<1x8xf32, #tpu.memory_space<vmem>>, %arg8: memref<1x8xf32, #tpu.memory_space<vmem>>, %arg9: memref<8x128xbf16, #tpu.memory_space<vmem>>, %arg10: memref<64x128xf32, #tpu.memory_space<vmem>>, %arg11: memref<10x10x128xbf16, #tpu.memory_space<vmem>>) attributes {dimension_semantics = [#tpu.dimension_semantics<parallel>, #tpu.dimension_semantics<arbitrary>], iteration_bounds = array<i64: 2, 1>, scalar_prefetch = 0 : i64, scratch_operands = 1 : i64, tpu.core_type = #tpu.core_type<tc>, window_params = [{transform_indices = @transform_0, window_bounds = array<i64: 1, 10, 10, 128>}, {pipeline_mode = #tpu.pipeline_mode<synchronous>, transform_indices = @transform_1, window_bounds = array<i64: 1, 128>}, {pipeline_mode = #tpu.pipeline_mode<synchronous>, transform_indices = @transform_2, window_bounds = array<i64: 1, 128>}, {pipeline_mode = #tpu.pipeline_mode<synchronous>, transform_indices = @transform_3, window_bounds = array<i64: 1152, 128>}, {transform_indices = @transform_4, window_bounds = array<i64: 64, 8>}, {pipeline_mode = #tpu.pipeline_mode<synchronous>, transform_indices = @transform_5, window_bounds = array<i64: 1, 8>}, {pipeline_mode = #tpu.pipeline_mode<synchronous>, transform_indices = @transform_6, window_bounds = array<i64: 1, 8>}, {pipeline_mode = #tpu.pipeline_mode<synchronous>, transform_indices = @transform_7, window_bounds = array<i64: 8, 128>}, {transform_indices = @transform_8, window_bounds = array<i64: 64, 128>}]} {
    %c0_i32 = arith.constant 0 : i32
    %0 = arith.cmpi eq, %arg1, %c0_i32 : i32
    %1 = arith.extui %0 : i1 to i32
    %c0_i32_0 = arith.constant 0 : i32
    %2 = arith.cmpi ne, %1, %c0_i32_0 : i32
    scf.if %2 {
      %58 = tpu.iota {dimensions = array<i32: 0>} : vector<10x10x128xi32>
      %59 = tpu.iota {dimensions = array<i32: 1>} : vector<10x10x128xi32>
      %c0_49 = arith.constant 0 : index
      %c0_50 = arith.constant 0 : index
      %c0_51 = arith.constant 0 : index
      %c0_52 = arith.constant 0 : index
      %60 = vector.load %arg2[%c0_49, %c0_50, %c0_51, %c0_52] : memref<1x10x10x128xbf16, #tpu.memory_space<vmem>>, vector<1x10x10x128xbf16>
      %61 = vector.shape_cast %60 : vector<1x10x10x128xbf16> to vector<10x10x128xbf16>
      %62 = arith.extf %61 : vector<10x10x128xbf16> to vector<10x10x128xf32>
      %c0_53 = arith.constant 0 : index
      %c0_54 = arith.constant 0 : index
      %63 = vector.load %arg3[%c0_53, %c0_54] : memref<1x128xf32, #tpu.memory_space<vmem>>, vector<1x128xf32>
      %64 = vector.shape_cast %63 : vector<1x128xf32> to vector<1x1x128xf32>
      %65 = vector.broadcast %64 : vector<1x1x128xf32> to vector<10x10x128xf32>
      %66 = arith.mulf %62, %65 : vector<10x10x128xf32>
      %c0_55 = arith.constant 0 : index
      %c0_56 = arith.constant 0 : index
      %67 = vector.load %arg4[%c0_55, %c0_56] : memref<1x128xf32, #tpu.memory_space<vmem>>, vector<1x128xf32>
      %68 = vector.shape_cast %67 : vector<1x128xf32> to vector<1x1x128xf32>
      %69 = vector.broadcast %68 : vector<1x1x128xf32> to vector<10x10x128xf32>
      %70 = arith.addf %66, %69 : vector<10x10x128xf32>
      %cst_57 = arith.constant 0.000000e+00 : f32
      %71 = vector.broadcast %cst_57 : f32 to vector<10x10x128xf32>
      %72 = arith.cmpf ogt, %70, %71 : vector<10x10x128xf32>
      %cst_58 = arith.constant 1.000000e-01 : f32
      %73 = vector.broadcast %cst_58 : f32 to vector<10x10x128xf32>
      %74 = arith.mulf %73, %70 : vector<10x10x128xf32>
      %75 = arith.select %72, %70, %74 : vector<10x10x128xi1>, vector<10x10x128xf32>
      %c1_i32 = arith.constant 1 : i32
      %76 = vector.broadcast %c1_i32 : i32 to vector<10x10x128xi32>
      %77 = arith.cmpi sge, %58, %76 : vector<10x10x128xi32>
      %c9_i32 = arith.constant 9 : i32
      %78 = vector.broadcast %c9_i32 : i32 to vector<10x10x128xi32>
      %79 = arith.cmpi slt, %58, %78 : vector<10x10x128xi32>
      %80 = arith.andi %77, %79 : vector<10x10x128xi1>
      %c1_i32_59 = arith.constant 1 : i32
      %81 = vector.broadcast %c1_i32_59 : i32 to vector<10x10x128xi32>
      %82 = arith.cmpi sge, %59, %81 : vector<10x10x128xi32>
      %83 = arith.andi %80, %82 : vector<10x10x128xi1>
      %c9_i32_60 = arith.constant 9 : i32
      %84 = vector.broadcast %c9_i32_60 : i32 to vector<10x10x128xi32>
      %85 = arith.cmpi slt, %59, %84 : vector<10x10x128xi32>
      %86 = arith.andi %83, %85 : vector<10x10x128xi1>
      %cst_61 = arith.constant 0.000000e+00 : f32
      %87 = vector.broadcast %cst_61 : f32 to vector<10x10x128xf32>
      %88 = arith.select %86, %75, %87 : vector<10x10x128xi1>, vector<10x10x128xf32>
      %89 = arith.truncf %88 : vector<10x10x128xf32> to vector<10x10x128xbf16>
      %c0_62 = arith.constant 0 : index
      %c0_63 = arith.constant 0 : index
      %c0_64 = arith.constant 0 : index
      %90 = vector.load %arg11[%c0_62, %c0_63, %c0_64] : memref<10x10x128xbf16, #tpu.memory_space<vmem>>, vector<10x10x128xbf16>
      tpu.vector_store %arg11[%c0_62, %c0_63, %c0_64], %89 {strides = array<i32>} : memref<10x10x128xbf16, #tpu.memory_space<vmem>>, vector<10x10x128xbf16>,
    } else {
    }
    %cst = arith.constant 0.000000e+00 : f32
    %3 = vector.broadcast %cst : f32 to vector<64x128xf32>
    %c0 = arith.constant 0 : index
    %c0_1 = arith.constant 0 : index
    %c0_2 = arith.constant 0 : index
    %4 = vector.load %arg11[%c0, %c0_1, %c0_2] : memref<10x10x128xbf16, #tpu.memory_space<vmem>>, vector<8x8x128xbf16>
    %5 = vector.shape_cast %4 : vector<8x8x128xbf16> to vector<64x128xbf16>
    %c0_3 = arith.constant 0 : index
    %c1 = arith.constant 1 : index
    %c0_4 = arith.constant 0 : index
    %6 = vector.load %arg11[%c0_3, %c1, %c0_4] : memref<10x10x128xbf16, #tpu.memory_space<vmem>>, vector<8x8x128xbf16>
    %7 = vector.shape_cast %6 : vector<8x8x128xbf16> to vector<64x128xbf16>
    %8 = tpu.concatenate %5, %7 in 1 : vector<64x128xbf16>, vector<64x128xbf16> -> vector<64x256xbf16>
    %c0_5 = arith.constant 0 : index
    %c0_6 = arith.constant 0 : index
    %9 = vector.load %arg5[%c0_5, %c0_6] : memref<1152x128xbf16, #tpu.memory_space<vmem>>, vector<256x128xbf16>
    %cst_7 = arith.constant dense<0.000000e+00> : vector<64x128xf32>
    %10 = tpu.matmul %8, %9, %cst_7 {dimension_numbers = #tpu.dot_dimension_numbers<[1], [0], [0], [1], [0, 0, 1, 1], [], []>} : vector<64x256xbf16>, vector<256x128xbf16>, vector<64x128xf32> -> vector<64x128xf32>
    %11 = arith.addf %3, %10 : vector<64x128xf32>
    %c0_8 = arith.constant 0 : index
    %c2 = arith.constant 2 : index
    %c0_9 = arith.constant 0 : index
    %12 = vector.load %arg11[%c0_8, %c2, %c0_9] : memref<10x10x128xbf16, #tpu.memory_space<vmem>>, vector<8x8x128xbf16>
    %13 = vector.shape_cast %12 : vector<8x8x128xbf16> to vector<64x128xbf16>
    %c1_10 = arith.constant 1 : index
    %c0_11 = arith.constant 0 : index
    %c0_12 = arith.constant 0 : index
    %14 = vector.load %arg11[%c1_10, %c0_11, %c0_12] : memref<10x10x128xbf16, #tpu.memory_space<vmem>>, vector<8x8x128xbf16>
    %15 = vector.shape_cast %14 : vector<8x8x128xbf16> to vector<64x128xbf16>
    %16 = tpu.concatenate %13, %15 in 1 : vector<64x128xbf16>, vector<64x128xbf16> -> vector<64x256xbf16>
    %c256 = arith.constant 256 : index
    %c0_13 = arith.constant 0 : index
    %17 = vector.load %arg5[%c256, %c0_13] : memref<1152x128xbf16, #tpu.memory_space<vmem>>, vector<256x128xbf16>
    %cst_14 = arith.constant dense<0.000000e+00> : vector<64x128xf32>
    %18 = tpu.matmul %16, %17, %cst_14 {dimension_numbers = #tpu.dot_dimension_numbers<[1], [0], [0], [1], [0, 0, 1, 1], [], []>} : vector<64x256xbf16>, vector<256x128xbf16>, vector<64x128xf32> -> vector<64x128xf32>
    %19 = arith.addf %11, %18 : vector<64x128xf32>
    %c1_15 = arith.constant 1 : index
    %c1_16 = arith.constant 1 : index
    %c0_17 = arith.constant 0 : index
    %20 = vector.load %arg11[%c1_15, %c1_16, %c0_17] : memref<10x10x128xbf16, #tpu.memory_space<vmem>>, vector<8x8x128xbf16>
    %21 = vector.shape_cast %20 : vector<8x8x128xbf16> to vector<64x128xbf16>
    %c1_18 = arith.constant 1 : index
    %c2_19 = arith.constant 2 : index
    %c0_20 = arith.constant 0 : index
    %22 = vector.load %arg11[%c1_18, %c2_19, %c0_20] : memref<10x10x128xbf16, #tpu.memory_space<vmem>>, vector<8x8x128xbf16>
    %23 = vector.shape_cast %22 : vector<8x8x128xbf16> to vector<64x128xbf16>
    %24 = tpu.concatenate %21, %23 in 1 : vector<64x128xbf16>, vector<64x128xbf16> -> vector<64x256xbf16>
    %c512 = arith.constant 512 : index
    %c0_21 = arith.constant 0 : index
    %25 = vector.load %arg5[%c512, %c0_21] : memref<1152x128xbf16, #tpu.memory_space<vmem>>, vector<256x128xbf16>
    %cst_22 = arith.constant dense<0.000000e+00> : vector<64x128xf32>
    %26 = tpu.matmul %24, %25, %cst_22 {dimension_numbers = #tpu.dot_dimension_numbers<[1], [0], [0], [1], [0, 0, 1, 1], [], []>} : vector<64x256xbf16>, vector<256x128xbf16>, vector<64x128xf32> -> vector<64x128xf32>
    %27 = arith.addf %19, %26 : vector<64x128xf32>
    %c2_23 = arith.constant 2 : index
    %c0_24 = arith.constant 0 : index
    %c0_25 = arith.constant 0 : index
    %28 = vector.load %arg11[%c2_23, %c0_24, %c0_25] : memref<10x10x128xbf16, #tpu.memory_space<vmem>>, vector<8x8x128xbf16>
    %29 = vector.shape_cast %28 : vector<8x8x128xbf16> to vector<64x128xbf16>
    %c2_26 = arith.constant 2 : index
    %c1_27 = arith.constant 1 : index
    %c0_28 = arith.constant 0 : index
    %30 = vector.load %arg11[%c2_26, %c1_27, %c0_28] : memref<10x10x128xbf16, #tpu.memory_space<vmem>>, vector<8x8x128xbf16>
    %31 = vector.shape_cast %30 : vector<8x8x128xbf16> to vector<64x128xbf16>
    %32 = tpu.concatenate %29, %31 in 1 : vector<64x128xbf16>, vector<64x128xbf16> -> vector<64x256xbf16>
    %c768 = arith.constant 768 : index
    %c0_29 = arith.constant 0 : index
    %33 = vector.load %arg5[%c768, %c0_29] : memref<1152x128xbf16, #tpu.memory_space<vmem>>, vector<256x128xbf16>
    %cst_30 = arith.constant dense<0.000000e+00> : vector<64x128xf32>
    %34 = tpu.matmul %32, %33, %cst_30 {dimension_numbers = #tpu.dot_dimension_numbers<[1], [0], [0], [1], [0, 0, 1, 1], [], []>} : vector<64x256xbf16>, vector<256x128xbf16>, vector<64x128xf32> -> vector<64x128xf32>
    %35 = arith.addf %27, %34 : vector<64x128xf32>
    %c2_31 = arith.constant 2 : index
    %c2_32 = arith.constant 2 : index
    %c0_33 = arith.constant 0 : index
    %36 = vector.load %arg11[%c2_31, %c2_32, %c0_33] : memref<10x10x128xbf16, #tpu.memory_space<vmem>>, vector<8x8x128xbf16>
    %37 = vector.shape_cast %36 : vector<8x8x128xbf16> to vector<64x128xbf16>
    %c1024 = arith.constant 1024 : index
    %c0_34 = arith.constant 0 : index
    %38 = vector.load %arg5[%c1024, %c0_34] : memref<1152x128xbf16, #tpu.memory_space<vmem>>, vector<128x128xbf16>
    %cst_35 = arith.constant dense<0.000000e+00> : vector<64x128xf32>
    %39 = tpu.matmul %37, %38, %cst_35 {dimension_numbers = #tpu.dot_dimension_numbers<[1], [0], [0], [1], [0, 0, 1, 1], [], []>} : vector<64x128xbf16>, vector<128x128xbf16>, vector<64x128xf32> -> vector<64x128xf32>
    %40 = arith.addf %35, %39 : vector<64x128xf32>
    %c0_36 = arith.constant 0 : index
    %c0_37 = arith.constant 0 : index
    %41 = vector.load %arg6[%c0_36, %c0_37] : memref<64x8xf32, #tpu.memory_space<vmem>>, vector<64x8xf32>
    %c0_38 = arith.constant 0 : index
    %c0_39 = arith.constant 0 : index
    %42 = vector.load %arg7[%c0_38, %c0_39] : memref<1x8xf32, #tpu.memory_space<vmem>>, vector<1x8xf32>
    %43 = vector.broadcast %42 : vector<1x8xf32> to vector<64x8xf32>
    %44 = arith.mulf %41, %43 : vector<64x8xf32>
    %c0_40 = arith.constant 0 : index
    %c0_41 = arith.constant 0 : index
    %45 = vector.load %arg8[%c0_40, %c0_41] : memref<1x8xf32, #tpu.memory_space<vmem>>, vector<1x8xf32>
    %46 = vector.broadcast %45 : vector<1x8xf32> to vector<64x8xf32>
    %47 = arith.addf %44, %46 : vector<64x8xf32>
    %cst_42 = arith.constant 0.000000e+00 : f32
    %48 = vector.broadcast %cst_42 : f32 to vector<64x8xf32>
    %49 = arith.cmpf ogt, %47, %48 : vector<64x8xf32>
    %cst_43 = arith.constant 1.000000e-01 : f32
    %50 = vector.broadcast %cst_43 : f32 to vector<64x8xf32>
    %51 = arith.mulf %50, %47 : vector<64x8xf32>
    %52 = arith.select %49, %47, %51 : vector<64x8xi1>, vector<64x8xf32>
    %53 = arith.truncf %52 : vector<64x8xf32> to vector<64x8xbf16>
    %c0_44 = arith.constant 0 : index
    %c0_45 = arith.constant 0 : index
    %54 = vector.load %arg9[%c0_44, %c0_45] : memref<8x128xbf16, #tpu.memory_space<vmem>>, vector<8x128xbf16>
    %cst_46 = arith.constant dense<0.000000e+00> : vector<64x128xf32>
    %55 = tpu.matmul %53, %54, %cst_46 {dimension_numbers = #tpu.dot_dimension_numbers<[1], [0], [0], [1], [0, 0, 1, 1], [], []>} : vector<64x8xbf16>, vector<8x128xbf16>, vector<64x128xf32> -> vector<64x128xf32>
    %56 = arith.addf %40, %55 : vector<64x128xf32>
    %c0_47 = arith.constant 0 : index
    %c0_48 = arith.constant 0 : index
    %57 = vector.load %arg10[%c0_47, %c0_48] : memref<64x128xf32, #tpu.memory_space<vmem>>, vector<64x128xf32>
    tpu.vector_store %arg10[%c0_47, %c0_48], %56 {strides = array<i32>} : memref<64x128xf32, #tpu.memory_space<vmem>>, vector<64x128xf32>,
    return
  }
  func.func @transform_0(%arg0: i32, %arg1: i32) -> (i32, i32, i32, i32) {
    %c0_i32 = arith.constant 0 : i32
    %c0_i32_0 = arith.constant 0 : i32
    %c0_i32_1 = arith.constant 0 : i32
    %c0_i32_2 = arith.constant 0 : i32
    return %arg0, %c0_i32, %c0_i32_0, %c0_i32_1 : i32, i32, i32, i32
  }
  func.func @transform_1(%arg0: i32, %arg1: i32) -> (i32, i32) {
    %c0_i32 = arith.constant 0 : i32
    %c0_i32_0 = arith.constant 0 : i32
    %c0_i32_1 = arith.constant 0 : i32
    return %c0_i32, %c0_i32_0 : i32, i32
  }
  func.func @transform_2(%arg0: i32, %arg1: i32) -> (i32, i32) {
    %c0_i32 = arith.constant 0 : i32
    %c0_i32_0 = arith.constant 0 : i32
    %c0_i32_1 = arith.constant 0 : i32
    return %c0_i32, %c0_i32_0 : i32, i32
  }
  func.func @transform_3(%arg0: i32, %arg1: i32) -> (i32, i32) {
    %c0_i32 = arith.constant 0 : i32
    %c0_i32_0 = arith.constant 0 : i32
    %c0_i32_1 = arith.constant 0 : i32
    return %c0_i32, %c0_i32_0 : i32, i32
  }
  func.func @transform_4(%arg0: i32, %arg1: i32) -> (i32, i32) {
    %c1_i32 = arith.constant 1 : i32
    %0 = arith.muli %arg0, %c1_i32 : i32
    %1 = arith.addi %0, %arg1 : i32
    %c0_i32 = arith.constant 0 : i32
    %c0_i32_0 = arith.constant 0 : i32
    return %1, %c0_i32 : i32, i32
  }
  func.func @transform_5(%arg0: i32, %arg1: i32) -> (i32, i32) {
    %c0_i32 = arith.constant 0 : i32
    %c0_i32_0 = arith.constant 0 : i32
    %c0_i32_1 = arith.constant 0 : i32
    return %c0_i32, %c0_i32_0 : i32, i32
  }
  func.func @transform_6(%arg0: i32, %arg1: i32) -> (i32, i32) {
    %c0_i32 = arith.constant 0 : i32
    %c0_i32_0 = arith.constant 0 : i32
    %c0_i32_1 = arith.constant 0 : i32
    return %c0_i32, %c0_i32_0 : i32, i32
  }
  func.func @transform_7(%arg0: i32, %arg1: i32) -> (i32, i32) {
    %c0_i32 = arith.constant 0 : i32
    %c0_i32_0 = arith.constant 0 : i32
    %c0_i32_1 = arith.constant 0 : i32
    return %c0_i32, %c0_i32_0 : i32, i32
  }
  func.func @transform_8(%arg0: i32, %arg1: i32) -> (i32, i32) {
    %c1_i32 = arith.constant 1 : i32
    %0 = arith.muli %arg0, %c1_i32 : i32
    %1 = arith.addi %0, %arg1 : i32
    %c0_i32 = arith.constant 0 : i32
    %c0_i32_0 = arith.constant 0 : i32
    return %1, %c0_i32 : i32, i32
  }
}

</mosaic_0001>

<bundles_post_ra>
// kernel: basic_block_forward.3
= control target key start
LH: loop header
LB: loop body
LE: loop exit
PB: predicated region body
PF: predicated region fallthrough
CT: control target
= control target key end

     0   :  { %s226_s6 = smov 0   ;;  %s243_s0 = inlined_call_operand.vmem [shape: f32[32,128], index: 0, kind: input, shape index: {}]   ;;  %s244_s1 = inlined_call_operand.vmem [shape: f32[2,2,128], index: 1, kind: output, shape index: {}]  }
   0x1 LB: > { %s190_s7 = sadd.s32 4294967295, %s214_s6   ;;  %p194_p0 = scmp.ge.s32.totalorder %s214_s6, 1  ;;  %s214_s6 = sphi %s226_s6, %s11_s6  }
   0x2   : > { %p88_p1 = scmp.lt.s32.totalorder %s214_s6, 3 }
   0x4   : > { %p89_p2 = pnand %p194_p0, %p88_p1 }
   0x5   : > { %s195_s8 = sshll.u32 (!%p89_p2), %s190_s7, 1  ;;  %p113_p4 = scmp.lt.s32.totalorder (!%p89_p2), %s190_s7, 1 }
   0x6   : > { %92 = sbr.rel (%p89_p2) target bundleno = 32 (0x20), region = 24  ;;  %p108_p3 = scmp.lt.s32.totalorder (!%p89_p2), %s195_s8, 3 }
   0xb   : > { %s246_s8 = smov (!%p108_p3, %s195_s8), 3  ;;  %s248_s7 = smov (!%p113_p4, %s190_s7), 1 }
   0xc   : > { %s196_s9 = sshll.u32 %s246_s8, 3  ;;  %s197_s13 = sshll.u32 %s248_s7, 1 }
   0xd   : > { %s111_s12 = scalar_lea.vmem %s243_s0, %s196_s9  ;;  %s116_s16 = scalar_lea.vmem %s244_s1, %s197_s13 }
   0xe   : > { %v117_v0 = vld [vmem:[%s111_s12] sm:$0xff]  ;;  %v118_v1 = vld [vmem:[%s111_s12 + $0x8] sm:$0xff] }
   0xf   : > { %v119_v2 = vadd.f32 %v118_v1, %v117_v0  ;;  %v127_v3 = vmul.f32 %v117_v0, %v117_v0  ;;  %v128_v4 = vmul.f32 %v118_v1, %v118_v1 }
  0x11   : > { %v120_v5 = vrot.slane %v119_v2, 4  ;;  %v129_v6 = vadd.f32 %v128_v4, %v127_v3 }
  0x13   : > { %v121_v7 = vadd.f32 %v120_v5, %v119_v2  ;;  %v130_v8 = vrot.slane %v129_v6, 4 }
  0x15   : > { %v122_v9 = vrot.slane %v121_v7, 2  ;;  %v131_v10 = vadd.f32 %v130_v8, %v129_v6 }
  0x17   : > { %v123_v11 = vadd.f32 %v122_v9, %v121_v7  ;;  %v132_v12 = vrot.slane %v131_v10, 2 }
  0x19   : > { %v124_v13 = vrot.slane %v123_v11, 1  ;;  %v133_v14 = vadd.f32 %v132_v12, %v131_v10 }
  0x1b   : > { %v125_v15 = vadd.f32 %v124_v13, %v123_v11  ;;  %v134_v16 = vrot.slane %v133_v14, 1 }
  0x1d   : > { %126 = vst [vmem:[%s116_s16] sm:$0x1] %v125_v15  ;;  %v135_v17 = vadd.f32 %v134_v16, %v133_v14 }
  0x1f   : > { %136 = vst [vmem:[%s116_s16 + $0x1] sm:$0x1] %v135_v17 }
  0x20 PF: > { %s11_s6 = sadd.s32 1, %s214_s6  }
  0x21   : > { %p8_p5 = scmp.ge.s32.totalorder %s11_s6, 4  }
  0x23   :  { %10 = sbr.rel (!%p8_p5) target bundleno = 1 (0x1), region = 54 }

// kernel: basic_block_forward.4
= control target key start
LH: loop header
LB: loop body
LE: loop exit
PB: predicated region body
PF: predicated region fallthrough
CT: control target
= control target key end

     0   :  { %s3434_s18 = smov 0   ;;  %s3436_s19 = smov 0   ;;  %s4151_s0 = inlined_call_operand.vmem [shape: f32[8,9,9,8], index: 0, kind: input, shape index: {}]   ;;  %s4152_s1 = inlined_call_operand.vmem [shape: f32[1,8], index: 1, kind: input, shape index: {}]   ;;  %s4153_s2 = inlined_call_operand.vmem [shape: f32[1,8], index: 2, kind: input, shape index: {}]   ;;  %s4154_s3 = inlined_call_operand.vmem [shape: bf16[72,128], index: 3, kind: input, shape index: {}]   ;;  %s4155_s4 = inlined_call_operand.vmem [shape: bf16[128,128], index: 4, kind: output, shape index: {0}]   ;;  %s4156_s5 = inlined_call_operand.vmem [shape: f32[2,2,128], index: 5, kind: output, shape index: {1}]  }
   0x1   :  { %s3438_s20 = smov 0  }
   0x2 LB: > { %s28_s21 = sadd.s32 1, %s3397_s19  ;;  %p2863_p0 = scmp.ge.s32.totalorder %s3401_s20, 1  ;;  %s3401_s20 = sphi %s3438_s20, %s16_s20   ;;  %s3397_s19 = sphi %s3436_s19, %s4162_s19   ;;  %s3393_s18 = sphi %s3434_s18, %s4161_s18  }
   0x3   : > { %p30_p1 = scmp.ge.s32.totalorder %s28_s21, 2  ;;  %p208_p2 = scmp.lt.s32.totalorder %s3401_s20, 3 }
   0x5   : > { %s4164_s21 = smov (%p30_p1, %s28_s21), 0  ;;  %p209_p3 = pnand %p2863_p0, %p208_p2 }
   0x6   : > { %s2864_s24 = sshll.u32 (!%p209_p3), %s3393_s18, 2  ;;  %p259_p6 = scmp.lt.s32.totalorder (!%p209_p3), %s3393_s18, 1 }
   0x7   : > { %212 = sbr.rel (%p209_p3) target bundleno = 411 (0x19b), region = 36  ;;  %p244_p4 = scmp.lt.s32.totalorder (!%p209_p3), %s2864_s24, 7 }
   0xc   : > { %v1316_v0 = vld [vmem:[%s4154_s3 + $0x4] sm:$0xf]  ;;  %vm1350_vm0 = vcmask 1043456   ;;  %vm496_vm1 = vcmask 60416   ;;  %v3403_v2 = vmov 0.0|0.0   ;;  %vm498_vm2 = vcmask 57344  }
   0xd   : > { %3318 = vmatprep.subr.msk.bf16.mxu1 %vm1350_vm0, %v1316_v0  ;;  %3317 = vmatprep.subr.msk.bf16.mxu0 %vm1350_vm0, %v1316_v0  ;;  %v1352_v1 = vsel %vm1350_vm0, %v1316_v0, 0  ;;  %v2871_v3 = vcombine.low %v3403_v2, %v3403_v2  ;;  %v3461_v4 = vcombine.high %v3403_v2, %v3403_v2  ;;  %vm499_vm3 = vsmask.f32 256  ;;  %v763_v5 = vld [vmem:[#allocation2 + $0x4c] sm:$0x1]  ;;  %s4166_s24 = smov (!%p244_p4, %s2864_s24), 7 }
   0xe   : > { %3316 = vmatpush3.bf16.msra.mxu1 %v1352_v1  ;;  %3226 = vmatpush3.bf16.msra.mxu0 %v1352_v1  ;;  %v269_v6 = vlaneseq  ;;  %vm3463_vm4 = vmand %vm498_vm2, %vm499_vm3  ;;  %v767_v8 = vld [vmem:[#allocation2 + $0x54] sm:$0x1]  ;;  %v771_v9 = vld [vmem:[#allocation2 + $0x5c] sm:$0x1]  ;;  %s3327_s27 = smul.u32 144, %s4166_s24  ;;  %vm1337_vm6 = vcmask 64512  }
   0xf   : > { %762 = vst.msk [vmem:[#allocation2 + $0x48] sm:$0xf] %vm496_vm1, %v2871_v3  ;;  %497 = vst.msk [vmem:[#allocation2] sm:$0xf] %vm496_vm1, %v2871_v3  ;;  %v3472_v10 = vld [vmem:[%s4152_s1] ss:$0 sm:$0xff]  ;;  %v764_v11 = vsel %vm3463_vm4, %v3461_v4, %v763_v5 }
  0x10   : > { %v768_v12 = vsel %vm3463_vm4, 0.0|0.0, %v767_v8  ;;  %v772_v13 = vsel %vm3463_vm4, 0.0|0.0, %v771_v9  ;;  %v775_v14 = vld [vmem:[#allocation2 + $0x64] sm:$0x1]  ;;  %v779_v15 = vld [vmem:[#allocation2 + $0x6c] sm:$0x1]  ;;  %s3497_s7 = scalar_lea.vmem %s4151_s0, %s3327_s27 }
  0x11   : > { %765 = vst [vmem:[#allocation2 + $0x4c] sm:$0x1] %v764_v11  ;;  %769 = vst [vmem:[#allocation2 + $0x54] sm:$0x1] %v768_v12  ;;  %v776_v16 = vsel %vm3463_vm4, 0.0|0.0, %v775_v14  ;;  %v780_v17 = vsel %vm3463_vm4, 0.0|0.0, %v779_v15 }
  0x12   : > { %773 = vst [vmem:[#allocation2 + $0x5c] sm:$0x1] %v772_v13  ;;  %v783_v18 = vld [vmem:[#allocation2 + $0x74] sm:$0x1]  ;;  %v3488_v19 = vld [vmem:[%s4153_s2] ss:$0 sm:$0xff] }
  0x13   : > { %777 = vst [vmem:[#allocation2 + $0x64] sm:$0x1] %v776_v16  ;;  %781 = vst [vmem:[#allocation2 + $0x6c] sm:$0x1] %v780_v17  ;;  %v784_v20 = vsel %vm3463_vm4, 0.0|0.0, %v783_v18  ;;  %v3492_v23 = vshrl.u32 %v269_v6, 7 }
  0x14   : > { %v787_v21 = vld [vmem:[#allocation2 + $0x7c] sm:$0x1]  ;;  %v791_v22 = vld [vmem:[#allocation2 + $0x84] sm:$0x1]  ;;  %785 = vst [vmem:[#allocation2 + $0x74] sm:$0x1] %v784_v20 }
  0x15   : > { %v788_v24 = vsel %vm3463_vm4, 0.0|0.0, %v787_v21  ;;  %v792_v25 = vsel %vm3463_vm4, 0.0|0.0, %v791_v22  ;;  %v795_v26 = vld [vmem:[#allocation2 + $0x8c] sm:$0x1]  ;;  %v1045_v27 = vld [vmem:[#allocation2 + $0xd4] sm:$0x1] }
  0x16   : > { %v2891_v28 = vld [vmem:[%s3497_s7 + $0xa0] sm:$0xff]  ;;  %789 = vst [vmem:[#allocation2 + $0x7c] sm:$0x1] %v788_v24  ;;  %793 = vst [vmem:[#allocation2 + $0x84] sm:$0x1] %v792_v25  ;;  %v796_v29 = vsel %vm3463_vm4, 0.0|0.0, %v795_v26  ;;  %v1046_v30 = vsel %vm3463_vm4, %v3461_v4, %v1045_v27 }
  0x17   : > { %v1263_v31 = vld [vmem:[#allocation2 + $0xdc] sm:$0x1]  ;;  %v1267_v32 = vld [vmem:[#allocation2 + $0xe4] sm:$0x1]  ;;  %v564_v33 = vmul.f32 %v3472_v10, %v2891_v28  ;;  %797 = vst [vmem:[#allocation2 + $0x8c] sm:$0x1] %v796_v29 }
  0x18   : > { %1047 = vst [vmem:[#allocation2 + $0xd4] sm:$0x1] %v1046_v30  ;;  %v1264_v34 = vsel %vm3463_vm4, 0.0|0.0, %v1263_v31  ;;  %v1268_v35 = vsel %vm3463_vm4, 0.0|0.0, %v1267_v32  ;;  %v1271_v36 = vld [vmem:[#allocation2 + $0xec] sm:$0x1] }
  0x19   : > { %v1275_v37 = vld [vmem:[#allocation2 + $0xf4] sm:$0x1]  ;;  %1265 = vst [vmem:[#allocation2 + $0xdc] sm:$0x1] %v1264_v34  ;;  %1269 = vst [vmem:[#allocation2 + $0xe4] sm:$0x1] %v1268_v35  ;;  %v589_v42 = vadd.f32 %v3488_v19, %v564_v33 }
  0x1a   : > { %v1272_v38 = vsel %vm3463_vm4, 0.0|0.0, %v1271_v36  ;;  %v1276_v39 = vsel %vm3463_vm4, 0.0|0.0, %v1275_v37  ;;  %v1279_v40 = vld [vmem:[#allocation2 + $0xfc] sm:$0x1]  ;;  %v1283_v41 = vld [vmem:[#allocation2 + $0x104] sm:$0x1] }
  0x1b   : > { %1273 = vst [vmem:[#allocation2 + $0xec] sm:$0x1] %v1272_v38  ;;  %1277 = vst [vmem:[#allocation2 + $0xf4] sm:$0x1] %v1276_v39  ;;  %v1280_v43 = vsel %vm3463_vm4, 0.0|0.0, %v1279_v40  ;;  %v1284_v44 = vsel %vm3463_vm4, 0.0|0.0, %v1283_v41 }
  0x1c   : > { %v1287_v45 = vld [vmem:[#allocation2 + $0x10c] sm:$0x1]  ;;  %v1291_v46 = vld [vmem:[#allocation2 + $0x114] sm:$0x1]  ;;  %1281 = vst [vmem:[#allocation2 + $0xfc] sm:$0x1] %v1280_v43 }
  0x1d   : > { %1285 = vst [vmem:[#allocation2 + $0x104] sm:$0x1] %v1284_v44  ;;  %v1288_v47 = vsel %vm3463_vm4, 0.0|0.0, %v1287_v45  ;;  %v1292_v48 = vsel %vm3463_vm4, 0.0|0.0, %v1291_v46  ;;  %v1295_v49 = vld [vmem:[#allocation2 + $0x11c] sm:$0x1] }
  0x1e   : > { %vm607_vm5 = vcmp.gt.f32.partialorder %v589_v42, 0.0  ;;  %v625_v50 = vmul.f32 0.1, %v589_v42  ;;  %1289 = vst [vmem:[#allocation2 + $0x10c] sm:$0x1] %v1288_v47  ;;  %v1296_v51 = vsel %vm3463_vm4, %v3461_v4, %v1295_v49  ;;  %v2897_v52 = vld [vmem:[%s3497_s7 + $0xd0] sm:$0xff] }
  0x1f   : > { %1293 = vst [vmem:[#allocation2 + $0x114] sm:$0x1] %v1292_v48  ;;  %v2899_v53 = vld [vmem:[%s3497_s7 + $0xe0] sm:$0xff]  ;;  %v2893_v54 = vld [vmem:[%s3497_s7 + $0xb0] sm:$0xff]  ;;  %1297 = vst [vmem:[#allocation2 + $0x11c] sm:$0x1] %v1296_v51  ;;  %v570_v55 = vmul.f32 %v3472_v10, %v2897_v52 }
  0x20   : > { %v572_v56 = vmul.f32 %v3472_v10, %v2899_v53  ;;  %v1306_v57 = vld [vmem:[%s4154_s3] sm:$0xf]  ;;  %v566_v59 = vmul.f32 %v3472_v10, %v2893_v54  ;;  %v2901_v60 = vld [vmem:[%s3497_s7 + $0xf0] sm:$0xff]  ;;  %v643_v61 = vsel %vm607_vm5, %v589_v42, %v625_v50  ;;  %v1650_v1 = vld [vmem:[%s4154_s3 + $0x8] sm:$0xf]  ;;  %v3549_v2 = vadd.s32 8, %v3492_v23 }
  0x21   : > { %v2895_v58 = vld [vmem:[%s3497_s7 + $0xc0] sm:$0xff]  ;;  %3319 = vmatprep.subr.msk.bf16.mxu1 %vm1350_vm0, %v1306_v57  ;;  %v574_v0 = vmul.f32 %v3472_v10, %v2901_v60  ;;  %v3101_v3 = vpack.c.bf16 %v643_v61, %v643_v61  ;;  %v595_v5 = vadd.f32 %v3488_v19, %v570_v55  ;;  %3320 = vmatprep.subr.msk.bf16.mxu0 %vm1350_vm0, %v1650_v1  ;;  %v3559_v13 = vsel %vm1350_vm0, %v1306_v57, 0  ;;  %v274_v22 = vld [vmem:[%s3497_s7 + $0x10] sm:$0xff]  ;;  %v275_v33 = vld [vmem:[%s3497_s7 + $0x18] sm:$0x1] }
  0x22   : > { %v568_v62 = vmul.f32 %v3472_v10, %v2895_v58  ;;  %v2903_v63 = vld [vmem:[%s3497_s7 + $0x100] sm:$0xff]  ;;  %v597_v6 = vadd.f32 %v3488_v19, %v572_v56  ;;  %v591_v8 = vadd.f32 %v3488_v19, %v566_v59  ;;  %v278_v29 = vld [vmem:[%s3497_s7 + $0x30] sm:$0xff]  ;;  %v3570_v35 = vsel %vm1350_vm0, %v1650_v1, 0  ;;  %v3581_v39 = vld [vmem:[%s4154_s3 + $0xc] sm:$0xf] }
  0x23   : > { %v576_v11 = vmul.f32 %v3472_v10, %v2903_v63  ;;  %v599_v12 = vadd.f32 %v3488_v19, %v574_v0  ;;  %766 = vst.msk [vmem:[#allocation2 + $0x50] sm:$0xf] %vm496_vm1, %v3101_v3  ;;  %vm613_vm7 = vcmp.gt.f32.partialorder %v595_v5, 0.0  ;;  %v631_v14 = vmul.f32 0.1, %v595_v5  ;;  %v276_v28 = vld [vmem:[%s3497_s7 + $0x20] sm:$0xff] }
  0x24   : > { %v593_v9 = vadd.f32 %v3488_v19, %v568_v62  ;;  %vm615_vm8 = vcmp.gt.f32.partialorder %v597_v6, 0.0  ;;  %v633_v15 = vmul.f32 0.1, %v597_v6  ;;  %vm609_vm9 = vcmp.gt.f32.partialorder %v591_v8, 0.0  ;;  %v501_v37 = vld [vmem:[#allocation2 + $0x4] sm:$0x1] }
  0x25   : > { %v627_v16 = vmul.f32 0.1, %v591_v8  ;;  %v649_v18 = vsel %vm613_vm7, %v595_v5, %v631_v14  ;;  %v601_v21 = vadd.f32 %v3488_v19, %v576_v11  ;;  %vm617_vm11 = vcmp.gt.f32.partialorder %v599_v12, 0.0  ;;  %v277_v51 = vld [vmem:[%s3497_s7 + $0x28] sm:$0x1]  ;;  %v280_v53 = vld [vmem:[%s3497_s7 + $0x40] sm:$0xff] }
  0x26   : > { %vm611_vm10 = vcmp.gt.f32.partialorder %v593_v9, 0.0  ;;  %v629_v17 = vmul.f32 0.1, %v593_v9  ;;  %v651_v20 = vsel %vm615_vm8, %v597_v6, %v633_v15  ;;  %v3107_v24 = vpack.c.bf16 %v649_v18, %v649_v18  ;;  %v279_v52 = vld [vmem:[%s3497_s7 + $0x38] sm:$0x1]  ;;  %v282_v57 = vld [vmem:[%s3497_s7 + $0x50] sm:$0xff] }
  0x27   : > { %v3109_v25 = vpack.c.bf16 %v651_v20, %v651_v20  ;;  %v645_v26 = vsel %vm609_vm9, %v591_v8, %v627_v16  ;;  %vm619_vm12 = vcmp.gt.f32.partialorder %v601_v21, 0.0  ;;  %v635_v32 = vmul.f32 0.1, %v599_v12  ;;  %v284_v58 = vld [vmem:[%s3497_s7 + $0x60] sm:$0xff]  ;;  %v505_v3 = vld [vmem:[#allocation2 + $0xc] sm:$0x1] }
  0x28   : > { %v647_v27 = vsel %vm611_vm10, %v593_v9, %v629_v17  ;;  %v3103_v30 = vpack.c.bf16 %v645_v26, %v645_v26  ;;  %778 = vst.msk [vmem:[#allocation2 + $0x68] sm:$0xf] %vm496_vm1, %v3107_v24  ;;  %v637_v34 = vmul.f32 0.1, %v601_v21  ;;  %v299_v36 = vmul.f32 %v3472_v10, %v274_v22  ;;  %v1519_v62 = vld [vmem:[#allocation2] sm:$0xf] }
  0x29   : > { %v3105_v31 = vpack.c.bf16 %v647_v27, %v647_v27  ;;  %782 = vst.msk [vmem:[#allocation2 + $0x70] sm:$0xf] %vm496_vm1, %v3109_v25  ;;  %vm394_vm13 = vcmp.ge.s32.totalorder %v3492_v23, 1  ;;  %v653_v38 = vsel %vm617_vm11, %v599_v12, %v635_v32  ;;  %vm401_vm14 = vcmp.lt.s32.totalorder %v3549_v2, 9  ;;  %v1878_v20 = vld [vmem:[%s4154_s3 + $0x10] sm:$0xf] }
  0x2a   : > { %770 = vst.msk [vmem:[#allocation2 + $0x58] sm:$0xf] %vm496_vm1, %v3103_v30  ;;  %v301_v40 = vmul.f32 %v3472_v10, %v276_v28  ;;  %v303_v41 = vmul.f32 %v3472_v10, %v278_v29  ;;  %v3353_v42 = vld [vmem:[#allocation2 + $0x48] ss:$8 sps:$4 sm:$0xff]   ;;  %v655_v43 = vsel %vm619_vm12, %v601_v21, %v637_v34  ;;  %v3111_v44 = vpack.c.bf16 %v653_v38, %v653_v38 }
  0x2b   : > { %774 = vst.msk [vmem:[#allocation2 + $0x60] sm:$0xf] %vm496_vm1, %v3105_v31  ;;  %v324_v45 = vadd.f32 %v3488_v19, %v299_v36  ;;  %v300_v46 = vmul.f32 %v3472_v10, %v275_v33  ;;  %v3113_v47 = vpack.c.bf16 %v655_v43, %v655_v43  ;;  %v502_v50 = vsel %vm3463_vm4, %v3461_v4, %v501_v37  ;;  %v286_v26 = vld [vmem:[%s3497_s7 + $0x70] sm:$0xff] }
  0x2c   : > { %v326_v48 = vadd.f32 %v3488_v19, %v301_v40  ;;  %v328_v49 = vadd.f32 %v3488_v19, %v303_v41  ;;  %3227 = vmatprep.mubr.msk.bf16.mxu0 %vm1337_vm6, %v3353_v42  ;;  %786 = vst.msk [vmem:[#allocation2 + $0x78] sm:$0xf] %vm496_vm1, %v3111_v44  ;;  %v3600_v55 = vsel %vm1350_vm0, %v3581_v39, 0  ;;  %503 = vst [vmem:[#allocation2 + $0x4] sm:$0x1] %v502_v50  ;;  %v1539_v28 = vshrl.u32 %v1519_v62, 16 }
  0x2d   : > { %vm342_vm15 = vcmp.gt.f32.partialorder %v324_v45, 0.0  ;;  %v360_v54 = vmul.f32 0.1, %v324_v45  ;;  %v325_v56 = vadd.f32 %v3488_v19, %v300_v46  ;;  %790 = vst.msk [vmem:[#allocation2 + $0x80] sm:$0xf] %vm496_vm1, %v3113_v47  ;;  %v302_v5 = vmul.f32 %v3472_v10, %v277_v51 }
  0x2e   : > { %vm344_vm2 = vcmp.gt.f32.partialorder %v326_v48, 0.0  ;;  %vm346_vm3 = vcmp.gt.f32.partialorder %v328_v49, 0.0  ;;  %v362_v4 = vmul.f32 0.1, %v326_v48  ;;  %v364_v59 = vmul.f32 0.1, %v328_v49 }
  0x2f   : > { %vm1535_vm5 = vsmask.f32 3328  ;;  %v378_v60 = vsel %vm342_vm15, %v324_v45, %v360_v54  ;;  %vm343_vm7 = vcmp.gt.f32.partialorder %v325_v56, 0.0  ;;  %v361_v61 = vmul.f32 0.1, %v325_v56 }
  0x30   : > { %vm1536_vm8 = vsmask.f32 7440  ;;  %v3354_v63 = vld [vmem:[#allocation2 + $0x68] ss:$8 sps:$4 sm:$0xff]   ;;  %v380_v0 = vsel %vm344_vm2, %v326_v48, %v362_v4  ;;  %v382_v1 = vsel %vm346_vm3, %v328_v49, %v364_v59  ;;  %v304_v6 = vmul.f32 %v3472_v10, %v279_v52  ;;  %v509_v45 = vld [vmem:[#allocation2 + $0x14] sm:$0x1] }
  0x31   : > { %v379_v9 = vsel %vm343_vm7, %v325_v56, %v361_v61  ;;  %v305_v11 = vmul.f32 %v3472_v10, %v280_v53  ;;  %v307_v12 = vmul.f32 %v3472_v10, %v282_v57  ;;  %v3611_v14 = vmul.f32 %v3472_v10, %v284_v58  ;;  %3231 = vmatprep.mubr.msk.bf16.mxu1 %vm1337_vm6, %v3354_v63  ;;  %v513_v46 = vld [vmem:[#allocation2 + $0x1c] sm:$0x1]  ;;  %vm3650_vm12 = vmor %vm1535_vm5, %vm1536_vm8  ;;  %v281_v52 = vld [vmem:[%s3497_s7 + $0x48] sm:$0x1] }
  0x32   : > { %v3355_v8 = vld [vmem:[#allocation2 + $0x58] ss:$8 sps:$4 sm:$0xff]   ;;  %v408_v15 = vsel %vm394_vm13, %v378_v60, 0.0  ;;  %v410_v16 = vsel %vm394_vm13, %v380_v0, 0.0  ;;  %v412_v17 = vsel %vm394_vm13, %v382_v1, 0.0  ;;  %v409_v18 = vsel %vm401_vm14, %v379_v9, 0.0 }
  0x33   : > { %3228 = vmatmul.mubr.msk.bf16.vlgmr.msra.gmra.mxu0 %vm1337_vm6, %v3355_v8  ;;  %v3085_v21 = vpack.c.bf16 %v408_v15, %v408_v15  ;;  %v3087_v22 = vpack.c.bf16 %v410_v16, %v410_v16  ;;  %v3089_v24 = vpack.c.bf16 %v412_v17, %v412_v17  ;;  %v3086_v25 = vpack.c.bf16 %v409_v18, %v409_v18  ;;  %v1520_v27 = vld [vmem:[#allocation2 + $0x4] sm:$0x1]  ;;  %v283_v57 = vld [vmem:[%s3497_s7 + $0x58] sm:$0x1]  ;;  %v285_v61 = vld [vmem:[%s3497_s7 + $0x68] sm:$0x1] }
  0x34   : > { %3246 = vmatpush3.bf16.msra.mxu0 %v3570_v35  ;;  %v1542_v29 = vshll.u32 %v1519_v62, 16  ;;  %v327_v30 = vadd.f32 %v3488_v19, %v302_v5  ;;  %v329_v31 = vadd.f32 %v3488_v19, %v304_v6  ;;  %v3356_v32 = vld [vmem:[#allocation2 + $0x78] ss:$8 sps:$4 sm:$0xff]   ;;  %v1548_v34 = vshll.u32 %v1520_v27, 16  ;;  %v3678_v6 = vld [vmem:[%s4154_s3 + $0x14] sm:$0xf] }
  0x35   : > { %504 = vst.msk [vmem:[#allocation2 + $0x8] sm:$0xf] %vm496_vm1, %v3085_v21  ;;  %508 = vst.msk [vmem:[#allocation2 + $0x10] sm:$0xf] %vm496_vm1, %v3087_v22  ;;  %v506_v33 = vsel %vm3463_vm4, %v3086_v25, %v505_v3  ;;  %3322 = vmatprep.subr.msk.bf16.mxu0 %vm1350_vm0, %v1878_v20  ;;  %v3637_v35 = vsel %vm1350_vm0, %v1878_v20, 0  ;;  %v330_v36 = vadd.f32 %v3488_v19, %v305_v11  ;;  %v1541_v37 = vrot.slane %v1539_v28, 4 }
  0x36   : > { %512 = vst.msk [vmem:[#allocation2 + $0x18] sm:$0xf] %vm496_vm1, %v3089_v24  ;;  %507 = vst [vmem:[#allocation2 + $0xc] sm:$0x1] %v506_v33  ;;  %v1544_v38 = vrot.slane %v1542_v29, 5  ;;  %vm345_vm9 = vcmp.gt.f32.partialorder %v327_v30, 0.0  ;;  %3232 = vmatmul.mubr.msk.bf16.vlgmr.msra.gmra.mxu1 %vm1337_vm6, %v3356_v32  ;;  %v332_v43 = vadd.f32 %v3488_v19, %v307_v12  ;;  %v311_v48 = vmul.f32 %v3472_v10, %v286_v26 }
  0x37   : > { %vm347_vm10 = vcmp.gt.f32.partialorder %v329_v31, 0.0  ;;  %v3641_v40 = vrot.slane %v1548_v34, 5  ;;  %v363_v41 = vmul.f32 0.1, %v327_v30  ;;  %v365_v42 = vmul.f32 0.1, %v329_v31  ;;  %3236 = vmatpush3.bf16.msra.mxu1 %v3559_v13 }
  0x38   : > { %v1545_v44 = vor.u32 %v1544_v38, %v1541_v37  ;;  %vm348_vm11 = vcmp.gt.f32.partialorder %v330_v36, 0.0  ;;  %v366_v47 = vmul.f32 0.1, %v330_v36  ;;  %3321 = vmatprep.subr.msk.bf16.mxu1 %vm1350_vm0, %v3581_v39  ;;  %vm350_vm15 = vcmp.gt.f32.partialorder %v332_v43, 0.0  ;;  %v287_v62 = vld [vmem:[%s3497_s7 + $0x78] sm:$0x1] }
  0x39   : > { %v381_v13 = vsel %vm345_vm9, %v327_v30, %v363_v41  ;;  %v383_v50 = vsel %vm347_vm10, %v329_v31, %v365_v42  ;;  %v368_v51 = vmul.f32 0.1, %v332_v43  ;;  %v334_v3 = vadd.f32 %v3488_v19, %v3611_v14 }
  0x3a   : > { %v3657_v53 = vrot.slane %v1545_v44, 4  ;;  %v411_v39 = vsel %vm401_vm14, %v381_v13, 0.0  ;;  %v413_v54 = vsel %vm401_vm14, %v383_v50, 0.0  ;;  %v384_v56 = vsel %vm348_vm11, %v330_v36, %v366_v47 }
  0x3b   : > { %v3088_v58 = vpack.c.bf16 %v411_v39, %v411_v39  ;;  %v3090_v4 = vpack.c.bf16 %v413_v54, %v413_v54  ;;  %v386_v59 = vsel %vm350_vm15, %v332_v43, %v368_v51  ;;  %v414_v60 = vsel %vm394_vm13, %v384_v56, 0.0 }
  0x3c   : > { %v3357_v63 = vld [vmem:[#allocation2] ss:$8 sps:$4 sm:$0xff]   ;;  %v1551_v0 = vsel %vm3650_vm12, %v3657_v53, %v3641_v40  ;;  %v3091_v1 = vpack.c.bf16 %v414_v60, %v414_v60  ;;  %v336_v5 = vadd.f32 %v3488_v19, %v311_v48  ;;  %v306_v15 = vmul.f32 %v3472_v10, %v281_v52  ;;  %v1523_v20 = vld [vmem:[#allocation2 + $0x10] sm:$0xf] }
  0x3d   : > { %v3358_v8 = vld [vmem:[#allocation2 + $0x10] ss:$8 sps:$4 sm:$0xff]   ;;  %v1521_v9 = vld [vmem:[#allocation2 + $0x8] sm:$0xf]  ;;  %v510_v11 = vsel %vm3463_vm4, %v3088_v58, %v509_v45  ;;  %v514_v12 = vsel %vm3463_vm4, %v3090_v4, %v513_v46  ;;  %v308_v16 = vmul.f32 %v3472_v10, %v283_v57  ;;  %3237 = vmatprep.mubr.msk.bf16.mxu1 %vm1337_vm6, %v3357_v63  ;;  %v1522_v14 = vld [vmem:[#allocation2 + $0xc] sm:$0x1]  ;;  %v310_v21 = vmul.f32 %v3472_v10, %v285_v61 }
  0x3e   : > { %v1553_v17 = vshrl.u32 %v1521_v9, 16  ;;  %v1556_v18 = vshll.u32 %v1521_v9, 16  ;;  %511 = vst [vmem:[#allocation2 + $0x14] sm:$0x1] %v510_v11  ;;  %515 = vst [vmem:[#allocation2 + $0x1c] sm:$0x1] %v514_v12  ;;  %v312_v22 = vmul.f32 %v3472_v10, %v287_v62  ;;  %3238 = vmatmul.mubr.msk.bf16.vlgmr.msra.gmra.mxu1 %vm1337_vm6, %v3358_v8  ;;  %v331_v46 = vadd.f32 %v3488_v19, %v306_v15 }
  0x3f   : > { %516 = vst.msk [vmem:[#allocation2 + $0x20] sm:$0xf] %vm496_vm1, %v3091_v1  ;;  %v1562_v24 = vshll.u32 %v1522_v14, 16  ;;  %v1525_v25 = vld [vmem:[#allocation2 + $0x18] sm:$0xf]  ;;  %v1567_v26 = vshrl.u32 %v1523_v20, 16  ;;  %3256 = vmatpush3.bf16.msra.mxu1 %v3600_v55  ;;  %v333_v47 = vadd.f32 %v3488_v19, %v308_v16  ;;  %v335_v53 = vadd.f32 %v3488_v19, %v310_v21 }
  0x40   : > { %v1570_v27 = vshll.u32 %v1523_v20, 16  ;;  %v416_v28 = vsel %vm394_vm13, %v386_v59, 0.0  ;;  %v1555_v29 = vrot.slane %v1553_v17, 4  ;;  %v1558_v30 = vrot.slane %v1556_v18, 5  ;;  %3323 = vmatprep.subr.msk.bf16.mxu1 %vm1350_vm0, %v3678_v6  ;;  %v2927_v61 = vld [vmem:[%s3497_s7 + $0x120] sm:$0xff] }
  0x41   : > { %v1581_v31 = vshrl.u32 %v1525_v25, 16  ;;  %v1584_v32 = vshll.u32 %v1525_v25, 16  ;;  %v1564_v33 = vrot.slane %v1562_v24, 5  ;;  %v1569_v34 = vrot.slane %v1567_v26, 4  ;;  %v517_v21 = vld [vmem:[#allocation2 + $0x24] sm:$0x1] }
  0x42   : > { %v1572_v36 = vrot.slane %v1570_v27, 5  ;;  %v3093_v37 = vpack.c.bf16 %v416_v28, %v416_v28  ;;  %v1559_v38 = vor.u32 %v1558_v30, %v1555_v29  ;;  %vm352_vm2 = vcmp.gt.f32.partialorder %v334_v3, 0.0  ;;  %v521_v24 = vld [vmem:[#allocation2 + $0x2c] sm:$0x1]  ;;  %v2929_v26 = vld [vmem:[%s3497_s7 + $0x130] sm:$0xff]  ;;  %v2931_v30 = vld [vmem:[%s3497_s7 + $0x140] sm:$0xff] }
  0x43   : > { %v1583_v40 = vrot.slane %v1581_v31, 4  ;;  %v1586_v41 = vrot.slane %v1584_v32, 5  ;;  %vm354_vm3 = vcmp.gt.f32.partialorder %v336_v5, 0.0  ;;  %v370_v55 = vmul.f32 0.1, %v334_v3 }
  0x44   : > { %v1573_v42 = vor.u32 %v1572_v36, %v1569_v34  ;;  %520 = vst.msk [vmem:[#allocation2 + $0x28] sm:$0xf] %vm496_vm1, %v3093_v37  ;;  %v372_v43 = vmul.f32 0.1, %v336_v5  ;;  %v1560_v44 = vrot.slane %v1559_v38, 4  ;;  %vm349_vm5 = vcmp.gt.f32.partialorder %v331_v46, 0.0 }
  0x45   : > { %v1587_v45 = vor.u32 %v1586_v41, %v1583_v40  ;;  %v1524_v48 = vld [vmem:[#allocation2 + $0x14] sm:$0x1]  ;;  %v1526_v13 = vld [vmem:[#allocation2 + $0x1c] sm:$0x1]  ;;  %v388_v51 = vsel %vm352_vm2, %v334_v3, %v370_v55  ;;  %vm351_vm7 = vcmp.gt.f32.partialorder %v333_v47, 0.0  ;;  %v337_v16 = vadd.f32 %v3488_v19, %v312_v22 }
  0x46   : > { %v1574_v50 = vrot.slane %v1573_v42, 4  ;;  %v390_v52 = vsel %vm354_vm3, %v336_v5, %v372_v43  ;;  %v1565_v39 = vsel %vm3650_vm12, %v1560_v44, %v1564_v33  ;;  %v1576_v54 = vshll.u32 %v1524_v48, 16  ;;  %v1527_v60 = vld [vmem:[#allocation2 + $0x20] sm:$0xf]  ;;  %v3727_v31 = vld [vmem:[%s4154_s3 + $0x18] sm:$0xf] }
  0x47   : > { %v1588_v56 = vrot.slane %v1587_v45, 4  ;;  %v1590_v57 = vshll.u32 %v1526_v13, 16  ;;  %v3019_v58 = vcombine.low %v1551_v0, %v1565_v39  ;;  %v418_v4 = vsel %vm394_vm13, %v388_v51, 0.0  ;;  %v2933_v40 = vld [vmem:[%s3497_s7 + $0x150] sm:$0xff] }
  0x48   : > { %v420_v59 = vsel %vm394_vm13, %v390_v52, 0.0  ;;  %v1578_v62 = vrot.slane %v1576_v54, 5  ;;  %v3095_v1 = vpack.c.bf16 %v418_v4, %v418_v4  ;;  %v367_v5 = vmul.f32 0.1, %v331_v46  ;;  %v525_v45 = vld [vmem:[#allocation2 + $0x34] sm:$0x1] }
  0x49   : > { %v1592_v63 = vrot.slane %v1590_v57, 5  ;;  %v3097_v3 = vpack.c.bf16 %v420_v59, %v420_v59  ;;  %3247 = vmatprep.mubr.msk.bf16.mxu0 %vm1337_vm6, %v3019_v58  ;;  %v369_v8 = vmul.f32 0.1, %v333_v47  ;;  %v1595_v0 = vshrl.u32 %v1527_v60, 16 }
  0x4a   : > { %v1579_v9 = vsel %vm3650_vm12, %v1574_v50, %v1578_v62  ;;  %524 = vst.msk [vmem:[#allocation2 + $0x30] sm:$0xf] %vm496_vm1, %v3095_v1  ;;  %v824_v14 = vmul.f32 %v2927_v61, %v3472_v10  ;;  %v385_v18 = vsel %vm349_vm5, %v331_v46, %v367_v5  ;;  %v1598_v22 = vshll.u32 %v1527_v60, 16  ;;  %v529_v46 = vld [vmem:[#allocation2 + $0x3c] sm:$0x1]  ;;  %v2965_v5 = vld [vmem:[%s3497_s7 + $0x1b0] sm:$0xff] }
  0x4b   : > { %v1593_v11 = vsel %vm3650_vm12, %v1588_v56, %v1592_v63  ;;  %v3359_v12 = vld [vmem:[#allocation2 + $0x20] ss:$8 sps:$4 sm:$0xff]   ;;  %528 = vst.msk [vmem:[#allocation2 + $0x38] sm:$0xf] %vm496_vm1, %v3097_v3  ;;  %v387_v20 = vsel %vm351_vm7, %v333_v47, %v369_v8  ;;  %v1597_v25 = vrot.slane %v1595_v0, 4  ;;  %v415_v27 = vsel %vm401_vm14, %v385_v18, 0.0 }
  0x4c   : > { %v1529_v15 = vld [vmem:[#allocation2 + $0x28] sm:$0xf]  ;;  %v3020_v17 = vcombine.low %v1579_v9, %v1593_v11  ;;  %3241 = vmatprep.mubr.msk.bf16.mxu1 %vm1337_vm6, %v3359_v12  ;;  %v417_v28 = vsel %vm401_vm14, %v387_v20, 0.0  ;;  %v3092_v32 = vpack.c.bf16 %v415_v27, %v415_v27  ;;  %vm353_vm8 = vcmp.gt.f32.partialorder %v335_v53, 0.0 }
  0x4d   : > { %v1609_v29 = vshrl.u32 %v1529_v15, 16  ;;  %v3094_v33 = vpack.c.bf16 %v417_v28, %v417_v28  ;;  %v1612_v34 = vshll.u32 %v1529_v15, 16  ;;  %v1600_v36 = vrot.slane %v1598_v22, 5 }
  0x4e   : > { %3248 = vmatmul.mubr.msk.bf16.vlgmr.msra.gmra.mxu0 %vm1337_vm6, %v3020_v17  ;;  %vm355_vm9 = vcmp.gt.f32.partialorder %v337_v16, 0.0  ;;  %v371_v38 = vmul.f32 0.1, %v335_v53  ;;  %v518_v41 = vsel %vm3463_vm4, %v3092_v32, %v517_v21  ;;  %v373_v43 = vmul.f32 0.1, %v337_v16 }
  0x4f   : > { %3266 = vmatpush3.bf16.msra.mxu0 %v3637_v35  ;;  %v1611_v37 = vrot.slane %v1609_v29, 4  ;;  %v522_v42 = vsel %vm3463_vm4, %v3094_v33, %v521_v24  ;;  %v1614_v55 = vrot.slane %v1612_v34, 5  ;;  %519 = vst [vmem:[#allocation2 + $0x24] sm:$0x1] %v518_v41  ;;  %v1601_v44 = vor.u32 %v1600_v36, %v1597_v25  ;;  %v2967_v36 = vld [vmem:[%s3497_s7 + $0x1c0] sm:$0xff] }
  0x50   : > { %3324 = vmatprep.subr.msk.bf16.mxu0 %vm1350_vm0, %v3727_v31  ;;  %523 = vst [vmem:[#allocation2 + $0x2c] sm:$0x1] %v522_v42  ;;  %v389_v35 = vsel %vm353_vm8, %v335_v53, %v371_v38  ;;  %v826_v47 = vmul.f32 %v2929_v26, %v3472_v10  ;;  %v849_v48 = vadd.f32 %v3488_v19, %v824_v14 }
  0x51   : > { %v1615_v50 = vor.u32 %v1614_v55, %v1611_v37  ;;  %v391_v51 = vsel %vm355_vm9, %v337_v16, %v373_v43  ;;  %v828_v52 = vmul.f32 %v2931_v30, %v3472_v10  ;;  %v830_v39 = vmul.f32 %v2933_v40, %v3472_v10  ;;  %v1531_v57 = vld [vmem:[#allocation2 + $0x30] sm:$0xf] }
  0x52   : > { %v3360_v13 = vld [vmem:[#allocation2 + $0x30] ss:$8 sps:$4 sm:$0xff]   ;;  %v1602_v54 = vrot.slane %v1601_v44, 4  ;;  %v419_v56 = vsel %vm401_vm14, %v389_v35, 0.0  ;;  %v421_v53 = vsel %vm401_vm14, %v391_v51, 0.0  ;;  %v851_v58 = vadd.f32 %v3488_v19, %v826_v47  ;;  %v2971_v51 = vld [vmem:[%s3497_s7 + $0x1e0] sm:$0xff] }
  0x53   : > { %3242 = vmatmul.mubr.msk.bf16.gmra.mxu1 %vm1337_vm6, %v3360_v13  ;;  %v1616_v4 = vrot.slane %v1615_v50, 4  ;;  %v3096_v59 = vpack.c.bf16 %v419_v56, %v419_v56  ;;  %v3098_v60 = vpack.c.bf16 %v421_v53, %v421_v53  ;;  %v1533_v61 = vld [vmem:[#allocation2 + $0x38] sm:$0xf]  ;;  %v1623_v62 = vshrl.u32 %v1531_v57, 16  ;;  %v2969_v35 = vld [vmem:[%s3497_s7 + $0x1d0] sm:$0xff] }
  0x54   : > { %v1626_v63 = vshll.u32 %v1531_v57, 16  ;;  %v1637_v1 = vshrl.u32 %v1533_v61, 16  ;;  %v1640_v3 = vshll.u32 %v1533_v61, 16  ;;  %vm867_vm10 = vcmp.gt.f32.partialorder %v849_v48, 0.0 }
  0x55   : > { %v526_v8 = vsel %vm3463_vm4, %v3096_v59, %v525_v45  ;;  %v530_v0 = vsel %vm3463_vm4, %v3098_v60, %v529_v46  ;;  %v1625_v9 = vrot.slane %v1623_v62, 4  ;;  %vm869_vm11 = vcmp.gt.f32.partialorder %v851_v58, 0.0 }
  0x56   : > { %527 = vst [vmem:[#allocation2 + $0x34] sm:$0x1] %v526_v8  ;;  %531 = vst [vmem:[#allocation2 + $0x3c] sm:$0x1] %v530_v0  ;;  %v1628_v11 = vrot.slane %v1626_v63, 5  ;;  %v1639_v12 = vrot.slane %v1637_v1, 4  ;;  %v853_v20 = vadd.f32 %v3488_v19, %v828_v52  ;;  %v855_v21 = vadd.f32 %v3488_v19, %v830_v39 }
  0x57   : > { %v1642_v15 = vrot.slane %v1640_v3, 5  ;;  %v885_v16 = vmul.f32 0.1, %v849_v48  ;;  %v1528_v14 = vld [vmem:[#allocation2 + $0x24] sm:$0x1]  ;;  %v1074_v24 = vmul.f32 %v2965_v5, %v3472_v10  ;;  %v3773_v50 = vsel %vm1350_vm0, %v3678_v6, 0 }
  0x58   : > { %v1530_v17 = vld [vmem:[#allocation2 + $0x2c] sm:$0x1]  ;;  %v887_v18 = vmul.f32 0.1, %v851_v58  ;;  %v1604_v25 = vshll.u32 %v1528_v14, 16  ;;  %v1629_v27 = vor.u32 %v1628_v11, %v1625_v9  ;;  %vm871_vm15 = vcmp.gt.f32.partialorder %v853_v20, 0.0 }
  0x59   : > { %v1618_v26 = vshll.u32 %v1530_v17, 16  ;;  %v1643_v28 = vor.u32 %v1642_v15, %v1639_v12  ;;  %v903_v22 = vsel %vm867_vm10, %v849_v48, %v885_v16  ;;  %vm873_vm2 = vcmp.gt.f32.partialorder %v855_v21, 0.0  ;;  %v2935_v9 = vld [vmem:[%s3497_s7 + $0x160] sm:$0xff]  ;;  %v2937_v11 = vld [vmem:[%s3497_s7 + $0x170] sm:$0xff] }
  0x5a   : > { %v905_v29 = vsel %vm869_vm11, %v851_v58, %v887_v18  ;;  %v1606_v30 = vrot.slane %v1604_v25, 5  ;;  %v1630_v33 = vrot.slane %v1629_v27, 4  ;;  %v921_v37 = vsel %vm394_vm13, %v903_v22, 0.0  ;;  %v2939_v12 = vld [vmem:[%s3497_s7 + $0x180] sm:$0xff]  ;;  %v2941_v14 = vld [vmem:[%s3497_s7 + $0x190] sm:$0xff] }
  0x5b   : > { %v1620_v32 = vrot.slane %v1618_v26, 5  ;;  %v1644_v34 = vrot.slane %v1643_v28, 4  ;;  %v923_v38 = vsel %vm394_vm13, %v905_v29, 0.0  ;;  %v889_v40 = vmul.f32 0.1, %v853_v20 }
  0x5c   : > { %v891_v41 = vmul.f32 0.1, %v855_v21  ;;  %v1607_v42 = vsel %vm3650_vm12, %v1602_v54, %v1606_v30  ;;  %v3117_v43 = vpack.c.bf16 %v921_v37, %v921_v37  ;;  %v3119_v44 = vpack.c.bf16 %v923_v38, %v923_v38  ;;  %v2977_v38 = vld [vmem:[%s3497_s7 + $0x210] sm:$0xff] }
  0x5d   : > { %v1621_v55 = vsel %vm3650_vm12, %v1616_v4, %v1620_v32  ;;  %v1532_v46 = vld [vmem:[#allocation2 + $0x34] sm:$0x1]  ;;  %v1534_v47 = vld [vmem:[#allocation2 + $0x3c] sm:$0x1]  ;;  %v907_v48 = vsel %vm871_vm15, %v853_v20, %v889_v40  ;;  %v1076_v6 = vmul.f32 %v2967_v36, %v3472_v10  ;;  %v1099_v58 = vadd.f32 %v3488_v19, %v1074_v24 }
  0x5e   : > { %v3021_v45 = vcombine.low %v1607_v42, %v1621_v55  ;;  %v909_v13 = vsel %vm873_vm2, %v855_v21, %v891_v41  ;;  %v1632_v52 = vshll.u32 %v1532_v46, 16  ;;  %v1646_v39 = vshll.u32 %v1534_v47, 16  ;;  %1012 = vst.msk [vmem:[#allocation2 + $0x90] sm:$0xf] %vm496_vm1, %v3117_v43  ;;  %1016 = vst.msk [vmem:[#allocation2 + $0x98] sm:$0xf] %vm496_vm1, %v3119_v44 }
  0x5f   : > { %v925_v54 = vsel %vm394_vm13, %v907_v48, 0.0  ;;  %v927_v56 = vsel %vm394_vm13, %v909_v13, 0.0  ;;  %v1078_v60 = vmul.f32 %v2969_v35, %v3472_v10  ;;  %v1080_v61 = vmul.f32 %v2971_v51, %v3472_v10  ;;  %v2973_v20 = vld [vmem:[%s3497_s7 + $0x1f0] sm:$0xff]  ;;  %v2975_v21 = vld [vmem:[%s3497_s7 + $0x200] sm:$0xff] }
  0x60   : > { %3251 = vmatprep.mubr.msk.bf16.mxu0 %vm1337_vm6, %v3021_v45  ;;  %v3121_v53 = vpack.c.bf16 %v925_v54, %v925_v54  ;;  %v3123_v57 = vpack.c.bf16 %v927_v56, %v927_v56  ;;  %v1634_v4 = vrot.slane %v1632_v52, 5  ;;  %v1648_v59 = vrot.slane %v1646_v39, 5  ;;  %v3839_v13 = vld [vmem:[%s4153_s2] ss:$0 sm:$0xff]  ;;  %v2928_v39 = vld [vmem:[%s3497_s7 + $0x128] sm:$0x1] }
  0x61   : > { %v1101_v62 = vadd.f32 %v3488_v19, %v1076_v6  ;;  %vm1117_vm3 = vcmp.gt.f32.partialorder %v1099_v58, 0.0  ;;  %v1135_v63 = vmul.f32 0.1, %v1099_v58  ;;  %v3792_v1 = vsel %vm1350_vm0, %v3727_v31, 0  ;;  %v2930_v6 = vld [vmem:[%s3497_s7 + $0x138] sm:$0x1] }
  0x62   : > { %1020 = vst.msk [vmem:[#allocation2 + $0xa0] sm:$0xf] %vm496_vm1, %v3121_v53  ;;  %1024 = vst.msk [vmem:[#allocation2 + $0xa8] sm:$0xf] %vm496_vm1, %v3123_v57  ;;  %v1635_v3 = vsel %vm3650_vm12, %v1630_v33, %v1634_v4  ;;  %v1649_v5 = vsel %vm3650_vm12, %v1644_v34, %v1648_v59  ;;  %v1103_v8 = vadd.f32 %v3488_v19, %v1078_v60  ;;  %v2979_v53 = vld [vmem:[%s3497_s7 + $0x220] sm:$0xff] }
  0x63   : > { %v1105_v0 = vadd.f32 %v3488_v19, %v1080_v61  ;;  %v3022_v15 = vcombine.low %v1635_v3, %v1649_v5  ;;  %vm1119_vm5 = vcmp.gt.f32.partialorder %v1101_v62, 0.0  ;;  %v1137_v16 = vmul.f32 0.1, %v1101_v62 }
  0x64   : > { %v1153_v31 = vsel %vm1117_vm3, %v1099_v58, %v1135_v63  ;;  %vm1121_vm7 = vcmp.gt.f32.partialorder %v1103_v8, 0.0  ;;  %v1139_v18 = vmul.f32 0.1, %v1103_v8  ;;  %v832_v26 = vmul.f32 %v2935_v9, %v3472_v10 }
  0x65   : > { %v3133_v17 = vpack.c.bf16 %v1153_v31, %v1153_v31  ;;  %vm1123_vm8 = vcmp.gt.f32.partialorder %v1105_v0, 0.0  ;;  %3252 = vmatmul.mubr.msk.bf16.gmra.mxu0 %vm1337_vm6, %v3022_v15  ;;  %v3361_v24 = vld [vmem:[#allocation2 + $0x90] ss:$8 sps:$4 sm:$0xff]   ;;  %v1155_v25 = vsel %vm1119_vm5, %v1101_v62, %v1137_v16  ;;  %v834_v27 = vmul.f32 %v2937_v11, %v3472_v10 }
  0x66   : > { %v836_v28 = vmul.f32 %v2939_v12, %v3472_v10  ;;  %v3135_v22 = vpack.c.bf16 %v1155_v25, %v1155_v25  ;;  %v1141_v29 = vmul.f32 0.1, %v1105_v0  ;;  %v1157_v30 = vsel %vm1121_vm7, %v1103_v8, %v1139_v18  ;;  %3257 = vmatprep.mubr.msk.bf16.mxu1 %vm1337_vm6, %v3361_v24  ;;  %v3859_v3 = vld [vmem:[#allocation2 + $0x90] sm:$0xf]  ;;  %v3875_v18 = vld [vmem:[%s4154_s3 + $0x20] sm:$0xf] }
  0x67   : > { %1262 = vst.msk [vmem:[#allocation2 + $0xd8] sm:$0xf] %vm496_vm1, %v3133_v17  ;;  %v838_v32 = vmul.f32 %v2941_v14, %v3472_v10  ;;  %v3137_v33 = vpack.c.bf16 %v1157_v30, %v1157_v30  ;;  %v857_v34 = vadd.f32 %v3488_v19, %v832_v26  ;;  %v859_v36 = vadd.f32 %v3488_v19, %v834_v27  ;;  %v3823_v10 = vld [vmem:[%s4152_s1] ss:$0 sm:$0xff]  ;;  %v2932_v27 = vld [vmem:[%s3497_s7 + $0x148] sm:$0x1] }
  0x68   : > { %v861_v37 = vadd.f32 %v3488_v19, %v836_v28  ;;  %1266 = vst.msk [vmem:[#allocation2 + $0xe0] sm:$0xf] %vm496_vm1, %v3135_v22  ;;  %v1159_v41 = vsel %vm1123_vm8, %v1105_v0, %v1141_v29  ;;  %v1082_v55 = vmul.f32 %v3823_v10, %v2973_v20  ;;  %v1084_v43 = vmul.f32 %v3823_v10, %v2975_v21  ;;  %v2934_v28 = vld [vmem:[%s3497_s7 + $0x158] sm:$0x1]  ;;  %v2936_v22 = vld [vmem:[%s3497_s7 + $0x168] sm:$0x1] }
  0x69   : > { %v3362_v40 = vld [vmem:[#allocation2 + $0xa0] ss:$8 sps:$4 sm:$0xff]   ;;  %v863_v42 = vadd.f32 %v3488_v19, %v838_v32  ;;  %v3139_v44 = vpack.c.bf16 %v1159_v41, %v1159_v41  ;;  %1270 = vst.msk [vmem:[#allocation2 + $0xe8] sm:$0xf] %vm496_vm1, %v3137_v33  ;;  %vm875_vm9 = vcmp.gt.f32.partialorder %v857_v34, 0.0  ;;  %vm877_vm10 = vcmp.gt.f32.partialorder %v859_v36, 0.0 }
  0x6a   : > { %v893_v35 = vmul.f32 0.1, %v857_v34  ;;  %v3831_v19 = vld [vmem:[%s4154_s3 + $0x1c] sm:$0xf]  ;;  %3258 = vmatmul.mubr.msk.bf16.vlgmr.msra.gmra.mxu1 %vm1337_vm6, %v3362_v40  ;;  %v895_v45 = vmul.f32 0.1, %v859_v36  ;;  %v1107_v51 = vadd.f32 %v3839_v13, %v1082_v55  ;;  %v1109_v52 = vadd.f32 %v3839_v13, %v1084_v43 }
  0x6b   : > { %vm879_vm11 = vcmp.gt.f32.partialorder %v861_v37, 0.0  ;;  %vm881_vm15 = vcmp.gt.f32.partialorder %v863_v42, 0.0  ;;  %v897_v46 = vmul.f32 0.1, %v861_v37  ;;  %3276 = vmatpush3.bf16.msra.mxu1 %v3773_v50  ;;  %1274 = vst.msk [vmem:[#allocation2 + $0xf0] sm:$0xf] %vm496_vm1, %v3139_v44  ;;  %v1086_v57 = vmul.f32 %v3823_v10, %v2977_v38 }
  0x6c   : > { %v911_v47 = vsel %vm875_vm9, %v857_v34, %v893_v35  ;;  %v899_v48 = vmul.f32 0.1, %v863_v42  ;;  %v913_v54 = vsel %vm877_vm10, %v859_v36, %v895_v45  ;;  %3325 = vmatprep.subr.msk.bf16.mxu1 %vm1350_vm0, %v3831_v19  ;;  %vm1125_vm2 = vcmp.gt.f32.partialorder %v1107_v51, 0.0  ;;  %v1989_v33 = vld [vmem:[#allocation2 + $0x98] sm:$0xf] }
  0x6d   : > { %v929_v56 = vsel %vm394_vm13, %v911_v47, 0.0  ;;  %v915_v50 = vsel %vm879_vm11, %v861_v37, %v897_v46  ;;  %v931_v58 = vsel %vm394_vm13, %v913_v54, 0.0  ;;  %vm1127_vm3 = vcmp.gt.f32.partialorder %v1109_v52, 0.0  ;;  %v2938_v37 = vld [vmem:[%s3497_s7 + $0x178] sm:$0x1] }
  0x6e   : > { %v3125_v4 = vpack.c.bf16 %v929_v56, %v929_v56  ;;  %v917_v59 = vsel %vm881_vm15, %v863_v42, %v899_v48  ;;  %v933_v60 = vsel %vm394_vm13, %v915_v50, 0.0  ;;  %v3127_v61 = vpack.c.bf16 %v931_v58, %v931_v58  ;;  %v2940_v55 = vld [vmem:[%s3497_s7 + $0x188] sm:$0x1]  ;;  %v1013_v35 = vld [vmem:[#allocation2 + $0x94] sm:$0x1] }
  0x6f   : > { %v935_v62 = vsel %vm394_vm13, %v917_v59, 0.0  ;;  %v3129_v63 = vpack.c.bf16 %v933_v60, %v933_v60  ;;  %v3363_v5 = vld [vmem:[#allocation2 + $0xd8] ss:$8 sps:$4 sm:$0xff]   ;;  %v1088_v0 = vmul.f32 %v3823_v10, %v2979_v53  ;;  %v1111_v9 = vadd.f32 %v3839_v13, %v1086_v57  ;;  %v1017_v45 = vld [vmem:[#allocation2 + $0x9c] sm:$0x1] }
  0x70   : > { %1028 = vst.msk [vmem:[#allocation2 + $0xb0] sm:$0xf] %vm496_vm1, %v3125_v4  ;;  %v3131_v8 = vpack.c.bf16 %v935_v62, %v935_v62  ;;  %1032 = vst.msk [vmem:[#allocation2 + $0xb8] sm:$0xf] %vm496_vm1, %v3127_v61  ;;  %v1143_v11 = vmul.f32 0.1, %v1107_v51  ;;  %v825_v15 = vmul.f32 %v3823_v10, %v2928_v39  ;;  %v827_v16 = vmul.f32 %v3823_v10, %v2930_v6 }
  0x71   : > { %1036 = vst.msk [vmem:[#allocation2 + $0xc0] sm:$0xf] %vm496_vm1, %v3129_v63  ;;  %v1145_v12 = vmul.f32 0.1, %v1109_v52  ;;  %3267 = vmatprep.mubr.msk.bf16.mxu0 %vm1337_vm6, %v3363_v5  ;;  %v1113_v31 = vadd.f32 %v3839_v13, %v1088_v0  ;;  %vm1129_vm5 = vcmp.gt.f32.partialorder %v1111_v9, 0.0  ;;  %v2004_v17 = vshrl.u32 %v3859_v3, 16 }
  0x72   : > { %1040 = vst.msk [vmem:[#allocation2 + $0xc8] sm:$0xf] %vm496_vm1, %v3131_v8  ;;  %v1147_v14 = vmul.f32 0.1, %v1111_v9  ;;  %v3364_v20 = vld [vmem:[#allocation2 + $0xe8] ss:$8 sps:$4 sm:$0xff]   ;;  %v1161_v21 = vsel %vm1125_vm2, %v1107_v51, %v1143_v11  ;;  %v850_v25 = vadd.f32 %v3839_v13, %v825_v15  ;;  %v852_v26 = vadd.f32 %v3839_v13, %v827_v16 }
  0x73   : > { %v1163_v24 = vsel %vm1127_vm3, %v1109_v52, %v1145_v12  ;;  %v3141_v29 = vpack.c.bf16 %v1161_v21, %v1161_v21  ;;  %vm1131_vm7 = vcmp.gt.f32.partialorder %v1113_v31, 0.0  ;;  %v1149_v32 = vmul.f32 0.1, %v1113_v31  ;;  %3268 = vmatmul.mubr.msk.bf16.vlgmr.msra.gmra.mxu0 %vm1337_vm6, %v3364_v20  ;;  %v1991_v48 = vld [vmem:[#allocation2 + $0xa0] sm:$0xf]  ;;  %v2905_v15 = vld [vmem:[%s3497_s7 + $0x110] sm:$0xff] }
  0x74   : > { %v3143_v30 = vpack.c.bf16 %v1163_v24, %v1163_v24  ;;  %v1165_v34 = vsel %vm1129_vm5, %v1111_v9, %v1147_v14  ;;  %vm868_vm8 = vcmp.gt.f32.partialorder %v850_v25, 0.0  ;;  %vm870_vm9 = vcmp.gt.f32.partialorder %v852_v26, 0.0  ;;  %3286 = vmatpush3.bf16.msra.mxu0 %v3792_v1  ;;  %v2942_v61 = vld [vmem:[%s3497_s7 + $0x198] sm:$0x1]  ;;  %v288_v12 = vld [vmem:[%s3497_s7 + $0x80] sm:$0xff] }
  0x75   : > { %v886_v36 = vmul.f32 0.1, %v850_v25  ;;  %1278 = vst.msk [vmem:[#allocation2 + $0xf8] sm:$0xf] %vm496_vm1, %v3141_v29  ;;  %v1167_v38 = vsel %vm1131_vm7, %v1113_v31, %v1149_v32  ;;  %v3145_v40 = vpack.c.bf16 %v1165_v34, %v1165_v34  ;;  %v888_v41 = vmul.f32 0.1, %v852_v26  ;;  %3326 = vmatprep.subr.msk.bf16.mxu0 %vm1350_vm0, %v3875_v18 }
  0x76   : > { %1282 = vst.msk [vmem:[#allocation2 + $0x100] sm:$0xf] %vm496_vm1, %v3143_v30  ;;  %v2006_v42 = vrot.slane %v2004_v17, 4  ;;  %v3147_v43 = vpack.c.bf16 %v1167_v38, %v1167_v38  ;;  %v2007_v46 = vshll.u32 %v3859_v3, 16  ;;  %v2018_v47 = vshrl.u32 %v1989_v33, 16 }
  0x77   : > { %v904_v44 = vsel %vm868_vm8, %v850_v25, %v886_v36  ;;  %v3365_v1 = vld [vmem:[#allocation2 + $0xb0] ss:$8 sps:$4 sm:$0xff]   ;;  %1286 = vst.msk [vmem:[#allocation2 + $0x108] sm:$0xf] %vm496_vm1, %v3145_v40  ;;  %v906_v51 = vsel %vm870_vm9, %v852_v26, %v888_v41  ;;  %v829_v52 = vmul.f32 %v3823_v10, %v2932_v27  ;;  %v831_v39 = vmul.f32 %v3823_v10, %v2934_v28  ;;  %v1993_v26 = vld [vmem:[#allocation2 + $0xa8] sm:$0xf] }
  0x78   : > { %v833_v54 = vmul.f32 %v3823_v10, %v2936_v22  ;;  %1290 = vst.msk [vmem:[#allocation2 + $0x110] sm:$0xf] %vm496_vm1, %v3147_v43  ;;  %v922_v50 = vsel %vm401_vm14, %v904_v44, 0.0  ;;  %v924_v53 = vsel %vm401_vm14, %v906_v51, 0.0  ;;  %v835_v57 = vmul.f32 %v3823_v10, %v2938_v37  ;;  %3261 = vmatprep.mubr.msk.bf16.mxu1 %vm1337_vm6, %v3365_v1  ;;  %v3369_v31 = vld [vmem:[#allocation2 + $0x8] ss:$8 sps:$4 sm:$0xff]  }
  0x79   : > { %v3366_v56 = vld [vmem:[#allocation2 + $0xc0] ss:$8 sps:$4 sm:$0xff]   ;;  %v837_v6 = vmul.f32 %v3823_v10, %v2940_v55  ;;  %v3118_v58 = vpack.c.bf16 %v922_v50, %v922_v50  ;;  %v3120_v4 = vpack.c.bf16 %v924_v53, %v924_v53  ;;  %v2009_v59 = vrot.slane %v2007_v46, 5  ;;  %v1021_v40 = vld [vmem:[#allocation2 + $0xa4] sm:$0x1] }
  0x7a   : > { %v2020_v60 = vrot.slane %v2018_v47, 4  ;;  %3262 = vmatmul.mubr.msk.bf16.gmra.mxu1 %vm1337_vm6, %v3366_v56  ;;  %v2021_v62 = vshll.u32 %v1989_v33, 16  ;;  %v854_v63 = vadd.f32 %v3839_v13, %v829_v52  ;;  %v856_v3 = vadd.f32 %v3839_v13, %v831_v39  ;;  %v3370_v56 = vld [vmem:[#allocation2 + $0x18] ss:$8 sps:$4 sm:$0xff]  }
  0x7b   : > { %v2032_v5 = vshrl.u32 %v1991_v48, 16  ;;  %v1014_v8 = vsel %vm3463_vm4, %v3118_v58, %v1013_v35  ;;  %v1018_v0 = vsel %vm3463_vm4, %v3120_v4, %v1017_v45  ;;  %v2010_v9 = vor.u32 %v2009_v59, %v2006_v42  ;;  %v1025_v35 = vld [vmem:[#allocation2 + $0xac] sm:$0x1]  ;;  %v1995_v59 = vld [vmem:[#allocation2 + $0xb0] sm:$0xf] }
  0x7c   : > { %v2035_v11 = vshll.u32 %v1991_v48, 16  ;;  %1015 = vst [vmem:[#allocation2 + $0x94] sm:$0x1] %v1014_v8  ;;  %1019 = vst [vmem:[#allocation2 + $0x9c] sm:$0x1] %v1018_v0  ;;  %v3918_v14 = vadd.f32 %v3839_v13, %v833_v54  ;;  %v3921_v17 = vadd.f32 %v3839_v13, %v835_v57  ;;  %v839_v20 = vmul.f32 %v3823_v10, %v2942_v61 }
  0x7d   : > { %v3367_v16 = vld [vmem:[#allocation2 + $0xf8] ss:$8 sps:$4 sm:$0xff]   ;;  %v3925_v21 = vadd.f32 %v3839_v13, %v837_v6  ;;  %v3927_v24 = vrot.slane %v2010_v9, 4  ;;  %v2023_v25 = vrot.slane %v2021_v62, 5  ;;  %vm872_vm10 = vcmp.gt.f32.partialorder %v854_v63, 0.0 }
  0x7e   : > { %vm874_vm11 = vcmp.gt.f32.partialorder %v856_v3, 0.0  ;;  %3271 = vmatprep.mubr.msk.bf16.mxu0 %vm1337_vm6, %v3367_v16  ;;  %v890_v27 = vmul.f32 0.1, %v854_v63  ;;  %v892_v28 = vmul.f32 0.1, %v856_v3  ;;  %v3931_v22 = vadd.f32 %v3839_v13, %v839_v20 }
  0x7f   : > { %v313_v29 = vmul.f32 %v3823_v10, %v288_v12  ;;  %v3368_v30 = vld [vmem:[#allocation2 + $0x108] ss:$8 sps:$4 sm:$0xff]   ;;  %v2024_v32 = vor.u32 %v2023_v25, %v2020_v60  ;;  %v2034_v33 = vrot.slane %v2032_v5, 4  ;;  %v2037_v34 = vrot.slane %v2035_v11, 5  ;;  %v1997_v60 = vld [vmem:[#allocation2 + $0xb8] sm:$0xf] }
  0x80   : > { %v578_v36 = vmul.f32 %v3823_v10, %v2905_v15  ;;  %v908_v37 = vsel %vm872_vm10, %v854_v63, %v890_v27  ;;  %v910_v38 = vsel %vm874_vm11, %v856_v3, %v892_v28  ;;  %v2046_v41 = vshrl.u32 %v1993_v26, 16  ;;  %3272 = vmatmul.mubr.msk.bf16.gmra.mxu0 %vm1337_vm6, %v3368_v30  ;;  %v3371_v62 = vld [vmem:[#allocation2 + $0x28] ss:$8 sps:$4 sm:$0xff]   ;;  %v1029_v20 = vld [vmem:[#allocation2 + $0xb4] sm:$0x1] }
  0x81   : > { %v2049_v42 = vshll.u32 %v1993_v26, 16  ;;  %v2025_v55 = vrot.slane %v2024_v32, 4  ;;  %v926_v43 = vsel %vm401_vm14, %v908_v37, 0.0  ;;  %v928_v44 = vsel %vm401_vm14, %v910_v38, 0.0  ;;  %3287 = vmatprep.mubr.msk.bf16.mxu0 %vm1337_vm6, %v3369_v31  ;;  %v1033_v28 = vld [vmem:[#allocation2 + $0xbc] sm:$0x1] }
  0x82   : > { %v2038_v45 = vor.u32 %v2037_v34, %v2034_v33  ;;  %v3122_v46 = vpack.c.bf16 %v926_v43, %v926_v43  ;;  %v3124_v47 = vpack.c.bf16 %v928_v44, %v928_v44  ;;  %v2048_v48 = vrot.slane %v2046_v41, 4 }
  0x83   : > { %v2051_v1 = vrot.slane %v2049_v42, 5  ;;  %v1988_v51 = vld [vmem:[#allocation2 + $0x94] sm:$0x1]  ;;  %v1990_v52 = vld [vmem:[#allocation2 + $0x9c] sm:$0x1]  ;;  %v3945_v54 = vsel %vm1350_vm0, %v3831_v19, 0  ;;  %v3948_v50 = vadd.f32 %v3839_v13, %v313_v29  ;;  %v3951_v53 = vadd.f32 %v3839_v13, %v578_v36 }
  0x84   : > { %v3941_v39 = vrot.slane %v2038_v45, 4  ;;  %v2013_v57 = vshll.u32 %v1988_v51, 16  ;;  %v2027_v6 = vshll.u32 %v1990_v52, 16  ;;  %v1022_v58 = vsel %vm3463_vm4, %v3122_v46, %v1021_v40  ;;  %v1037_v45 = vld [vmem:[#allocation2 + $0xc4] sm:$0x1] }
  0x85   : > { %v1026_v4 = vsel %vm3463_vm4, %v3124_v47, %v1025_v35  ;;  %1023 = vst [vmem:[#allocation2 + $0xa4] sm:$0x1] %v1022_v58  ;;  %v2052_v19 = vor.u32 %v2051_v1, %v2048_v48  ;;  %v2606_v61 = vsel %vm1350_vm0, %v3875_v18, 0  ;;  %vm876_vm15 = vcmp.gt.f32.partialorder %v3918_v14, 0.0  ;;  %v2001_v1 = vld [vmem:[#allocation2 + $0xc8] sm:$0xf] }
  0x86   : > { %1027 = vst [vmem:[#allocation2 + $0xac] sm:$0x1] %v1026_v4  ;;  %vm878_vm2 = vcmp.gt.f32.partialorder %v3921_v17, 0.0  ;;  %v2015_v63 = vrot.slane %v2013_v57, 5  ;;  %v2029_v3 = vrot.slane %v2027_v6, 5  ;;  %v2060_v9 = vshrl.u32 %v1995_v59, 16 }
  0x87   : > { %v894_v5 = vmul.f32 0.1, %v3918_v14  ;;  %v896_v8 = vmul.f32 0.1, %v3921_v17  ;;  %v2053_v0 = vrot.slane %v2052_v19, 4  ;;  %v2063_v11 = vshll.u32 %v1995_v59, 16 }
  0x88   : > { %v2074_v12 = vshrl.u32 %v1997_v60, 16  ;;  %v2016_v15 = vsel %vm3650_vm12, %v3927_v24, %v2015_v63  ;;  %v2030_v18 = vsel %vm3650_vm12, %v2025_v55, %v2029_v3  ;;  %3288 = vmatmul.mubr.msk.bf16.vlgmr.msra.gmra.mxu0 %vm1337_vm6, %v3370_v56  ;;  %v2062_v29 = vrot.slane %v2060_v9, 4  ;;  %v2452_v63 = vld [vmem:[#allocation2 + $0x8] sm:$0xf] }
  0x89   : > { %v912_v16 = vsel %vm876_vm15, %v3918_v14, %v894_v5  ;;  %v914_v31 = vsel %vm878_vm2, %v3921_v17, %v896_v8  ;;  %v3043_v25 = vcombine.low %v2016_v15, %v2030_v18  ;;  %3306 = vmatpush3.bf16.msra.mxu0 %v2606_v61  ;;  %v2065_v32 = vrot.slane %v2063_v11, 5  ;;  %v1999_v14 = vld [vmem:[#allocation2 + $0xc0] sm:$0xf]  ;;  %3291 = vmatprep.mubr.msk.bf16.mxu0 %vm1337_vm6, %v3371_v62  ;;  %v289_v3 = vld [vmem:[%s3497_s7 + $0x88] sm:$0x1]  ;;  %s2866_s7 = sshll.u32 %s3393_s18, 3 }
  0x8a   : > { %v930_v26 = vsel %vm401_vm14, %v912_v16, 0.0  ;;  %v932_v27 = vsel %vm401_vm14, %v914_v31, 0.0  ;;  %v2076_v33 = vrot.slane %v2074_v12, 4  ;;  %v2077_v17 = vshll.u32 %v1997_v60, 16  ;;  %p252_p5 = scmp.lt.s32.totalorder %s2866_s7, 15  ;;  %s4170_s18 = smov (!%p259_p6, %s3393_s18), 1 }
  0x8b   : > { %v3126_v24 = vpack.c.bf16 %v930_v26, %v930_v26  ;;  %v3128_v30 = vpack.c.bf16 %v932_v27, %v932_v27  ;;  %3277 = vmatprep.mubr.msk.bf16.mxu1 %vm1337_vm6, %v3043_v25  ;;  %vm880_vm0 = vcmp.gt.f32.partialorder %v3925_v21, 0.0  ;;  %vm882_vm3 = vcmp.gt.f32.partialorder %v3931_v22, 0.0  ;;  %s2868_s12 = sshll.u32 %s4170_s18, 1 }
  0x8c   : > { %v898_v34 = vmul.f32 0.1, %v3925_v21  ;;  %v1992_v36 = vld [vmem:[#allocation2 + $0xa4] sm:$0x1]  ;;  %v2066_v41 = vor.u32 %v2065_v32, %v2062_v29  ;;  %v900_v42 = vmul.f32 0.1, %v3931_v22  ;;  %v314_v26 = vmul.f32 %v3823_v10, %v289_v3  ;;  %s262_s15 = scalar_lea.vmem %s4156_s5, %s2868_s12 }
  0x8d   : > { %v1994_v37 = vld [vmem:[#allocation2 + $0xac] sm:$0x1]  ;;  %v1030_v38 = vsel %vm3463_vm4, %v3126_v24, %v1029_v20  ;;  %v1034_v40 = vsel %vm3463_vm4, %v3128_v30, %v1033_v28  ;;  %v2041_v55 = vshll.u32 %v1992_v36, 16  ;;  %v2079_v44 = vrot.slane %v2077_v17, 5  ;;  %v2454_v30 = vld [vmem:[#allocation2 + $0x10] sm:$0xf] }
  0x8e   : > { %v2055_v43 = vshll.u32 %v1994_v37, 16  ;;  %1031 = vst [vmem:[#allocation2 + $0xb4] sm:$0x1] %v1030_v38  ;;  %1035 = vst [vmem:[#allocation2 + $0xbc] sm:$0x1] %v1034_v40  ;;  %v916_v35 = vsel %vm880_vm0, %v3925_v21, %v898_v34  ;;  %v3986_v46 = vrot.slane %v2066_v41, 4  ;;  %v918_v47 = vsel %vm882_vm3, %v3931_v22, %v900_v42 }
  0x8f   : > { %v934_v48 = vsel %vm401_vm14, %v916_v35, 0.0  ;;  %v2088_v51 = vshrl.u32 %v1999_v14, 16  ;;  %v2043_v52 = vrot.slane %v2041_v55, 5  ;;  %v2080_v57 = vor.u32 %v2079_v44, %v2076_v33  ;;  %v1041_v21 = vld [vmem:[#allocation2 + $0xcc] sm:$0x1]  ;;  %s4168_s7 = smov (!%p252_p5, %s2866_s7), 15 }
  0x90   : > { %v2057_v56 = vrot.slane %v2055_v43, 5  ;;  %v936_v6 = vsel %vm401_vm14, %v918_v47, 0.0  ;;  %v3130_v58 = vpack.c.bf16 %v934_v48, %v934_v48  ;;  %v2091_v60 = vshll.u32 %v1999_v14, 16  ;;  %v2455_v14 = vld [vmem:[#allocation2 + $0x14] sm:$0x1]  ;;  %s2867_s8 = sshll.u32 %s4168_s7, 2 }
  0x91   : > { %v3132_v4 = vpack.c.bf16 %v936_v6, %v936_v6  ;;  %v2090_v59 = vrot.slane %v2088_v51, 4  ;;  %v2044_v22 = vsel %vm3650_vm12, %v3941_v39, %v2043_v52  ;;  %v2081_v61 = vrot.slane %v2080_v57, 4  ;;  %v2456_v44 = vld [vmem:[#allocation2 + $0x18] sm:$0xf]  ;;  %v2457_v35 = vld [vmem:[#allocation2 + $0x1c] sm:$0x1]  ;;  %s4123_s11 = scalar_lea.vmem %s4155_s4, %s2867_s8 }
  0x92   : > { %v2058_v19 = vsel %vm3650_vm12, %v2053_v0, %v2057_v56  ;;  %v2102_v62 = vshrl.u32 %v2001_v1, 16  ;;  %v1038_v8 = vsel %vm3463_vm4, %v3130_v58, %v1037_v45  ;;  %v2093_v11 = vrot.slane %v2091_v60, 5  ;;  %v2453_v0 = vld [vmem:[#allocation2 + $0xc] sm:$0x1] }
  0x93   : > { %v3044_v5 = vcombine.low %v2044_v22, %v2058_v19  ;;  %v1042_v9 = vsel %vm3463_vm4, %v3132_v4, %v1041_v21  ;;  %1039 = vst [vmem:[#allocation2 + $0xc4] sm:$0x1] %v1038_v8  ;;  %v2105_v15 = vshll.u32 %v2001_v1, 16  ;;  %vm356_vm5 = vcmp.gt.f32.partialorder %v3948_v50, 0.0  ;;  %v2458_v21 = vld [vmem:[#allocation2 + $0x20] sm:$0xf] }
  0x94   : > { %1043 = vst [vmem:[#allocation2 + $0xcc] sm:$0x1] %v1042_v9  ;;  %v2104_v12 = vrot.slane %v2102_v62, 4  ;;  %v374_v39 = vmul.f32 0.1, %v3948_v50  ;;  %v2094_v31 = vor.u32 %v2093_v11, %v2090_v59  ;;  %v2469_v20 = vshrl.u32 %v2452_v63, 16 }
  0x95   : > { %3278 = vmatmul.mubr.msk.bf16.vlgmr.msra.gmra.mxu1 %vm1337_vm6, %v3044_v5  ;;  %v1996_v18 = vld [vmem:[#allocation2 + $0xb4] sm:$0x1]  ;;  %v1998_v16 = vld [vmem:[#allocation2 + $0xbc] sm:$0x1]  ;;  %v2472_v25 = vshll.u32 %v2452_v63, 16  ;;  %v2107_v29 = vrot.slane %v2105_v15, 5  ;;  %v4020_v52 = vadd.f32 %v3839_v13, %v314_v26 }
  0x96   : > { %3296 = vmatpush3.bf16.msra.mxu1 %v3945_v54  ;;  %v2069_v27 = vshll.u32 %v1996_v18, 16  ;;  %v2083_v28 = vshll.u32 %v1998_v16, 16  ;;  %v392_v24 = vsel %vm356_vm5, %v3948_v50, %v374_v39  ;;  %v2095_v32 = vrot.slane %v2094_v31, 4  ;;  %v2459_v13 = vld [vmem:[#allocation2 + $0x24] sm:$0x1] }
  0x97   : > { %v422_v33 = vsel %vm394_vm13, %v392_v24, 0.0  ;;  %v2471_v17 = vrot.slane %v2469_v20, 4  ;;  %v2474_v34 = vrot.slane %v2472_v25, 5  ;;  %v2108_v38 = vor.u32 %v2107_v29, %v2104_v12  ;;  %v2461_v18 = vld [vmem:[#allocation2 + $0x2c] sm:$0x1] }
  0x98   : > { %v2071_v36 = vrot.slane %v2069_v27, 5  ;;  %v2085_v37 = vrot.slane %v2083_v28, 5  ;;  %v3099_v40 = vpack.c.bf16 %v422_v33, %v422_v33  ;;  %v2478_v41 = vshll.u32 %v2453_v0, 16  ;;  %v2460_v0 = vld [vmem:[#allocation2 + $0x28] sm:$0xf] }
  0x99   : > { %v2475_v10 = vor.u32 %v2474_v34, %v2471_v17  ;;  %v2483_v54 = vshrl.u32 %v2454_v30, 16  ;;  %v2486_v42 = vshll.u32 %v2454_v30, 16  ;;  %v2109_v23 = vrot.slane %v2108_v38, 4  ;;  %v2462_v33 = vld [vmem:[#allocation2 + $0x30] sm:$0xf] }
  0x9a   : > { %v2072_v50 = vsel %vm3650_vm12, %v3986_v46, %v2071_v36  ;;  %v2086_v55 = vsel %vm3650_vm12, %v2081_v61, %v2085_v37  ;;  %532 = vst.msk [vmem:[#allocation2 + $0x40] sm:$0xf] %vm496_vm1, %v3099_v40  ;;  %v2492_v43 = vshll.u32 %v2455_v14, 16  ;;  %v2000_v47 = vld [vmem:[#allocation2 + $0xc4] sm:$0x1]  ;;  %v2480_v51 = vrot.slane %v2478_v41, 5 }
  0x9b   : > { %v3045_v45 = vcombine.low %v2072_v50, %v2086_v55  ;;  %v2002_v48 = vld [vmem:[#allocation2 + $0xcc] sm:$0x1]  ;;  %v2476_v1 = vrot.slane %v2475_v10, 4  ;;  %v2097_v56 = vshll.u32 %v2000_v47, 16  ;;  %v2485_v46 = vrot.slane %v2483_v54, 4 }
  0x9c   : > { %v2111_v57 = vshll.u32 %v2002_v48, 16  ;;  %v2488_v6 = vrot.slane %v2486_v42, 5  ;;  %v2494_v4 = vrot.slane %v2492_v43, 5  ;;  %v2497_v59 = vshrl.u32 %v2456_v44, 16  ;;  %v3373_v61 = vld [vmem:[#allocation2 + $0x50] ss:$8 sps:$4 sm:$0xff]  }
  0x9d   : > { %3281 = vmatprep.mubr.msk.bf16.mxu1 %vm1337_vm6, %v3045_v45  ;;  %v2481_v58 = vsel %vm3650_vm12, %v2476_v1, %v2480_v51  ;;  %v2500_v60 = vshll.u32 %v2456_v44, 16  ;;  %v2099_v22 = vrot.slane %v2097_v56, 5  ;;  %v2506_v63 = vshll.u32 %v2457_v35, 16  ;;  %v2463_v36 = vld [vmem:[#allocation2 + $0x34] sm:$0x1] }
  0x9e   : > { %v2113_v19 = vrot.slane %v2111_v57, 5  ;;  %v2489_v62 = vor.u32 %v2488_v6, %v2485_v46  ;;  %v2499_v3 = vrot.slane %v2497_v59, 4  ;;  %v2511_v8 = vshrl.u32 %v2458_v21, 16  ;;  %v2464_v43 = vld [vmem:[#allocation2 + $0x38] sm:$0xf] }
  0x9f   : > { %v2502_v5 = vrot.slane %v2500_v60, 5  ;;  %v2514_v9 = vshll.u32 %v2458_v21, 16  ;;  %v2100_v11 = vsel %vm3650_vm12, %v2095_v32, %v2099_v22  ;;  %v2508_v39 = vrot.slane %v2506_v63, 5  ;;  %v3374_v44 = vld [vmem:[#allocation2 + $0x60] ss:$8 sps:$4 sm:$0xff]  }
  0xa0   : > { %v2114_v12 = vsel %vm3650_vm12, %v2109_v23, %v2113_v19  ;;  %v2490_v15 = vrot.slane %v2489_v62, 4  ;;  %v2513_v25 = vrot.slane %v2511_v8, 4  ;;  %v2520_v28 = vshll.u32 %v2459_v13, 16  ;;  %v3375_v48 = vld [vmem:[#allocation2 + $0x70] ss:$8 sps:$4 sm:$0xff]  }
  0xa1   : > { %v3046_v16 = vcombine.low %v2100_v11, %v2114_v12  ;;  %v3372_v31 = vld [vmem:[#allocation2 + $0x38] ss:$8 sps:$4 sm:$0xff]   ;;  %v2503_v20 = vor.u32 %v2502_v5, %v2499_v3  ;;  %v2516_v26 = vrot.slane %v2514_v9, 5  ;;  %vm621_vm13 = vcmp.gt.f32.partialorder %v3951_v53, 0.0  ;;  %v533_v22 = vld [vmem:[#allocation2 + $0x44] sm:$0x1] }
  0xa2   : > { %v2495_v27 = vsel %vm3650_vm12, %v2490_v15, %v2494_v4  ;;  %v639_v29 = vmul.f32 0.1, %v3951_v53  ;;  %3292 = vmatmul.mubr.msk.bf16.gmra.mxu0 %vm1337_vm6, %v3372_v31  ;;  %v2525_v14 = vshrl.u32 %v2460_v0, 16  ;;  %v2522_v17 = vrot.slane %v2520_v28, 5  ;;  %v2466_v57 = vld [vmem:[#allocation2 + $0x40] sm:$0xf] }
  0xa3   : > { %3282 = vmatmul.mubr.msk.bf16.gmra.mxu1 %vm1337_vm6, %v3046_v16  ;;  %v3067_v24 = vcombine.low %v2481_v58, %v2495_v27  ;;  %v2504_v30 = vrot.slane %v2503_v20, 4  ;;  %v2517_v32 = vor.u32 %v2516_v26, %v2513_v25  ;;  %v2528_v37 = vshll.u32 %v2460_v0, 16  ;;  %v2465_v5 = vld [vmem:[#allocation2 + $0x3c] sm:$0x1] }
  0xa4   : > { %3297 = vmatprep.mubr.msk.bf16.mxu1 %vm1337_vm6, %v3373_v61  ;;  %v657_v34 = vsel %vm621_vm13, %v3951_v53, %v639_v29  ;;  %v2534_v38 = vshll.u32 %v2461_v18, 16  ;;  %v2527_v54 = vrot.slane %v2525_v14, 4  ;;  %v2539_v55 = vshrl.u32 %v2462_v33, 16 }
  0xa5   : > { %3307 = vmatprep.mubr.msk.bf16.mxu0 %vm1337_vm6, %v3067_v24  ;;  %v2509_v40 = vsel %vm3650_vm12, %v2504_v30, %v2508_v39  ;;  %v2518_v10 = vrot.slane %v2517_v32, 4  ;;  %v3115_v41 = vpack.c.bf16 %v657_v34, %v657_v34  ;;  %v2530_v42 = vrot.slane %v2528_v37, 5 }
  0xa6   : > { %v2536_v50 = vrot.slane %v2534_v38, 5  ;;  %v2542_v23 = vshll.u32 %v2462_v33, 16  ;;  %v2548_v35 = vshll.u32 %v2463_v36, 16  ;;  %vm357_vm7 = vcmp.gt.f32.partialorder %v4020_v52, 0.0 }
  0xa7   : > { %v2523_v53 = vsel %vm3650_vm12, %v2518_v10, %v2522_v17  ;;  %794 = vst.msk [vmem:[#allocation2 + $0x88] sm:$0xf] %vm496_vm1, %v3115_v41  ;;  %v375_v45 = vmul.f32 0.1, %v4020_v52  ;;  %v2531_v1 = vor.u32 %v2530_v42, %v2527_v54  ;;  %v2541_v51 = vrot.slane %v2539_v55, 4 }
  0xa8   : > { %v3068_v47 = vcombine.low %v2509_v40, %v2523_v53  ;;  %v2544_v56 = vrot.slane %v2542_v23, 5  ;;  %v2553_v6 = vshrl.u32 %v2464_v43, 16  ;;  %v2556_v21 = vshll.u32 %v2464_v43, 16 }
  0xa9   : > { %v393_v46 = vsel %vm357_vm7, %v4020_v52, %v375_v45  ;;  %v2532_v58 = vrot.slane %v2531_v1, 4  ;;  %v2550_v59 = vrot.slane %v2548_v35, 5  ;;  %v2567_v62 = vshrl.u32 %v2466_v57, 16 }
  0xaa   : > { %v2545_v4 = vor.u32 %v2544_v56, %v2541_v51  ;;  %v423_v60 = vsel %vm401_vm14, %v393_v46, 0.0  ;;  %3308 = vmatmul.mubr.msk.bf16.vlgmr.msra.gmra.mxu0 %vm1337_vm6, %v3068_v47  ;;  %v2555_v61 = vrot.slane %v2553_v6, 4  ;;  %v2558_v13 = vrot.slane %v2556_v21, 5 }
  0xab   : > { %3298 = vmatmul.mubr.msk.bf16.vlgmr.msra.gmra.mxu1 %vm1337_vm6, %v3374_v44  ;;  %v3100_v19 = vpack.c.bf16 %v423_v60, %v423_v60  ;;  %v2537_v52 = vsel %vm3650_vm12, %v2532_v58, %v2536_v50  ;;  %v2570_v3 = vshll.u32 %v2466_v57, 16  ;;  %v2569_v9 = vrot.slane %v2567_v62, 4 }
  0xac   : > { %3301 = vmatprep.mubr.msk.bf16.mxu1 %vm1337_vm6, %v3375_v48  ;;  %v2546_v63 = vrot.slane %v2545_v4, 4  ;;  %v2559_v39 = vor.u32 %v2558_v13, %v2555_v61  ;;  %v2562_v0 = vshll.u32 %v2465_v5, 16 }
  0xad   : > { %v534_v2 = vsel %vm3463_vm4, %v3100_v19, %v533_v22  ;;  %v2572_v11 = vrot.slane %v2570_v3, 5 }
  0xae   : > { %v2551_v8 = vsel %vm3650_vm12, %v2546_v63, %v2550_v59  ;;  %535 = vst [vmem:[#allocation2 + $0x44] sm:$0x1] %v534_v2  ;;  %v3376_v12 = vld [vmem:[#allocation2 + $0x80] ss:$8 sps:$4 sm:$0xff]   ;;  %v2560_v16 = vrot.slane %v2559_v39, 4  ;;  %v2564_v31 = vrot.slane %v2562_v0, 5 }
  0xaf   : > { %v3069_v15 = vcombine.low %v2537_v52, %v2551_v8  ;;  %v2573_v18 = vor.u32 %v2572_v11, %v2569_v9 }
  0xb0   : > { %v2565_v26 = vsel %vm3650_vm12, %v2560_v16, %v2564_v31 }
  0xb1   : > { %3311 = vmatprep.mubr.msk.bf16.mxu0 %vm1337_vm6, %v3069_v15  ;;  %v2574_v20 = vrot.slane %v2573_v18, 4 }
  0xb3   : > { %3302 = vmatmul.mubr.msk.bf16.gmra.mxu1 %vm1337_vm6, %v3376_v12 }
  0xb5   : > { %v2467_v7 = vld [vmem:[#allocation2 + $0x44] sm:$0x1] }
  0xb6   : > { %v2576_v25 = vshll.u32 %v2467_v7, 16 }
  0xb8   : > { %v2578_v27 = vrot.slane %v2576_v25, 5 }
  0xba   : > { %v2579_v28 = vsel %vm3650_vm12, %v2574_v20, %v2578_v27 }
  0xbb   : > { %v3070_v29 = vcombine.low %v2565_v26, %v2579_v28 }
  0xbd   : > { %3312 = vmatmul.mubr.msk.bf16.gmra.mxu0 %vm1337_vm6, %v3070_v29 }
  0xf3   : > { %v3229_v30 = vpop.f32.mrf.mxu0 }
  0xf5   : > { %v1388_v33 = vpop.f32.mrf.mxu0 }
  0xf6   : > { %v4064_v24 = vpop.f32.mrf.mxu1 }
  0xf7   : > { %v3230_v17 = vpop.f32.mrf.mxu0 }
  0xf8   : > { %v4066_v32 = vpop.f32.mrf.mxu1 }
  0xf9   : > { %v1391_v36 = vpop.f32.mrf.mxu0 }
  0xfa   : > { %v4068_v14 = vpop.f32.mrf.mxu1 }
  0xfc   : > { %v4070_v34 = vpop.f32.mrf.mxu1 }
  0xfe   : > { %v3239_v37 = vpop.f32.mrf.mxu1 }
  0xff   : > { %v1497_v5 = vadd.f32 %v3239_v37, %v3229_v30 }
 0x100   : > { %v1488_v40 = vpop.f32.mrf.mxu1 }
 0x101   : > { %v1489_v8 = vadd.f32 %v1488_v40, %v1388_v33 }
 0x102   : > { %v3240_v10 = vpop.f32.mrf.mxu1 }
 0x103   : > { %v1500_v9 = vadd.f32 %v3240_v10, %v3230_v17 }
 0x104   : > { %v1491_v54 = vpop.f32.mrf.mxu1 }
 0x105   : > { %v1492_v0 = vadd.f32 %v1491_v54, %v1391_v36 }
 0x10e   : > { %v3249_v38 = vpop.f32.mrf.mxu0 }
 0x10f   : > { %v1745_v15 = vadd.f32 %v3249_v38, %v1497_v5 }
 0x110   : > { %v1712_v49 = vpop.f32.mrf.mxu0 }
 0x111   : > { %v1743_v39 = vadd.f32 %v1712_v49, %v1489_v8 }
 0x112   : > { %v3250_v41 = vpop.f32.mrf.mxu0 }
 0x113   : > { %v3243_v50 = vpop.f32.mrf.mxu1  ;;  %v1746_v18 = vadd.f32 %v3250_v41, %v1500_v9 }
 0x114   : > { %v1715_v42 = vpop.f32.mrf.mxu0 }
 0x115   : > { %v1504_v23 = vpop.f32.mrf.mxu1  ;;  %v1744_v25 = vadd.f32 %v1715_v42, %v1492_v0 }
 0x116   : > { %v1505_v49 = vadd.f32 %v1504_v23, %v4066_v32 }
 0x117   : > { %v3244_v44 = vpop.f32.mrf.mxu1 }
 0x119   : > { %v4078_v35 = vpop.f32.mrf.mxu1 }
 0x11a   : > { %v1508_v32 = vadd.f32 %v4078_v35, %v4070_v34 }
 0x125   : > { %v4072_v55 = vpop.f32.mrf.mxu0 }
 0x127   : > { %v4074_v43 = vpop.f32.mrf.mxu0 }
 0x129   : > { %v4076_v53 = vpop.f32.mrf.mxu0 }
 0x12a   : > { %v3259_v47 = vpop.f32.mrf.mxu1 }
 0x12b   : > { %v4080_v45 = vpop.f32.mrf.mxu0  ;;  %v1863_v16 = vadd.f32 %v3259_v47, %v1745_v15  ;;  %v1513_v47 = vadd.f32 %v3243_v50, %v4064_v24 }
 0x12c   : > { %v1830_v51 = vpop.f32.mrf.mxu1 }
 0x12d   : > { %v1861_v31 = vadd.f32 %v1830_v51, %v1743_v39  ;;  %v1749_v24 = vadd.f32 %v4072_v55, %v1513_v47 }
 0x12e   : > { %v3260_v57 = vpop.f32.mrf.mxu1 }
 0x12f   : > { %v1864_v26 = vadd.f32 %v3260_v57, %v1746_v18 }
 0x130   : > { %v1833_v6 = vpop.f32.mrf.mxu1 }
 0x131   : > { %v1862_v33 = vadd.f32 %v1833_v6, %v1744_v25 }
 0x133   : > { %v3269_v48 = vpop.f32.mrf.mxu0 }
 0x134   : > { %v1981_v29 = vadd.f32 %v3269_v48, %v1863_v16  ;;  %v1516_v48 = vadd.f32 %v3244_v44, %v4068_v14 }
 0x135   : > { %v1948_v1 = vpop.f32.mrf.mxu0 }
 0x136   : > { %v1979_v30 = vadd.f32 %v1948_v1, %v1861_v31  ;;  %v1750_v14 = vadd.f32 %v4076_v53, %v1516_v48 }
 0x137   : > { %v3270_v56 = vpop.f32.mrf.mxu0 }
 0x138   : > { %v1982_v36 = vadd.f32 %v3270_v56, %v1864_v26  ;;  %v1747_v56 = vadd.f32 %v4074_v43, %v1505_v49  ;;  %v1748_v43 = vadd.f32 %v4080_v45, %v1508_v32 }
 0x139   : > { %v1951_v46 = vpop.f32.mrf.mxu0 }
 0x13a   : > { %v4084_v58 = vpop.f32.mrf.mxu1  ;;  %v1980_v54 = vadd.f32 %v1951_v46, %v1862_v33 }
 0x13b   : > { %v1867_v9 = vadd.f32 %v4084_v58, %v1749_v24 }
 0x13c   : > { %v1846_v59 = vpop.f32.mrf.mxu1 }
 0x13d   : > { %v1865_v50 = vadd.f32 %v1846_v59, %v1747_v56 }
 0x13e   : > { %v4090_v22 = vpop.f32.mrf.mxu1 }
 0x13f   : > { %v1868_v34 = vadd.f32 %v4090_v22, %v1750_v14 }
 0x140   : > { %v4082_v21 = vpop.f32.mrf.mxu0  ;;  %v4094_v61 = vpop.f32.mrf.mxu1 }
 0x141   : > { %v1866_v59 = vadd.f32 %v4094_v61, %v1748_v43 }
 0x142   : > { %v4086_v4 = vpop.f32.mrf.mxu0 }
 0x143   : > { %v1983_v53 = vadd.f32 %v4086_v4, %v1865_v50 }
 0x144   : > { %v4088_v60 = vpop.f32.mrf.mxu0 }
 0x145   : > { %v1986_v0 = vadd.f32 %v4088_v60, %v1868_v34 }
 0x146   : > { %v4092_v19 = vpop.f32.mrf.mxu0 }
 0x147   : > { %v1984_v26 = vadd.f32 %v4092_v19, %v1866_v59 }
 0x148   : > { %v3289_v62 = vpop.f32.mrf.mxu0 }
 0x14a   : > { %v2295_v13 = vpop.f32.mrf.mxu0 }
 0x14c   : > { %v3290_v2 = vpop.f32.mrf.mxu0 }
 0x14e   : > { %v2298_v12 = vpop.f32.mrf.mxu0 }
 0x155   : > { %v3279_v52 = vpop.f32.mrf.mxu1 }
 0x156   : > { %v2210_v38 = vadd.f32 %v3279_v52, %v1981_v29 }
 0x157   : > { %v2177_v63 = vpop.f32.mrf.mxu1 }
 0x158   : > { %v2208_v40 = vadd.f32 %v2177_v63, %v1979_v30  ;;  %v2328_v57 = vadd.f32 %v3289_v62, %v2210_v38 }
 0x159   : > { %v3280_v3 = vpop.f32.mrf.mxu1 }
 0x15a   : > { %v2211_v42 = vadd.f32 %v3280_v3, %v1982_v36  ;;  %v2326_v6 = vadd.f32 %v2295_v13, %v2208_v40 }
 0x15b   : > { %v2180_v11 = vpop.f32.mrf.mxu1 }
 0x15c   : > { %v2209_v5 = vadd.f32 %v2180_v11, %v1980_v54  ;;  %v2329_v63 = vadd.f32 %v3290_v2, %v2211_v42 }
 0x15e   : > { %v2327_v13 = vadd.f32 %v2298_v12, %v2209_v5  ;;  %v1985_v12 = vadd.f32 %v4082_v21, %v1867_v9 }
 0x162   : > { %v4098_v20 = vpop.f32.mrf.mxu0 }
 0x163   : > { %v4096_v7 = vpop.f32.mrf.mxu1 }
 0x164   : > { %v4100_v28 = vpop.f32.mrf.mxu0  ;;  %v2214_v29 = vadd.f32 %v4096_v7, %v1985_v12 }
 0x165   : > { %v2193_v27 = vpop.f32.mrf.mxu1 }
 0x166   : > { %v4103_v37 = vpop.f32.mrf.mxu0  ;;  %v2212_v18 = vadd.f32 %v2193_v27, %v1983_v53  ;;  %v2332_v27 = vadd.f32 %v4098_v20, %v2214_v29 }
 0x167   : > { %v3284_v17 = vpop.f32.mrf.mxu1 }
 0x168   : > { %v4106_v41 = vpop.f32.mrf.mxu0  ;;  %v2215_v30 = vadd.f32 %v3284_v17, %v1986_v0  ;;  %v2330_v21 = vadd.f32 %v4100_v28, %v2212_v18 }
 0x169   : > { %v2196_v10 = vpop.f32.mrf.mxu1 }
 0x16a   : > { %v3309_v51 = vpop.f32.mrf.mxu0  ;;  %v2213_v36 = vadd.f32 %v2196_v10, %v1984_v26  ;;  %v2333_v49 = vadd.f32 %v4103_v37, %v2215_v30 }
 0x16b   : > { %v3299_v1 = vpop.f32.mrf.mxu1 }
 0x16c   : > { %v2642_v52 = vpop.f32.mrf.mxu0  ;;  %v2446_v46 = vadd.f32 %v3299_v1, %v2328_v57  ;;  %v2331_v47 = vadd.f32 %v4106_v41, %v2213_v36 }
 0x16d   : > { %v2413_v23 = vpop.f32.mrf.mxu1 }
 0x16e   : > { %v2444_v3 = vadd.f32 %v2413_v23, %v2326_v6  ;;  %v3310_v62 = vpop.f32.mrf.mxu0  ;;  %v2675_v11 = vadd.f32 %v3309_v51, %v2446_v46 }
 0x16f   : > { %v3300_v44 = vpop.f32.mrf.mxu1 }
 0x170   : > { %v2447_v8 = vadd.f32 %v3300_v44, %v2329_v63  ;;  %v2645_v2 = vpop.f32.mrf.mxu0  ;;  %v2673_v15 = vadd.f32 %v2642_v52, %v2444_v3  ;;  %v2737_v40 = vmul.f32 %v2675_v11, %v2675_v11 }
 0x171   : > { %v2416_v35 = vpop.f32.mrf.mxu1 }
 0x172   : > { %v2445_v39 = vadd.f32 %v2416_v35, %v2327_v13  ;;  %v2676_v55 = vadd.f32 %v3310_v62, %v2447_v8  ;;  %v2735_v31 = vmul.f32 %v2673_v15, %v2673_v15 }
 0x173   : > { %v3303_v45 = vpop.f32.mrf.mxu1 }
 0x174   : > { %v3165_v58 = vpack.c.bf16 %v2676_v55, %v2675_v11  ;;  %v2674_v22 = vadd.f32 %v2645_v2, %v2445_v39  ;;  %v2738_v7 = vmul.f32 %v2676_v55, %v2676_v55  ;;  %v2450_v17 = vadd.f32 %v3303_v45, %v2332_v27 }
 0x175   : > { %v2429_v16 = vpop.f32.mrf.mxu1 }
 0x176   : > { %3177 = vst [vmem:[%s4123_s11 + $0x8] sm:$0xff] %v3165_v58   ;;  %v3160_v4 = vpack.c.bf16 %v2674_v22, %v2673_v15  ;;  %v2721_v61 = vadd.f32 %v2674_v22, %v2673_v15  ;;  %v2736_v25 = vmul.f32 %v2674_v22, %v2674_v22  ;;  %v2448_v42 = vadd.f32 %v2429_v16, %v2330_v21 }
 0x177   : > { %v3304_v38 = vpop.f32.mrf.mxu1 }
 0x178   : > { %3161 = vst [vmem:[%s4123_s11] sm:$0xff] %v3160_v4   ;;  %v2743_v33 = vadd.f32 %v2736_v25, %v2735_v31  ;;  %v2722_v60 = vadd.f32 %v2721_v61, %v2675_v11  ;;  %v2451_v1 = vadd.f32 %v3304_v38, %v2333_v49 }
 0x179   : > { %v2432_v48 = vpop.f32.mrf.mxu1 }
 0x17a   : > { %v2744_v54 = vadd.f32 %v2743_v33, %v2737_v40  ;;  %v2723_v10 = vadd.f32 %v2722_v60, %v2676_v55  ;;  %v2449_v6 = vadd.f32 %v2432_v48, %v2331_v47 }
 0x17c   : > { %v2745_v28 = vadd.f32 %v2744_v54, %v2738_v7 }
 0x17d   : > { %v3313_v19 = vpop.f32.mrf.mxu0 }
 0x17e   : > { %v2679_v20 = vadd.f32 %v3313_v19, %v2450_v17 }
 0x17f   : > { %v2658_v51 = vpop.f32.mrf.mxu0 }
 0x180   : > { %v2677_v57 = vadd.f32 %v2658_v51, %v2448_v42  ;;  %v2741_v14 = vmul.f32 %v2679_v20, %v2679_v20 }
 0x181   : > { %v3314_v5 = vpop.f32.mrf.mxu0 }
 0x182   : > { %v2724_v56 = vadd.f32 %v2723_v10, %v2677_v57  ;;  %v2739_v37 = vmul.f32 %v2677_v57, %v2677_v57  ;;  %v2680_v32 = vadd.f32 %v3314_v5, %v2451_v1 }
 0x183   : > { %v2661_v23 = vpop.f32.mrf.mxu0 }
 0x184   : > { %v2746_v41 = vadd.f32 %v2745_v28, %v2739_v37  ;;  %v3175_v52 = vpack.c.bf16 %v2680_v32, %v2679_v20  ;;  %v2678_v63 = vadd.f32 %v2661_v23, %v2449_v6  ;;  %v2742_v62 = vmul.f32 %v2680_v32, %v2680_v32 }
 0x186   : > { %3179 = vst [vmem:[%s4123_s11 + $0x18] sm:$0xff] %v3175_v52   ;;  %v3170_v46 = vpack.c.bf16 %v2678_v63, %v2677_v57  ;;  %v2725_v3 = vadd.f32 %v2724_v56, %v2678_v63  ;;  %v2740_v24 = vmul.f32 %v2678_v63, %v2678_v63 }
 0x188   : > { %3178 = vst [vmem:[%s4123_s11 + $0x10] sm:$0xff] %v3170_v46   ;;  %v2726_v50 = vadd.f32 %v2725_v3, %v2679_v20  ;;  %v2747_v44 = vadd.f32 %v2746_v41, %v2740_v24 }
 0x18a   : > { %v2727_v13 = vadd.f32 %v2726_v50, %v2680_v32  ;;  %v2748_v8 = vadd.f32 %v2747_v44, %v2741_v14 }
 0x18c   : > { %v2728_v43 = vrot.slane %v2727_v13, 4  ;;  %v2749_v9 = vadd.f32 %v2748_v8, %v2742_v62 }
 0x18e   : > { %v2729_v34 = vadd.f32 %v2728_v43, %v2727_v13  ;;  %v2750_v35 = vrot.slane %v2749_v9, 4 }
 0x190   : > { %v2730_v2 = vrot.slane %v2729_v34, 2  ;;  %v2751_v11 = vadd.f32 %v2750_v35, %v2749_v9 }
 0x192   : > { %v2731_v15 = vadd.f32 %v2730_v2, %v2729_v34  ;;  %v2752_v39 = vrot.slane %v2751_v11, 2 }
 0x194   : > { %v2732_v55 = vrot.slane %v2731_v15, 1  ;;  %v2753_v53 = vadd.f32 %v2752_v39, %v2751_v11 }
 0x196   : > { %v2733_v59 = vadd.f32 %v2732_v55, %v2731_v15  ;;  %v2754_v45 = vrot.slane %v2753_v53, 1 }
 0x198   : > { %2734 = vst [vmem:[%s262_s15] sm:$0x1] %v2733_v59  ;;  %v2755_v58 = vadd.f32 %v2754_v45, %v2753_v53 }
 0x19a   : > { %2756 = vst [vmem:[%s262_s15 + $0x1] sm:$0x1] %v2755_v58 }
 0x19b PF: > { %s16_s20 = sadd.s32 1, %s3401_s20   ;;  %s4161_s18 = smov %s3397_s19 }
 0x19c   : > { %p13_p7 = scmp.ge.s32.totalorder %s16_s20, 4   ;;  %s4162_s19 = smov %s4164_s21 }
 0x19e   :  { %15 = sbr.rel (!%p13_p7) target bundleno = 2 (0x2), region = 93 }

// kernel: basic_block_forward.5
= control target key start
LH: loop header
LB: loop body
LE: loop exit
PB: predicated region body
PF: predicated region fallthrough
CT: control target
= control target key end

     0   :  { %s3135_s27 = smov 0   ;;  %s3137_s28 = smov 0   ;;  %s3931_s0 = inlined_call_operand.vmem [shape: bf16[2,10,10,128], index: 0, kind: input, shape index: {}]   ;;  %s3932_s1 = inlined_call_operand.vmem [shape: f32[1,128], index: 1, kind: input, shape index: {}]   ;;  %s3933_s2 = inlined_call_operand.vmem [shape: f32[1,128], index: 2, kind: input, shape index: {}]   ;;  %s3934_s3 = inlined_call_operand.vmem [shape: bf16[1152,128], index: 3, kind: input, shape index: {}]   ;;  %s3935_s4 = inlined_call_operand.vmem [shape: f32[128,8], index: 4, kind: input, shape index: {}]   ;;  %s3936_s5 = inlined_call_operand.vmem [shape: f32[1,8], index: 5, kind: input, shape index: {}]   ;;  %s3937_s6 = inlined_call_operand.vmem [shape: f32[1,8], index: 6, kind: input, shape index: {}]   ;;  %s3938_s7 = inlined_call_operand.vmem [shape: bf16[8,128], index: 7, kind: input, shape index: {}]   ;;  %s3939_s8 = inlined_call_operand.vmem [shape: f32[128,128], index: 8, kind: output, shape index: {}]  }
   0x1   :  { %s3139_s29 = smov 0  }
   0x2 LB: > { %s30_s30 = sadd.s32 1, %s3083_s28  ;;  %p2557_p0 = scmp.ge.s32.totalorder %s3087_s29, 1  ;;  %s3087_s29 = sphi %s3139_s29, %s18_s29   ;;  %s3083_s28 = sphi %s3137_s28, %s3966_s28   ;;  %s3079_s27 = sphi %s3135_s27, %s3965_s27  }
   0x3   : > { %p32_p1 = scmp.ge.s32.totalorder %s30_s30, 2  ;;  %p291_p2 = scmp.lt.s32.totalorder %s3087_s29, 3 }
   0x5   : > { %s3968_s30 = smov (%p32_p1, %s30_s30), 0  ;;  %p292_p3 = pnand %p2557_p0, %p291_p2 }
   0x7   : > { %295 = sbr.rel (%p292_p3) target bundleno = 366 (0x16e), region = 52 }
   0xc   : > { %v2979_v0 = vld [vmem:[%s3934_s3 + $0xf8] sm:$0xff]   ;;  %v2981_v2 = vld [vmem:[%s3934_s3 + $0xf0] sm:$0xff]   ;;  %v3089_v3 = vmov 0.0|0.0   ;;  %v2985_v9 = vld [vmem:[%s3934_s3 + $0xe8] sm:$0xff]   ;;  %p332_p4 = scmp.lt.s32.totalorder %s3079_s27, 1  ;;  %v358_v30 = vlaneseq  ;;  %vm874_vm5 = vcmask 1042432  }
   0xd   : > { %v2980_v1 = vld [vmem:[%s3934_s3 + $0xb8] sm:$0xff]   ;;  %2741 = vmatprep.subr.bf16.mxu0 %v2979_v0  ;;  %v2565_v4 = vcombine.low %v3089_v3, %v3089_v3  ;;  %v2566_v5 = vcombine.high %v3089_v3, %v3089_v3  ;;  %v2983_v7 = vld [vmem:[%s3934_s3 + $0xb0] sm:$0xff]   ;;  %v2987_v11 = vld [vmem:[%s3934_s3 + $0xa8] sm:$0xff]   ;;  %vm875_vm6 = vcmask 1046532   ;;  %vm663_vm7 = vsmask.f32 3328 }
   0xe   : > { %2742 = vmatpush3.bf16.msra.mxu0 %v2980_v1  ;;  %v2982_v6 = vld [vmem:[%s3934_s3 + $0x78] sm:$0xff]   ;;  %v2986_v10 = vld [vmem:[%s3934_s3 + $0x70] sm:$0xff]   ;;  %v2989_v13 = vld [vmem:[%s3934_s3 + $0xe0] sm:$0xff]   ;;  %s333_s13 = scalar_select %p332_p4, %s3079_s27, 1  ;;  %v3252_v34 = vshrl.u32 %v358_v30, 7 }
   0xf   : > { %2743 = vmatprep.subr.bf16.mxu0 %v2981_v2  ;;  %627 = vst [vmem:[#allocation2] sm:$0xf] %v2565_v4  ;;  %628 = vst [vmem:[#allocation2 + $0x4] sm:$0x1] %v2566_v5  ;;  %2781 = vmatprep.subr.bf16.mxu1 %v2982_v6  ;;  %v2984_v8 = vld [vmem:[%s3934_s3 + $0x38] sm:$0xff]   ;;  %v2988_v12 = vld [vmem:[%s3934_s3 + $0x30] sm:$0xff]  }
  0x10   : > { %645 = vst [vmem:[#allocation2 + $0x48] sm:$0xf] %v2565_v4  ;;  %646 = vst [vmem:[#allocation2 + $0x4c] sm:$0x1] %v2566_v5  ;;  %2782 = vmatpush3.bf16.msra.mxu1 %v2984_v8  ;;  %v2990_v14 = vld [vmem:[%s3934_s3 + $0x68] sm:$0xff]   ;;  %v2991_v15 = vld [vmem:[%s3934_s3 + $0xa0] sm:$0xff]  }
  0x11   : > { %2783 = vmatprep.subr.bf16.mxu1 %v2986_v10  ;;  %v2992_v16 = vld [vmem:[%s3934_s3 + $0x28] sm:$0xff]   ;;  %v2993_v17 = vld [vmem:[%s3934_s3 + $0xd8] sm:$0xff]   ;;  %v2994_v18 = vld [vmem:[%s3934_s3 + $0x60] sm:$0xff]   ;;  %s2953_s22 = smul.u32 80, %s333_s13  ;;  %v3272_v45 = vadd.s32 8, %v3252_v34  ;;  %vm515_vm0 = vcmp.ge.s32.totalorder %v3252_v34, 1 }
  0x12   : > { %2744 = vmatpush3.bf16.msra.mxu0 %v2983_v7  ;;  %v2995_v19 = vld [vmem:[%s3934_s3 + $0x98] sm:$0xff]   ;;  %v2996_v20 = vld [vmem:[%s3934_s3 + $0x20] sm:$0xff]   ;;  %v2997_v21 = vld [vmem:[%s3934_s3 + $0xd0] sm:$0xff]   ;;  %vm664_vm8 = vsmask.f32 7440  ;;  %s2559_s17 = sshll.u32 %s3079_s27, 3 }
  0x13   : > { %2745 = vmatprep.subr.bf16.mxu0 %v2985_v9  ;;  %v2998_v22 = vld [vmem:[%s3934_s3 + $0x58] sm:$0xff]   ;;  %v2999_v23 = vld [vmem:[%s3934_s3 + $0x90] sm:$0xff]   ;;  %v3001_v25 = vld [vmem:[%s3934_s3 + $0xc8] sm:$0xff]   ;;  %s3244_s15 = scalar_lea.vmem %s3931_s0, %s2953_s22  ;;  %vm522_vm3 = vcmp.lt.s32.totalorder %v3272_v45, 9  ;;  %p3677_p5 = scmp.lt.s32.totalorder %s2559_s17, 15 }
  0x14   : > { %2784 = vmatpush3.bf16.msra.mxu1 %v2988_v12  ;;  %v3000_v24 = vld [vmem:[%s3934_s3 + $0x18] sm:$0xff]   ;;  %v3002_v26 = vld [vmem:[%s3934_s3 + $0x50] sm:$0xff]   ;;  %v3003_v27 = vld [vmem:[%s3934_s3 + $0x88] sm:$0xff]  }
  0x15   : > { %2785 = vmatprep.subr.bf16.mxu1 %v2990_v14  ;;  %v3004_v28 = vld [vmem:[%s3934_s3 + $0x10] sm:$0xff]   ;;  %v3005_v29 = vld [vmem:[%s3934_s3 + $0xc0] sm:$0xff]   ;;  %v3006_v31 = vld [vmem:[%s3934_s3 + $0x48] sm:$0xff]   ;;  %s3970_s17 = smov (!%p3677_p5, %s2559_s17), 15 }
  0x16   : > { %2746 = vmatpush3.bf16.msra.mxu0 %v2987_v11  ;;  %v3007_v32 = vld [vmem:[%s3934_s3 + $0x80] sm:$0xff]   ;;  %v3008_v33 = vld [vmem:[%s3934_s3 + $0x8] sm:$0xff]   ;;  %v3011_v47 = vld [vmem:[%s3934_s3 + $0x178] sm:$0xff]   ;;  %s2560_s9 = sshll.u32 %s3970_s17, 3 }
  0x17   : > { %2747 = vmatprep.subr.bf16.mxu0 %v2989_v13  ;;  %v363_v35 = vld [vmem:[%s3244_s15 + $0x8] ss:$8 sps:$4 sm:$0xff]   ;;  %v3258_v36 = vld [vmem:[%s3932_s1] ss:$0 sm:$0xff]  ;;  %v364_v39 = vld [vmem:[%s3244_s15 + $0xc] sm:$0x1]  ;;  %s3737_s14 = scalar_lea.vmem %s3935_s4, %s2560_s9 }
  0x18   : > { %2786 = vmatpush3.bf16.msra.mxu1 %v2992_v16  ;;  %v383_v37 = vunpack.c.l.bf16 %v363_v35  ;;  %v385_v38 = vunpack.c.h.bf16 %v363_v35  ;;  %v3264_v40 = vld [vmem:[%s3933_s2] ss:$0 sm:$0xff]  ;;  %v384_v41 = vunpack.c.l.bf16 %v364_v39  ;;  %v655_v63 = vld [vmem:[#allocation2 + $0x4] sm:$0x1]  ;;  %v3015_v1 = vld [vmem:[%s3934_s3 + $0x1f8] sm:$0xff]  }
  0x19   : > { %2787 = vmatprep.subr.bf16.mxu1 %v2994_v18  ;;  %v3010_v44 = vld [vmem:[%s3934_s3 + $0x40] sm:$0xff]   ;;  %v676_v8 = vshll.u32 %v655_v63, 16  ;;  %v366_v12 = vld [vmem:[%s3244_s15 + $0x14] sm:$0x1]  ;;  %v368_v13 = vld [vmem:[%s3244_s15 + $0x1c] sm:$0x1] }
  0x1a   : > { %2748 = vmatpush3.bf16.msra.mxu0 %v2991_v15  ;;  %v410_v42 = vmul.f32 %v3258_v36, %v383_v37  ;;  %v412_v43 = vmul.f32 %v3258_v36, %v385_v38  ;;  %v411_v46 = vmul.f32 %v3258_v36, %v384_v41  ;;  %v3012_v50 = vld [vmem:[%s3934_s3] sm:$0xff]   ;;  %v386_v15 = vunpack.c.l.bf16 %v366_v12  ;;  %vm3308_vm9 = vmor %vm874_vm5, %vm875_vm6 }
  0x1b   : > { %2749 = vmatprep.subr.bf16.mxu0 %v2993_v17  ;;  %v3285_v52 = vld [vmem:[#allocation2] sm:$0xf]  ;;  %v388_v16 = vunpack.c.l.bf16 %v368_v13  ;;  %vm3312_vm10 = vmor %vm663_vm7, %vm664_vm8  ;;  %vm2388_vm8 = vcmask 1043456  }
  0x1c   : > { %2788 = vmatpush3.bf16.msra.mxu1 %v2996_v20  ;;  %v437_v48 = vadd.f32 %v3264_v40, %v410_v42  ;;  %v439_v49 = vadd.f32 %v3264_v40, %v412_v43  ;;  %v438_v51 = vadd.f32 %v3264_v40, %v411_v46  ;;  %v667_v56 = vshrl.u32 %v3285_v52, 16  ;;  %v850_v7 = vld [vmem:[#allocation2] sm:$0xe]  ;;  %v3013_v43 = vld [vmem:[%s3934_s3 + $0x138] sm:$0xff]  }
  0x1d   : > { %2789 = vmatprep.subr.bf16.mxu1 %v2998_v22  ;;  %v670_v59 = vshll.u32 %v3285_v52, 16  ;;  %v367_v9 = vld [vmem:[%s3244_s15 + $0x18] ss:$8 sps:$4 sm:$0xff]   ;;  %v879_v20 = vrot.slane %v655_v63, 5  ;;  %v415_v22 = vmul.f32 %v3258_v36, %v388_v16  ;;  %v3021_v16 = vld [vmem:[%s3934_s3 + $0x1f0] sm:$0xff]  }
  0x1e   : > { %2750 = vmatpush3.bf16.msra.mxu0 %v2995_v19  ;;  %vm457_vm1 = vcmp.gt.f32.partialorder %v437_v48, 0.0  ;;  %vm459_vm2 = vcmp.gt.f32.partialorder %v439_v49, 0.0  ;;  %v477_v53 = vmul.f32 0.1, %v437_v48  ;;  %v479_v54 = vmul.f32 0.1, %v439_v49 }
  0x1f   : > { %2751 = vmatprep.subr.bf16.mxu0 %v2997_v21  ;;  %vm458_vm4 = vcmp.gt.f32.partialorder %v438_v51, 0.0  ;;  %v478_v55 = vmul.f32 0.1, %v438_v51  ;;  %v669_v0 = vrot.slane %v667_v56, 4  ;;  %v672_v5 = vrot.slane %v670_v59, 5 }
  0x20   : > { %2790 = vmatpush3.bf16.msra.mxu1 %v3000_v24  ;;  %v497_v57 = vsel %vm457_vm1, %v437_v48, %v477_v53  ;;  %v499_v58 = vsel %vm459_vm2, %v439_v49, %v479_v54  ;;  %v387_v10 = vunpack.c.l.bf16 %v367_v9  ;;  %v389_v11 = vunpack.c.h.bf16 %v367_v9 }
  0x21   : > { %2791 = vmatprep.subr.bf16.mxu1 %v3002_v26  ;;  %v529_v60 = vsel %vm515_vm0, %v497_v57, 0.0  ;;  %v531_v61 = vsel %vm515_vm0, %v499_v58, 0.0  ;;  %v498_v62 = vsel %vm458_vm4, %v438_v51, %v478_v55  ;;  %v673_v14 = vor.u32 %v672_v5, %v669_v0  ;;  %v3018_v5 = vld [vmem:[%s3934_s3 + $0x1b8] sm:$0xff]  }
  0x22   : > { %2752 = vmatpush3.bf16.msra.mxu0 %v2999_v23  ;;  %v2725_v2 = vpack.c.bf16 %v529_v60, %v529_v60  ;;  %v2727_v3 = vpack.c.bf16 %v531_v61, %v531_v61  ;;  %v530_v4 = vsel %vm522_vm3, %v498_v62, 0.0  ;;  %v414_v17 = vmul.f32 %v3258_v36, %v387_v10  ;;  %v371_v10 = vld [vmem:[%s3244_s15 + $0x28] ss:$8 sps:$4 sm:$0xff]  }
  0x23   : > { %2753 = vmatprep.subr.bf16.mxu0 %v3001_v25  ;;  %v2726_v6 = vpack.c.bf16 %v530_v4, %v530_v4  ;;  %v416_v18 = vmul.f32 %v3258_v36, %v389_v11  ;;  %v2593_v19 = vrot.slane %v850_v7, 9  ;;  %v413_v21 = vmul.f32 %v3258_v36, %v386_v15  ;;  %v370_v11 = vld [vmem:[%s3244_s15 + $0x24] sm:$0x1] }
  0x24   : > { %2792 = vmatpush3.bf16.msra.mxu1 %v3004_v28  ;;  %629 = vst [vmem:[#allocation2 + $0x8] sm:$0xf] %v2725_v2  ;;  %631 = vst [vmem:[#allocation2 + $0x10] sm:$0xf] %v2727_v3  ;;  %v3316_v25 = vrot.slane %v673_v14, 4  ;;  %v3318_v26 = vrot.slane %v676_v8, 5  ;;  %v442_v37 = vadd.f32 %v3264_v40, %v415_v22 }
  0x25   : > { %2793 = vmatprep.subr.bf16.mxu1 %v3006_v31  ;;  %630 = vst [vmem:[#allocation2 + $0xc] sm:$0x1] %v2726_v6  ;;  %v443_v28 = vadd.f32 %v3264_v40, %v416_v18  ;;  %v440_v35 = vadd.f32 %v3264_v40, %v413_v21  ;;  %v372_v18 = vld [vmem:[%s3244_s15 + $0x2c] sm:$0x1] }
  0x26   : > { %2754 = vmatpush3.bf16.msra.mxu0 %v3003_v27  ;;  %v441_v27 = vadd.f32 %v3264_v40, %v414_v17  ;;  %vm462_vm14 = vcmp.gt.f32.partialorder %v442_v37, 0.0  ;;  %v482_v63 = vmul.f32 0.1, %v442_v37  ;;  %v3022_v21 = vld [vmem:[%s3934_s3 + $0x128] sm:$0xff]  }
  0x27   : > { %2755 = vmatprep.subr.bf16.mxu0 %v3005_v29  ;;  %vm463_vm12 = vcmp.gt.f32.partialorder %v443_v28, 0.0  ;;  %v483_v56 = vmul.f32 0.1, %v443_v28  ;;  %vm460_vm13 = vcmp.gt.f32.partialorder %v440_v35, 0.0  ;;  %v480_v59 = vmul.f32 0.1, %v440_v35 }
  0x28   : > { %2794 = vmatpush3.bf16.msra.mxu1 %v3008_v33  ;;  %vm461_vm11 = vcmp.gt.f32.partialorder %v441_v27, 0.0  ;;  %v481_v51 = vmul.f32 0.1, %v441_v27  ;;  %v502_v7 = vsel %vm462_vm14, %v442_v37, %v482_v63 }
  0x29   : > { %2795 = vmatprep.subr.bf16.mxu1 %v3010_v44  ;;  %v679_v44 = vsel %vm3312_vm10, %v3316_v25, %v3318_v26  ;;  %v503_v61 = vsel %vm463_vm12, %v443_v28, %v483_v56  ;;  %v500_v4 = vsel %vm460_vm13, %v440_v35, %v480_v59  ;;  %v534_v13 = vsel %vm522_vm3, %v502_v7, 0.0  ;;  %v3025_v35 = vld [vmem:[%s3934_s3 + $0x1e8] sm:$0xff]  }
  0x2a   : > { %2756 = vmatpush3.bf16.msra.mxu0 %v3007_v32  ;;  %v880_v32 = vsel %vm3308_vm9, %v2593_v19, %v879_v20  ;;  %v501_v58 = vsel %vm461_vm11, %v441_v27, %v481_v51  ;;  %v535_v2 = vsel %vm515_vm0, %v503_v61, 0.0  ;;  %v532_v8 = vsel %vm522_vm3, %v500_v4, 0.0  ;;  %v3024_v27 = vld [vmem:[%s3934_s3 + $0x160] sm:$0xff]  }
  0x2b   : > { %2821 = vmatprep.subr.bf16.mxu0 %v3011_v47  ;;  %v3009_v29 = vld [vmem:[#allocation2 + $0x8] ss:$8 sps:$4 sm:$0xff]   ;;  %v533_v62 = vsel %vm515_vm0, %v501_v58, 0.0  ;;  %v2731_v6 = vpack.c.bf16 %v535_v2, %v535_v2  ;;  %v2728_v14 = vpack.c.bf16 %v532_v8, %v532_v8  ;;  %v2730_v20 = vpack.c.bf16 %v534_v13, %v534_v13  ;;  %v3031_v58 = vld [vmem:[%s3934_s3 + $0x1e0] sm:$0xff]  }
  0x2c   : > { %2796 = vmatpush3.bf16.msra.mxu1 %v3012_v50  ;;  %v656_v30 = vld [vmem:[#allocation2 + $0xc] sm:$0x1]  ;;  %v851_v31 = vld [vmem:[#allocation2 + $0x8] sm:$0xe]  ;;  %1118 = vmatprep.mubr.bf16.mxu0 %v3009_v29  ;;  %v3014_v47 = vld [vmem:[%s3934_s3 + $0x170] sm:$0xff]   ;;  %v2729_v3 = vpack.c.bf16 %v533_v62, %v533_v62  ;;  %v391_v25 = vunpack.c.l.bf16 %v371_v10  ;;  %v393_v28 = vunpack.c.h.bf16 %v371_v10  ;;  %v390_v29 = vunpack.c.l.bf16 %v370_v11 }
  0x2d   : > { %2861 = vmatprep.subr.bf16.mxu1 %v3015_v1  ;;  %v3324_v33 = vld [vmem:[#allocation2 + $0x8] sm:$0xf]  ;;  %v2594_v38 = vrot.slane %v851_v31, 9  ;;  %v883_v39 = vrot.slane %v656_v30, 5  ;;  %v690_v46 = vshll.u32 %v656_v30, 16  ;;  %v3017_v1 = vld [vmem:[%s3934_s3 + $0x130] sm:$0xff]   ;;  %v392_v30 = vunpack.c.l.bf16 %v372_v18 }
  0x2e   : > { %v681_v41 = vshrl.u32 %v3324_v33, 16  ;;  %v684_v42 = vshll.u32 %v3324_v33, 16  ;;  %v3342_v53 = vld [vmem:[#allocation2 + $0x10] sm:$0xf]  ;;  %v2585_v60 = vcombine.low %v3285_v52, %v3324_v33  ;;  %v3020_v52 = vld [vmem:[%s3934_s3 + $0x168] sm:$0xff]   ;;  %v420_v37 = vmul.f32 %v3258_v36, %v393_v28 }
  0x2f   : > { %v884_v48 = vsel %vm3308_vm9, %v2594_v38, %v883_v39  ;;  %v692_v55 = vrot.slane %v690_v46, 5  ;;  %v695_v9 = vshrl.u32 %v3342_v53, 16  ;;  %633 = vst [vmem:[#allocation2 + $0x18] sm:$0xf] %v2729_v3  ;;  %v3370_v15 = vld [vmem:[#allocation2 + $0x10] sm:$0xe]  ;;  %v417_v38 = vmul.f32 %v3258_v36, %v390_v29 }
  0x30   : > { %v683_v49 = vrot.slane %v681_v41, 4  ;;  %v686_v50 = vrot.slane %v684_v42, 5  ;;  %v2601_v54 = vcombine.low %v880_v32, %v884_v48  ;;  %v698_v17 = vshll.u32 %v3342_v53, 16  ;;  %635 = vst [vmem:[#allocation2 + $0x20] sm:$0xf] %v2731_v6  ;;  %v3023_v31 = vld [vmem:[%s3934_s3 + $0x1b0] sm:$0xff]  }
  0x31   : > { %v697_v22 = vrot.slane %v695_v9, 4  ;;  %632 = vst [vmem:[#allocation2 + $0x14] sm:$0x1] %v2728_v14  ;;  %634 = vst [vmem:[#allocation2 + $0x1c] sm:$0x1] %v2730_v20  ;;  %v418_v32 = vmul.f32 %v3258_v36, %v391_v25  ;;  %v419_v39 = vmul.f32 %v3258_v36, %v392_v30  ;;  %v2595_v41 = vrot.slane %v3370_v15, 9 }
  0x32   : > { %v687_v57 = vor.u32 %v686_v50, %v683_v49  ;;  %1119 = vmatmul.mubr.bf16.vlgmr.msra.gmra.mxu0 %v2601_v54  ;;  %v700_v26 = vrot.slane %v698_v17, 5  ;;  %v3027_v42 = vld [vmem:[%s3934_s3 + $0x120] sm:$0xff]   ;;  %v447_v46 = vadd.f32 %v3264_v40, %v420_v37  ;;  %v3030_v49 = vld [vmem:[%s3934_s3 + $0x158] sm:$0xff]   ;;  %v3028_v54 = vld [vmem:[%s3934_s3 + $0x1a8] sm:$0xff]  }
  0x33   : > { %2822 = vmatpush3.bf16.msra.mxu0 %v3013_v43  ;;  %v445_v43 = vadd.f32 %v3264_v40, %v418_v32  ;;  %v3403_v48 = vadd.f32 %v3264_v40, %v419_v39  ;;  %v3034_v9 = vld [vmem:[%s3934_s3 + $0x150] sm:$0xff]   ;;  %v3033_v14 = vld [vmem:[%s3934_s3 + $0x1a0] sm:$0xff]   ;;  %v376_v37 = vld [vmem:[%s3244_s15 + $0x3c] sm:$0x1] }
  0x34   : > { %v688_v0 = vrot.slane %v687_v57, 4  ;;  %2823 = vmatprep.subr.bf16.mxu0 %v3014_v47  ;;  %v701_v33 = vor.u32 %v700_v26, %v697_v22  ;;  %v444_v47 = vadd.f32 %v3264_v40, %v417_v38  ;;  %vm467_vm1 = vcmp.gt.f32.partialorder %v447_v46, 0.0  ;;  %v375_v28 = vld [vmem:[%s3244_s15 + $0x38] ss:$8 sps:$4 sm:$0xff]   ;;  %v3040_v38 = vld [vmem:[%s3934_s3 + $0x148] sm:$0xff]  }
  0x35   : > { %vm465_vm15 = vcmp.gt.f32.partialorder %v445_v43, 0.0  ;;  %vm466_vm4 = vcmp.gt.f32.partialorder %v3403_v48, 0.0  ;;  %v485_v4 = vmul.f32 0.1, %v445_v43  ;;  %v487_v7 = vmul.f32 0.1, %v447_v46 }
  0x36   : > { %v693_v12 = vsel %vm3312_vm10, %v688_v0, %v692_v55  ;;  %v853_v50 = vld [vmem:[#allocation2 + $0x18] sm:$0xe]  ;;  %vm464_vm2 = vcmp.gt.f32.partialorder %v444_v47, 0.0  ;;  %v484_v8 = vmul.f32 0.1, %v444_v47 }
  0x37   : > { %v2589_v19 = vcombine.low %v679_v44, %v693_v12  ;;  %2824 = vmatpush3.bf16.msra.mxu0 %v3017_v1  ;;  %v3398_v44 = vrot.slane %v701_v33, 4  ;;  %v3408_v51 = vld [vmem:[#allocation2 + $0x18] sm:$0xf]  ;;  %v2596_v56 = vrot.slane %v853_v50, 9  ;;  %v505_v13 = vsel %vm465_vm15, %v445_v43, %v485_v4  ;;  %v3433_v15 = vld [vmem:[#allocation2 + $0x20] sm:$0xf] }
  0x38   : > { %2825 = vmatprep.subr.bf16.mxu0 %v3020_v52  ;;  %v3019_v55 = vld [vmem:[#allocation2 + $0x18] ss:$8 sps:$4 sm:$0xff]   ;;  %v709_v57 = vshrl.u32 %v3408_v51, 16  ;;  %v657_v59 = vld [vmem:[#allocation2 + $0x14] sm:$0x1]  ;;  %v537_v20 = vsel %vm515_vm0, %v505_v13, 0.0  ;;  %v2586_v29 = vcombine.low %v3342_v53, %v3408_v51 }
  0x39   : > { %1279 = vmatprep.mubr.bf16.mxu1 %v2589_v19  ;;  %1126 = vmatprep.mubr.bf16.mxu0 %v3019_v55  ;;  %v658_v61 = vld [vmem:[#allocation2 + $0x1c] sm:$0x1]  ;;  %v887_v62 = vrot.slane %v657_v59, 5  ;;  %v704_v63 = vshll.u32 %v657_v59, 16  ;;  %v507_v19 = vsel %vm467_vm1, %v447_v46, %v487_v7  ;;  %v2733_v26 = vpack.c.bf16 %v537_v20, %v537_v20  ;;  %v3043_v59 = vld [vmem:[%s3934_s3 + $0x190] sm:$0xff]  }
  0x3a   : > { %1280 = vmatmul.mubr.bf16.vlgmr.msra.gmra.mxu1 %v2585_v60  ;;  %v712_v60 = vshll.u32 %v3408_v51, 16  ;;  %v711_v0 = vrot.slane %v709_v57, 4  ;;  %v891_v1 = vrot.slane %v658_v61, 5  ;;  %v718_v3 = vshll.u32 %v658_v61, 16  ;;  %v3032_v52 = vld [vmem:[%s3934_s3 + $0x118] sm:$0xff]  }
  0x3b   : > { %2862 = vmatpush3.bf16.msra.mxu1 %v3018_v5  ;;  %2826 = vmatpush3.bf16.msra.mxu0 %v3022_v21  ;;  %v888_v5 = vsel %vm3308_vm9, %v2595_v41, %v887_v62  ;;  %v706_v6 = vrot.slane %v704_v63, 5  ;;  %v3037_v21 = vld [vmem:[%s3934_s3 + $0x110] sm:$0xff]   ;;  %v539_v25 = vsel %vm515_vm0, %v507_v19, 0.0  ;;  %v723_v32 = vshrl.u32 %v3433_v15, 16  ;;  %v3038_v33 = vld [vmem:[%s3934_s3 + $0x198] sm:$0xff]   ;;  %v3044_v63 = vld [vmem:[%s3934_s3 + $0x140] sm:$0xff]  }
  0x3c   : > { %2863 = vmatprep.subr.bf16.mxu1 %v3021_v16  ;;  %2827 = vmatprep.subr.bf16.mxu0 %v3024_v27  ;;  %v714_v2 = vrot.slane %v712_v60, 5  ;;  %v892_v10 = vsel %vm3308_vm9, %v2596_v56, %v891_v1  ;;  %v720_v12 = vrot.slane %v718_v3, 5  ;;  %v3035_v16 = vld [vmem:[%s3934_s3 + $0x1d8] sm:$0xff]   ;;  %v486_v27 = vmul.f32 0.1, %v3403_v48  ;;  %v3042_v56 = vld [vmem:[%s3934_s3 + $0x108] sm:$0xff]  }
  0x3d   : > { %v2602_v17 = vcombine.low %v888_v5, %v892_v10  ;;  %v707_v18 = vsel %vm3312_vm10, %v3398_v44, %v706_v6  ;;  %v2735_v30 = vpack.c.bf16 %v539_v25, %v539_v25  ;;  %637 = vst [vmem:[#allocation2 + $0x28] sm:$0xf] %v2733_v26  ;;  %v726_v43 = vshll.u32 %v3433_v15, 16  ;;  %v3041_v44 = vld [vmem:[%s3934_s3 + $0x1d0] sm:$0xff]   ;;  %v3047_v6 = vld [vmem:[%s3934_s3 + $0x100] sm:$0xff]  }
  0x3e   : > { %v715_v11 = vor.u32 %v714_v2, %v711_v0  ;;  %v506_v53 = vsel %vm466_vm4, %v3403_v48, %v486_v27  ;;  %v725_v50 = vrot.slane %v723_v32, 4  ;;  %v397_v55 = vunpack.c.h.bf16 %v375_v28  ;;  %v3045_v2 = vld [vmem:[%s3934_s3 + $0x1c8] sm:$0xff]   ;;  %v3049_v27 = vld [vmem:[%s3934_s3 + $0x1c0] sm:$0xff]  }
  0x3f   : > { %2864 = vmatpush3.bf16.msra.mxu1 %v3023_v31  ;;  %2828 = vmatpush3.bf16.msra.mxu0 %v3027_v42  ;;  %v504_v31 = vsel %vm464_vm2, %v444_v47, %v484_v8  ;;  %v3470_v42 = vld [vmem:[#allocation2 + $0x20] sm:$0xe]  ;;  %639 = vst [vmem:[#allocation2 + $0x30] sm:$0xf] %v2735_v30  ;;  %v538_v47 = vsel %vm522_vm3, %v506_v53, 0.0  ;;  %v728_v51 = vrot.slane %v726_v43, 5 }
  0x40   : > { %2865 = vmatprep.subr.bf16.mxu1 %v3025_v35  ;;  %2829 = vmatprep.subr.bf16.mxu0 %v3030_v49  ;;  %v716_v22 = vrot.slane %v715_v11, 4  ;;  %v374_v35 = vld [vmem:[%s3244_s15 + $0x34] sm:$0x1]  ;;  %v536_v41 = vsel %vm522_vm3, %v504_v31, 0.0  ;;  %v2734_v48 = vpack.c.bf16 %v538_v47, %v538_v47  ;;  %v424_v62 = vmul.f32 %v3258_v36, %v397_v55  ;;  %v3524_v31 = vld [vmem:[%s3934_s3 + $0x238] sm:$0xff]  }
  0x41   : > { %1127 = vmatmul.mubr.bf16.gmra.mxu0 %v2602_v17  ;;  %v2732_v49 = vpack.c.bf16 %v536_v41, %v536_v41  ;;  %v394_v57 = vunpack.c.l.bf16 %v374_v35  ;;  %v729_v60 = vor.u32 %v728_v51, %v725_v50  ;;  %v2597_v0 = vrot.slane %v3470_v42, 9  ;;  %v1315_v50 = vld [vmem:[#allocation2 + $0x14] sm:$0x1] }
  0x42   : > { %v721_v39 = vsel %vm3312_vm10, %v716_v22, %v720_v12  ;;  %638 = vst [vmem:[#allocation2 + $0x2c] sm:$0x1] %v2734_v48  ;;  %vm2375_vm15 = vcmask 64512  }
  0x43   : > { %2866 = vmatpush3.bf16.msra.mxu1 %v3028_v54  ;;  %2830 = vmatpush3.bf16.msra.mxu0 %v3032_v52  ;;  %v2590_v46 = vcombine.low %v707_v18, %v721_v39  ;;  %v395_v54 = vunpack.c.l.bf16 %v375_v28  ;;  %636 = vst [vmem:[#allocation2 + $0x24] sm:$0x1] %v2732_v49  ;;  %v421_v1 = vmul.f32 %v3258_v36, %v394_v57  ;;  %v3494_v3 = vrot.slane %v729_v60, 4  ;;  %v1313_v49 = vld [vmem:[#allocation2 + $0xc] sm:$0x1] }
  0x44   : > { %2867 = vmatprep.subr.bf16.mxu1 %v3031_v58  ;;  %2831 = vmatprep.subr.bf16.mxu0 %v3034_v9  ;;  %v396_v58 = vunpack.c.l.bf16 %v376_v37  ;;  %v451_v52 = vadd.f32 %v3264_v40, %v424_v62  ;;  %v855_v7 = vld [vmem:[#allocation2 + $0x28] sm:$0xe]  ;;  %v1441_v60 = vld [vmem:[#allocation2 + $0x10] sm:$0xe] }
  0x45   : > { %1287 = vmatprep.mubr.bf16.mxu1 %v2590_v46  ;;  %v422_v61 = vmul.f32 %v3258_v36, %v395_v54  ;;  %v3502_v8 = vld [vmem:[#allocation2 + $0x28] sm:$0xf]  ;;  %v3505_v9 = vadd.f32 %v3264_v40, %v421_v1  ;;  %v2598_v11 = vrot.slane %v855_v7, 9  ;;  %v1352_v7 = vshll.u32 %v1315_v50, 16 }
  0x46   : > { %1288 = vmatmul.mubr.bf16.gmra.mxu1 %v2586_v29  ;;  %v423_v5 = vmul.f32 %v3258_v36, %v396_v58  ;;  %v3029_v10 = vld [vmem:[#allocation2 + $0x28] ss:$8 sps:$4 sm:$0xff]   ;;  %v737_v12 = vshrl.u32 %v3502_v8, 16  ;;  %v740_v13 = vshll.u32 %v3502_v8, 16  ;;  %vm471_vm6 = vcmp.gt.f32.partialorder %v451_v52, 0.0 }
  0x47   : > { %2868 = vmatpush3.bf16.msra.mxu1 %v3033_v14  ;;  %2832 = vmatpush3.bf16.msra.mxu0 %v3037_v21  ;;  %v449_v4 = vadd.f32 %v3264_v40, %v422_v61  ;;  %v3048_v14 = vld [vmem:[%s3934_s3 + $0x188] sm:$0xff]   ;;  %v491_v18 = vmul.f32 0.1, %v451_v52  ;;  %vm468_vm7 = vcmp.gt.f32.partialorder %v3505_v9, 0.0  ;;  %v3534_v43 = vld [vmem:[#allocation2 + $0x30] sm:$0xe] }
  0x48   : > { %2869 = vmatprep.subr.bf16.mxu1 %v3035_v16  ;;  %2833 = vmatprep.subr.bf16.mxu0 %v3040_v38  ;;  %v739_v17 = vrot.slane %v737_v12, 4  ;;  %v450_v19 = vadd.f32 %v3264_v40, %v423_v5  ;;  %v742_v25 = vrot.slane %v740_v13, 5  ;;  %v3530_v38 = vld [vmem:[#allocation2 + $0x30] sm:$0xf]  ;;  %v488_v48 = vmul.f32 0.1, %v3505_v9 }
  0x49   : > { %vm469_vm5 = vcmp.gt.f32.partialorder %v449_v4, 0.0  ;;  %v489_v36 = vmul.f32 0.1, %v449_v4  ;;  %1134 = vmatprep.mubr.bf16.mxu0 %v3029_v10  ;;  %v660_v20 = vld [vmem:[#allocation2 + $0x2c] sm:$0x1]  ;;  %v511_v30 = vsel %vm471_vm6, %v451_v52, %v491_v18  ;;  %v751_v54 = vshrl.u32 %v3530_v38, 16 }
  0x4a   : > { %v659_v16 = vld [vmem:[#allocation2 + $0x24] sm:$0x1]  ;;  %v899_v28 = vrot.slane %v660_v20, 5  ;;  %v746_v29 = vshll.u32 %v660_v20, 16  ;;  %v743_v35 = vor.u32 %v742_v25, %v739_v17  ;;  %v543_v37 = vsel %vm515_vm0, %v511_v30, 0.0 }
  0x4b   : > { %2870 = vmatpush3.bf16.msra.mxu1 %v3038_v33  ;;  %2834 = vmatpush3.bf16.msra.mxu0 %v3042_v56  ;;  %v895_v21 = vrot.slane %v659_v16, 5  ;;  %v732_v22 = vshll.u32 %v659_v16, 16  ;;  %v509_v26 = vsel %vm469_vm5, %v449_v4, %v489_v36  ;;  %v2739_v42 = vpack.c.bf16 %v543_v37, %v543_v37  ;;  %v1312_v1 = vld [vmem:[#allocation2 + $0x8] sm:$0xf] }
  0x4c   : > { %2871 = vmatprep.subr.bf16.mxu1 %v3041_v44  ;;  %2835 = vmatprep.subr.bf16.mxu0 %v3044_v63  ;;  %v541_v40 = vsel %vm515_vm0, %v509_v26, 0.0  ;;  %v900_v39 = vsel %vm3308_vm9, %v2598_v11, %v899_v28  ;;  %v748_v53 = vrot.slane %v746_v29, 5  ;;  %v3051_v44 = vld [vmem:[%s3934_s3 + $0x180] sm:$0xff]   ;;  %v744_v47 = vrot.slane %v743_v35, 4  ;;  %v3567_v35 = vld [vmem:[#allocation2 + $0x10] sm:$0xf] }
  0x4d   : > { %v896_v32 = vsel %vm3308_vm9, %v2597_v0, %v895_v21  ;;  %v734_v33 = vrot.slane %v732_v22, 5  ;;  %v2737_v41 = vpack.c.bf16 %v541_v40, %v541_v40  ;;  %vm470_vm0 = vcmp.gt.f32.partialorder %v450_v19, 0.0  ;;  %643 = vst [vmem:[#allocation2 + $0x40] sm:$0xf] %v2739_v42  ;;  %v3571_v42 = vld [vmem:[#allocation2 + $0x18] sm:$0xf] }
  0x4e   : > { %v2603_v34 = vcombine.low %v896_v32, %v900_v39  ;;  %v490_v51 = vmul.f32 0.1, %v450_v19  ;;  %v749_v55 = vsel %vm3312_vm10, %v744_v47, %v748_v53  ;;  %v2587_v56 = vcombine.low %v3433_v15, %v3502_v8 }
  0x4f   : > { %2872 = vmatpush3.bf16.msra.mxu1 %v3043_v59  ;;  %2836 = vmatpush3.bf16.msra.mxu0 %v3047_v6  ;;  %v735_v46 = vsel %vm3312_vm10, %v3494_v3, %v734_v33  ;;  %641 = vst [vmem:[#allocation2 + $0x38] sm:$0xf] %v2737_v41  ;;  %v2599_v57 = vrot.slane %v3534_v43, 9  ;;  %v754_v58 = vshll.u32 %v3530_v38, 16  ;;  %v1440_v59 = vld [vmem:[#allocation2 + $0x8] sm:$0xe]  ;;  %v508_v62 = vsel %vm468_vm7, %v3505_v9, %v488_v48 }
  0x50   : > { %2873 = vmatprep.subr.bf16.mxu1 %v3045_v2  ;;  %2918 = vmatprep.subr.bf16.mxu0 %v3524_v31  ;;  %v2591_v61 = vcombine.low %v735_v46, %v749_v55  ;;  %v510_v63 = vsel %vm470_vm0, %v450_v19, %v490_v51  ;;  %v753_v0 = vrot.slane %v751_v54, 4  ;;  %v1314_v2 = vld [vmem:[#allocation2 + $0x10] sm:$0xf]  ;;  %v540_v15 = vsel %vm522_vm3, %v508_v62, 0.0 }
  0x51   : > { %1135 = vmatmul.mubr.bf16.gmra.mxu0 %v2603_v34  ;;  %v542_v3 = vsel %vm522_vm3, %v510_v63, 0.0  ;;  %v756_v4 = vrot.slane %v754_v58, 5  ;;  %v1338_v52 = vshll.u32 %v1313_v49, 16  ;;  %v2736_v5 = vpack.c.bf16 %v540_v15, %v540_v15 }
  0x52   : > { %1295 = vmatprep.mubr.bf16.mxu1 %v2591_v61  ;;  %v2738_v6 = vpack.c.bf16 %v542_v3, %v542_v3  ;;  %v2641_v8 = vrot.slane %v1440_v59, 9  ;;  %v1466_v10 = vrot.slane %v1313_v49, 5  ;;  %v2642_v11 = vrot.slane %v1441_v60, 9 }
  0x53   : > { %2874 = vmatpush3.bf16.msra.mxu1 %v3048_v14  ;;  %v757_v9 = vor.u32 %v756_v4, %v753_v0  ;;  %v1470_v12 = vrot.slane %v1315_v50, 5  ;;  %640 = vst [vmem:[#allocation2 + $0x34] sm:$0x1] %v2736_v5  ;;  %v1329_v13 = vshrl.u32 %v1312_v1, 16  ;;  %v1332_v36 = vshll.u32 %v1312_v1, 16 }
  0x54   : > { %2875 = vmatprep.subr.bf16.mxu1 %v3049_v27  ;;  %1296 = vmatmul.mubr.bf16.gmra.mxu1 %v2587_v56  ;;  %642 = vst [vmem:[#allocation2 + $0x3c] sm:$0x1] %v2738_v6  ;;  %v1343_v14 = vshrl.u32 %v1314_v2, 16  ;;  %v1346_v16 = vshll.u32 %v1314_v2, 16  ;;  %v1340_v20 = vrot.slane %v1338_v52, 5  ;;  %v1467_v21 = vsel %vm3308_vm9, %v2641_v8, %v1466_v10 }
  0x55   : > { %v1471_v22 = vsel %vm3308_vm9, %v2642_v11, %v1470_v12  ;;  %v1331_v25 = vrot.slane %v1329_v13, 4  ;;  %v758_v26 = vrot.slane %v757_v9, 4  ;;  %v1354_v29 = vrot.slane %v1352_v7, 5  ;;  %v2374_v1 = vld [vmem:[%s3938_s7] sm:$0xf] }
  0x56   : > { %v3039_v17 = vld [vmem:[#allocation2 + $0x38] ss:$8 sps:$4 sm:$0xff]   ;;  %v1334_v40 = vrot.slane %v1332_v36, 5  ;;  %v1345_v32 = vrot.slane %v1343_v14, 4  ;;  %v1348_v33 = vrot.slane %v1346_v16, 5  ;;  %v2653_v41 = vcombine.low %v1467_v21, %v1471_v22 }
  0x57   : > { %2876 = vmatpush3.bf16.msra.mxu1 %v3051_v44  ;;  %v857_v18 = vld [vmem:[#allocation2 + $0x38] sm:$0xe]  ;;  %1142 = vmatprep.mubr.bf16.mxu0 %v3039_v17  ;;  %v3573_v44 = vld [vmem:[#allocation2 + $0x14] sm:$0x1]  ;;  %v1747_v47 = vshrl.u32 %v3567_v35, 16  ;;  %v1750_v49 = vshll.u32 %v3567_v35, 16 }
  0x58   : > { %v3559_v19 = vld [vmem:[#allocation2 + $0x38] sm:$0xf]  ;;  %v2600_v30 = vrot.slane %v857_v18, 9  ;;  %v1335_v34 = vor.u32 %v1334_v40, %v1331_v25  ;;  %v1349_v46 = vor.u32 %v1348_v33, %v1345_v32  ;;  %v1756_v54 = vshll.u32 %v3573_v44, 16  ;;  %v3590_v52 = vld [vmem:[#allocation2 + $0x1c] sm:$0x1]  ;;  %2952 = vmatprep.subr.msk.bf16.mxu1 %vm2388_vm8, %v2374_v1 }
  0x59   : > { %v765_v27 = vshrl.u32 %v3559_v19, 16  ;;  %v768_v28 = vshll.u32 %v3559_v19, 16  ;;  %v2588_v53 = vcombine.low %v3530_v38, %v3559_v19  ;;  %v1761_v55 = vshrl.u32 %v3571_v42, 16  ;;  %v1317_v5 = vld [vmem:[#allocation2 + $0x1c] sm:$0x1] }
  0x5a   : > { %v661_v50 = vld [vmem:[#allocation2 + $0x34] sm:$0x1]  ;;  %v2673_v38 = vcombine.low %v3567_v35, %v3571_v42  ;;  %v1336_v62 = vrot.slane %v1335_v34, 4  ;;  %v1350_v63 = vrot.slane %v1349_v46, 4  ;;  %v1749_v0 = vrot.slane %v1747_v47, 4 }
  0x5b   : > { %v767_v37 = vrot.slane %v765_v27, 4  ;;  %v770_v39 = vrot.slane %v768_v28, 5  ;;  %v662_v48 = vld [vmem:[#allocation2 + $0x3c] sm:$0x1]  ;;  %v903_v56 = vrot.slane %v661_v50, 5  ;;  %v760_v59 = vshll.u32 %v661_v50, 16 }
  0x5c   : > { %v907_v58 = vrot.slane %v662_v48, 5  ;;  %v774_v60 = vshll.u32 %v662_v48, 16  ;;  %v1341_v7 = vsel %vm3312_vm10, %v1336_v62, %v1340_v20  ;;  %v1355_v43 = vsel %vm3312_vm10, %v1350_v63, %v1354_v29  ;;  %v1319_v9 = vld [vmem:[#allocation2 + $0x24] sm:$0x1]  ;;  %v1443_v36 = vld [vmem:[#allocation2 + $0x20] sm:$0xe] }
  0x5d   : > { %v771_v51 = vor.u32 %v770_v39, %v767_v37  ;;  %v904_v2 = vsel %vm3308_vm9, %v2599_v57, %v903_v56  ;;  %v762_v3 = vrot.slane %v760_v59, 5  ;;  %v1752_v8 = vrot.slane %v1750_v49, 5  ;;  %v1442_v57 = vld [vmem:[#allocation2 + $0x18] sm:$0xe]  ;;  %v3608_v39 = vld [vmem:[#allocation2 + $0x20] sm:$0xf] }
  0x5e   : > { %v908_v15 = vsel %vm3308_vm9, %v2600_v30, %v907_v58  ;;  %v776_v4 = vrot.slane %v774_v60, 5  ;;  %v2649_v12 = vcombine.low %v1341_v7, %v1355_v43  ;;  %v1758_v13 = vrot.slane %v1756_v54, 5  ;;  %v1316_v14 = vld [vmem:[#allocation2 + $0x18] sm:$0xf]  ;;  %v1318_v30 = vld [vmem:[#allocation2 + $0x20] sm:$0xf] }
  0x5f   : > { %v772_v61 = vrot.slane %v771_v51, 4  ;;  %v2604_v6 = vcombine.low %v904_v2, %v908_v15  ;;  %v763_v10 = vsel %vm3312_vm10, %v758_v26, %v762_v3  ;;  %v1753_v17 = vor.u32 %v1752_v8, %v1749_v0  ;;  %v3614_v49 = vld [vmem:[#allocation2 + $0x24] sm:$0x1]  ;;  %v3619_v62 = vld [vmem:[#allocation2 + $0x28] sm:$0xf] }
  0x60   : > { %v1763_v18 = vrot.slane %v1761_v55, 4  ;;  %v1764_v19 = vshll.u32 %v3571_v42, 16  ;;  %v1770_v20 = vshll.u32 %v3590_v52, 16  ;;  %v3604_v21 = vsel %vm2388_vm8, %v2374_v1, 0  ;;  %v3052_v55 = vld [vmem:[%s3934_s3 + $0x230] sm:$0xff]   ;;  %v3054_v7 = vld [vmem:[%s3934_s3 + $0x228] sm:$0xff]  }
  0x61   : > { %v777_v11 = vsel %vm3312_vm10, %v772_v61, %v776_v4  ;;  %1143 = vmatmul.mubr.bf16.gmra.mxu0 %v2604_v6  ;;  %v2643_v22 = vrot.slane %v1442_v57, 9  ;;  %v1474_v25 = vrot.slane %v1317_v5, 5  ;;  %v1754_v26 = vrot.slane %v1753_v17, 4  ;;  %v3625_v3 = vld [vmem:[#allocation2 + $0x2c] sm:$0x1]  ;;  %v3055_v42 = vld [vmem:[%s3934_s3 + $0x220] sm:$0xff]  }
  0x62   : > { %v2592_v16 = vcombine.low %v763_v10, %v777_v11  ;;  %1688 = vmatprep.mubr.bf16.mxu0 %v2653_v41  ;;  %v1766_v27 = vrot.slane %v1764_v19, 5  ;;  %v2644_v28 = vrot.slane %v1443_v36, 9  ;;  %v1478_v29 = vrot.slane %v1319_v9, 5  ;;  %v1320_v17 = vld [vmem:[#allocation2 + $0x28] sm:$0xf] }
  0x63   : > { %v1772_v40 = vrot.slane %v1770_v20, 5  ;;  %v1475_v32 = vsel %vm3308_vm9, %v2643_v22, %v1474_v25  ;;  %v1357_v33 = vshrl.u32 %v1316_v14, 16  ;;  %v1360_v37 = vshll.u32 %v1316_v14, 16  ;;  %v2105_v24 = vld [vmem:[#allocation2 + $0x40] sm:$0xe] }
  0x64   : > { %1303 = vmatprep.mubr.bf16.mxu1 %v2592_v16  ;;  %v1759_v41 = vsel %vm3312_vm10, %v1754_v26, %v1758_v13  ;;  %v1767_v34 = vor.u32 %v1766_v27, %v1763_v18  ;;  %v1479_v46 = vsel %vm3308_vm9, %v2644_v28, %v1478_v29  ;;  %v1366_v47 = vshll.u32 %v1317_v5, 16  ;;  %v1444_v13 = vld [vmem:[#allocation2 + $0x28] sm:$0xe] }
  0x65   : > { %1304 = vmatmul.mubr.bf16.gmra.mxu1 %v2588_v53  ;;  %v2654_v50 = vcombine.low %v1475_v32, %v1479_v46  ;;  %v1359_v53 = vrot.slane %v1357_v33, 4  ;;  %v1362_v48 = vrot.slane %v1360_v37, 5  ;;  %v1371_v51 = vshrl.u32 %v1318_v30, 16 }
  0x66   : > { %v1768_v54 = vrot.slane %v1767_v34, 4  ;;  %v1368_v56 = vrot.slane %v1366_v47, 5  ;;  %v1374_v58 = vshll.u32 %v1318_v30, 16  ;;  %v1380_v59 = vshll.u32 %v1319_v9, 16  ;;  %v1321_v9 = vld [vmem:[#allocation2 + $0x2c] sm:$0x1] }
  0x67   : > { %v1363_v60 = vor.u32 %v1362_v48, %v1359_v53  ;;  %v1373_v61 = vrot.slane %v1371_v51, 4  ;;  %v1775_v63 = vshrl.u32 %v3608_v39, 16  ;;  %v1778_v0 = vshll.u32 %v3608_v39, 16 }
  0x68   : > { %v1773_v1 = vsel %vm3312_vm10, %v1768_v54, %v1772_v40  ;;  %v1376_v2 = vrot.slane %v1374_v58, 5  ;;  %v1382_v15 = vrot.slane %v1380_v59, 5  ;;  %v1784_v4 = vshll.u32 %v3614_v49, 16  ;;  %v1322_v40 = vld [vmem:[#allocation2 + $0x30] sm:$0xf] }
  0x69   : > { %1689 = vmatmul.mubr.bf16.vlgmr.msra.gmra.mxu0 %v2649_v12  ;;  %v2677_v5 = vcombine.low %v1759_v41, %v1773_v1  ;;  %v1364_v6 = vrot.slane %v1363_v60, 4  ;;  %v1777_v43 = vrot.slane %v1775_v63, 4  ;;  %v1780_v8 = vrot.slane %v1778_v0, 5  ;;  %v3634_v12 = vld [vmem:[#allocation2 + $0x34] sm:$0x1]  ;;  %v3057_v1 = vld [vmem:[%s3934_s3 + $0x218] sm:$0xff]  }
  0x6a   : > { %2919 = vmatpush3.bf16.msra.mxu0 %v3524_v31  ;;  %1696 = vmatprep.mubr.bf16.mxu0 %v2654_v50  ;;  %v1377_v57 = vor.u32 %v1376_v2, %v1373_v61  ;;  %v1789_v10 = vshrl.u32 %v3619_v62, 16  ;;  %v1792_v11 = vshll.u32 %v3619_v62, 16  ;;  %v1445_v31 = vld [vmem:[#allocation2 + $0x30] sm:$0xe]  ;;  %v1786_v14 = vrot.slane %v1784_v4, 5 }
  0x6b   : > { %2920 = vmatprep.subr.bf16.mxu0 %v3052_v55  ;;  %2058 = vmatprep.mubr.bf16.mxu1 %v2677_v5  ;;  %v1781_v36 = vor.u32 %v1780_v8, %v1777_v43  ;;  %v1798_v16 = vshll.u32 %v3625_v3, 16  ;;  %v1369_v18 = vsel %vm3312_vm10, %v1364_v6, %v1368_v56  ;;  %v2674_v27 = vcombine.low %v3608_v39, %v3619_v62  ;;  %v3653_v39 = vld [vmem:[#allocation2 + $0x30] sm:$0xf]  ;;  %v3659_v54 = vld [vmem:[#allocation2 + $0x34] sm:$0x1] }
  0x6c   : > { %v1378_v19 = vrot.slane %v1377_v57, 4  ;;  %v1791_v20 = vrot.slane %v1789_v10, 4  ;;  %v1794_v22 = vrot.slane %v1792_v11, 5  ;;  %v2645_v28 = vrot.slane %v1444_v13, 9  ;;  %v3664_v60 = vld [vmem:[#allocation2 + $0x38] sm:$0xf] }
  0x6d   : > { %2059 = vmatmul.mubr.bf16.vlgmr.msra.gmra.mxu1 %v2673_v38  ;;  %v1782_v25 = vrot.slane %v1781_v36, 4  ;;  %v1800_v26 = vrot.slane %v1798_v16, 5  ;;  %v1482_v38 = vrot.slane %v1321_v9, 5  ;;  %v2646_v30 = vrot.slane %v1445_v31, 9  ;;  %v378_v57 = vld [vmem:[%s3244_s15 + $0x44] sm:$0x1]  ;;  %s3902_s15 = scalar_lea.vmem %s3939_s8, %s2560_s9 }
  0x6e   : > { %2921 = vmatpush3.bf16.msra.mxu0 %v3052_v55  ;;  %2943 = vmatpush3.bf16.msra.mxu1 %v3604_v21  ;;  %v1383_v29 = vsel %vm3312_vm10, %v1378_v19, %v1382_v15  ;;  %v1795_v35 = vor.u32 %v1794_v22, %v1791_v20  ;;  %v1486_v33 = vrot.slane %v3634_v12, 5  ;;  %v1385_v37 = vshrl.u32 %v1320_v17, 16  ;;  %v3670_v15 = vld [vmem:[#allocation2 + $0x3c] sm:$0x1]  ;;  %v3058_v13 = vld [vmem:[%s3934_s3 + $0x210] sm:$0xff]  }
  0x6f   : > { %2922 = vmatprep.subr.bf16.mxu0 %v3054_v7  ;;  %v2650_v21 = vcombine.low %v1369_v18, %v1383_v29  ;;  %v1787_v32 = vsel %vm3312_vm10, %v1782_v25, %v1786_v14  ;;  %v1483_v34 = vsel %vm3308_vm9, %v2645_v28, %v1482_v38  ;;  %v1388_v46 = vshll.u32 %v1320_v17, 16  ;;  %v3690_v22 = vld [vmem:[#allocation2 + $0x38] sm:$0xe]  ;;  %v3063_v38 = vld [vmem:[%s3932_s1] ss:$0 sm:$0xff] }
  0x70   : > { %v1796_v41 = vrot.slane %v1795_v35, 4  ;;  %v1394_v47 = vshll.u32 %v1321_v9, 16  ;;  %v1487_v50 = vsel %vm3308_vm9, %v2646_v30, %v1486_v33  ;;  %v1387_v53 = vrot.slane %v1385_v37, 4  ;;  %v1324_v25 = vld [vmem:[#allocation2 + $0x38] sm:$0xf] }
  0x71   : > { %1697 = vmatmul.mubr.bf16.gmra.mxu0 %v2650_v21  ;;  %v1399_v48 = vshrl.u32 %v1322_v40, 16  ;;  %v1402_v51 = vshll.u32 %v1322_v40, 16  ;;  %v2655_v56 = vcombine.low %v1483_v34, %v1487_v50  ;;  %v1390_v58 = vrot.slane %v1388_v46, 5  ;;  %v1326_v40 = vld [vmem:[#allocation2 + $0x40] sm:$0xf]  ;;  %v3060_v21 = vld [vmem:[%s3934_s3 + $0x208] sm:$0xff]  }
  0x72   : > { %2923 = vmatpush3.bf16.msra.mxu0 %v3054_v7  ;;  %v1801_v55 = vsel %vm3312_vm10, %v1796_v41, %v1800_v26  ;;  %v1396_v59 = vrot.slane %v1394_v47, 5  ;;  %v1408_v0 = vshll.u32 %v3634_v12, 16  ;;  %v1803_v4 = vshrl.u32 %v3653_v39, 16  ;;  %v3708_v37 = vld [vmem:[#allocation2 + $0x3c] sm:$0x1] }
  0x73   : > { %v2678_v61 = vcombine.low %v1787_v32, %v1801_v55  ;;  %2924 = vmatprep.subr.bf16.mxu0 %v3055_v42  ;;  %v1401_v62 = vrot.slane %v1399_v48, 4  ;;  %v1404_v63 = vrot.slane %v1402_v51, 5  ;;  %1704 = vmatprep.mubr.bf16.mxu0 %v2655_v56  ;;  %v1391_v2 = vor.u32 %v1390_v58, %v1387_v53  ;;  %v3064_v50 = vld [vmem:[%s3933_s2] ss:$0 sm:$0xff] }
  0x74   : > { %v1806_v5 = vshll.u32 %v3653_v39, 16  ;;  %v1812_v6 = vshll.u32 %v3659_v54, 16  ;;  %v1410_v43 = vrot.slane %v1408_v0, 5  ;;  %v1817_v8 = vshrl.u32 %v3664_v60, 16  ;;  %v3718_v51 = vld [vmem:[#allocation2 + $0x40] sm:$0xf] }
  0x75   : > { %2066 = vmatprep.mubr.bf16.mxu1 %v2678_v61  ;;  %v1405_v7 = vor.u32 %v1404_v63, %v1401_v62  ;;  %v1820_v9 = vshll.u32 %v3664_v60, 16  ;;  %v1392_v10 = vrot.slane %v1391_v2, 4  ;;  %v1805_v11 = vrot.slane %v1803_v4, 4  ;;  %v3723_v61 = vld [vmem:[#allocation2 + $0x48] sm:$0xf] }
  0x76   : > { %2067 = vmatmul.mubr.bf16.gmra.mxu1 %v2674_v27  ;;  %2925 = vmatpush3.bf16.msra.mxu0 %v3055_v42  ;;  %v1808_v12 = vrot.slane %v1806_v5, 5  ;;  %v1819_v36 = vrot.slane %v1817_v8, 4  ;;  %v1826_v16 = vshll.u32 %v3670_v15, 16  ;;  %v1814_v19 = vrot.slane %v1812_v6, 5  ;;  %v3726_v63 = vld [vmem:[#allocation2 + $0x40] sm:$0xe] }
  0x77   : > { %v1406_v31 = vrot.slane %v1405_v7, 4  ;;  %2926 = vmatprep.subr.bf16.mxu0 %v3057_v1  ;;  %v1822_v14 = vrot.slane %v1820_v9, 5  ;;  %v1397_v17 = vsel %vm3312_vm10, %v1392_v10, %v1396_v59  ;;  %v398_v20 = vunpack.c.l.bf16 %v378_v57  ;;  %v3061_v5 = vld [vmem:[%s3934_s3 + $0x200] sm:$0xff]   ;;  %v3739_v7 = vld [vmem:[#allocation2 + $0x4c] sm:$0x1] }
  0x78   : > { %v1809_v18 = vor.u32 %v1808_v12, %v1805_v11  ;;  %v1828_v28 = vrot.slane %v1826_v16, 5  ;;  %v2133_v29 = vrot.slane %v3614_v49, 5  ;;  %v2137_v32 = vrot.slane %v3625_v3, 5 }
  0x79   : > { %v1411_v26 = vsel %vm3312_vm10, %v1406_v31, %v1410_v43  ;;  %v1823_v27 = vor.u32 %v1822_v14, %v1819_v36  ;;  %v425_v30 = vmul.f32 %v3063_v38, %v398_v20  ;;  %v1413_v41 = vshrl.u32 %v1324_v25, 16  ;;  %v2102_v38 = vld [vmem:[#allocation2 + $0x28] sm:$0xe] }
  0x7a   : > { %v2651_v35 = vcombine.low %v1397_v17, %v1411_v26  ;;  %2927 = vmatpush3.bf16.msra.mxu0 %v3057_v1  ;;  %v1810_v42 = vrot.slane %v1809_v18, 4  ;;  %v1416_v34 = vshll.u32 %v1324_v25, 16  ;;  %v2675_v47 = vcombine.low %v3653_v39, %v3664_v60  ;;  %v2100_v17 = vld [vmem:[#allocation2 + $0x18] sm:$0xe]  ;;  %v2308_v18 = vld [vmem:[%s3737_s14] sm:$0xff] }
  0x7b   : > { %v1824_v33 = vrot.slane %v1823_v27, 4  ;;  %2928 = vmatprep.subr.bf16.mxu0 %v3058_v13  ;;  %v452_v53 = vadd.f32 %v3064_v50, %v425_v30  ;;  %v2647_v48 = vrot.slane %v3690_v22, 9  ;;  %v1415_v56 = vrot.slane %v1413_v41, 4  ;;  %v2101_v26 = vld [vmem:[#allocation2 + $0x20] sm:$0xe]  ;;  %v2310_v41 = vld [vmem:[%s3737_s14 + $0x10] sm:$0xff] }
  0x7c   : > { %1705 = vmatmul.mubr.bf16.gmra.mxu0 %v2651_v35  ;;  %v1815_v46 = vsel %vm3312_vm10, %v1810_v42, %v1814_v19  ;;  %v1418_v58 = vrot.slane %v1416_v34, 5  ;;  %v1427_v59 = vshrl.u32 %v1326_v40, 16  ;;  %v1422_v62 = vshll.u32 %v3708_v37, 16  ;;  %v2309_v19 = vld [vmem:[%s3737_s14 + $0x8] sm:$0xff]  ;;  %v3759_v30 = vld [vmem:[%s3936_s5] ss:$0 sm:$0xff] }
  0x7d   : > { %v1829_v55 = vsel %vm3312_vm10, %v1824_v33, %v1828_v28  ;;  %vm472_vm11 = vcmp.gt.f32.partialorder %v452_v53, 0.0  ;;  %v492_v60 = vmul.f32 0.1, %v452_v53  ;;  %v1430_v2 = vshll.u32 %v1326_v40, 16  ;;  %v3772_v50 = vld [vmem:[%s3937_s6] ss:$0 sm:$0xff] }
  0x7e   : > { %v2679_v39 = vcombine.low %v1815_v46, %v1829_v55  ;;  %2929 = vmatpush3.bf16.msra.mxu0 %v3058_v13  ;;  %v1419_v0 = vor.u32 %v1418_v58, %v1415_v56  ;;  %v1429_v1 = vrot.slane %v1427_v59, 4  ;;  %v1831_v4 = vshrl.u32 %v3718_v51, 16  ;;  %v2099_v13 = vld [vmem:[#allocation2 + $0x10] sm:$0xe] }
  0x7f   : > { %2930 = vmatprep.subr.bf16.mxu0 %v3060_v21  ;;  %v512_v6 = vsel %vm472_vm11, %v452_v53, %v492_v60  ;;  %v1834_v43 = vshll.u32 %v3718_v51, 16  ;;  %v1845_v8 = vshrl.u32 %v3723_v61, 16  ;;  %v1848_v9 = vshll.u32 %v3723_v61, 16  ;;  %v2311_v53 = vld [vmem:[%s3737_s14 + $0x18] sm:$0xff] }
  0x80   : > { %2074 = vmatprep.mubr.bf16.mxu1 %v2679_v39  ;;  %v544_v57 = vsel %vm522_vm3, %v512_v6, 0.0  ;;  %v1490_v10 = vrot.slane %v3708_v37, 5  ;;  %v1432_v11 = vrot.slane %v1430_v2, 5  ;;  %v1833_v12 = vrot.slane %v1831_v4, 4 }
  0x81   : > { %2075 = vmatmul.mubr.bf16.gmra.mxu1 %v2675_v47  ;;  %v2740_v31 = vpack.c.bf16 %v544_v57, %v544_v57  ;;  %v1836_v36 = vrot.slane %v1834_v43, 5  ;;  %v1847_v14 = vrot.slane %v1845_v8, 4  ;;  %v1850_v16 = vrot.slane %v1848_v9, 5  ;;  %v2103_v9 = vld [vmem:[#allocation2 + $0x30] sm:$0xe] }
  0x82   : > { %2931 = vmatpush3.bf16.msra.mxu0 %v3060_v21  ;;  %v2648_v20 = vrot.slane %v3726_v63, 9  ;;  %v3750_v22 = vrot.slane %v1419_v0, 4  ;;  %v3752_v45 = vrot.slane %v1422_v62, 5  ;;  %v1854_v25 = vshll.u32 %v3739_v7, 16 }
  0x83   : > { %2932 = vmatprep.subr.bf16.mxu0 %v3061_v5  ;;  %644 = vst [vmem:[#allocation2 + $0x44] sm:$0x1] %v2740_v31  ;;  %v1433_v27 = vor.u32 %v1432_v11, %v1429_v1  ;;  %v1851_v28 = vor.u32 %v1850_v16, %v1847_v14  ;;  %v2697_v35 = vrot.slane %v2099_v13, 9  ;;  %v2125_v42 = vrot.slane %v3573_v44, 5  ;;  %v2104_v16 = vld [vmem:[#allocation2 + $0x38] sm:$0xe] }
  0x84   : > { %v1491_v40 = vsel %vm3308_vm9, %v2647_v48, %v1490_v10  ;;  %v1837_v21 = vor.u32 %v1836_v36, %v1833_v12  ;;  %v2698_v33 = vrot.slane %v2100_v17, 9  ;;  %v2129_v37 = vrot.slane %v3590_v52, 5 }
  0x85   : > { %v1852_v34 = vrot.slane %v1851_v28, 4  ;;  %v1856_v46 = vrot.slane %v1854_v25, 5  ;;  %v3767_v44 = vsel %vm3308_vm9, %v2697_v35, %v2125_v42  ;;  %v2699_v47 = vrot.slane %v2101_v26, 9 }
  0x86   : > { %2933 = vmatpush3.bf16.msra.mxu0 %v3061_v5  ;;  %v3777_v48 = vsel %vm3308_vm9, %v2698_v33, %v2129_v37  ;;  %v2700_v52 = vrot.slane %v2102_v38, 9  ;;  %v2323_v55 = vmul.f32 %v3759_v30, %v2308_v18  ;;  %v2324_v56 = vmul.f32 %v3759_v30, %v2309_v19  ;;  %v2312_v5 = vld [vmem:[%s3737_s14 + $0x20] sm:$0xff]  ;;  %v2314_v38 = vld [vmem:[%s3737_s14 + $0x30] sm:$0xff] }
  0x87   : > { %v1425_v58 = vsel %vm3312_vm10, %v3750_v22, %v3752_v45  ;;  %v1434_v59 = vrot.slane %v1433_v27, 4  ;;  %v2676_v39 = vcombine.low %v3718_v51, %v3723_v61  ;;  %v2325_v60 = vmul.f32 %v3759_v30, %v2310_v41  ;;  %v2315_v41 = vld [vmem:[%s3737_s14 + $0x38] sm:$0xff] }
  0x88   : > { %v1838_v62 = vrot.slane %v1837_v21, 4  ;;  %v2338_v63 = vadd.f32 %v3772_v50, %v2323_v55  ;;  %v2339_v0 = vadd.f32 %v3772_v50, %v2324_v56  ;;  %v2326_v1 = vmul.f32 %v3759_v30, %v2311_v53 }
  0x89   : > { %v1857_v2 = vsel %vm3312_vm10, %v1852_v34, %v1856_v46  ;;  %v2705_v4 = vcombine.low %v3767_v44, %v3777_v48  ;;  %v3799_v51 = vsel %vm3308_vm9, %v2699_v47, %v2133_v29  ;;  %v2340_v61 = vadd.f32 %v3772_v50, %v2325_v60  ;;  %v2106_v44 = vld [vmem:[#allocation2 + $0x48] sm:$0xe] }
  0x8a   : > { %v1327_v6 = vld [vmem:[#allocation2 + $0x44] sm:$0x1]  ;;  %v3809_v8 = vsel %vm3308_vm9, %v2700_v52, %v2137_v32  ;;  %vm2346_vm3 = vcmp.gt.f32.partialorder %v2338_v63, 0.0  ;;  %vm2347_vm12 = vcmp.gt.f32.partialorder %v2339_v0, 0.0  ;;  %v2341_v49 = vadd.f32 %v3772_v50, %v2326_v1 }
  0x8b   : > { %v3803_v43 = vld [vmem:[#allocation2 + $0x44] sm:$0x1]  ;;  %v1494_v57 = vrot.slane %v1327_v6, 5  ;;  %v1436_v29 = vshll.u32 %v1327_v6, 16  ;;  %v2354_v11 = vmul.f32 0.1, %v2338_v63  ;;  %v2327_v3 = vmul.f32 %v3759_v30, %v2312_v5 }
  0x8c   : > { %v1840_v10 = vshll.u32 %v3803_v43, 16  ;;  %v2355_v12 = vmul.f32 0.1, %v2339_v0  ;;  %vm2348_vm13 = vcmp.gt.f32.partialorder %v2340_v61, 0.0  ;;  %v2356_v13 = vmul.f32 0.1, %v2340_v61 }
  0x8d   : > { %v1495_v32 = vsel %vm3308_vm9, %v2648_v20, %v1494_v57  ;;  %v1438_v31 = vrot.slane %v1436_v29, 5  ;;  %v2362_v14 = vsel %vm2346_vm3, %v2338_v63, %v2354_v11  ;;  %vm2349_vm14 = vcmp.gt.f32.partialorder %v2341_v49, 0.0  ;;  %v2313_v20 = vld [vmem:[%s3737_s14 + $0x28] sm:$0xff] }
  0x8e   : > { %v1842_v36 = vrot.slane %v1840_v10, 5  ;;  %v2656_v17 = vcombine.low %v1491_v40, %v1495_v32  ;;  %v2363_v18 = vsel %vm2347_vm12, %v2339_v0, %v2355_v12  ;;  %v2357_v19 = vmul.f32 0.1, %v2341_v49 }
  0x8f   : > { %v1439_v22 = vsel %vm3312_vm10, %v1434_v59, %v1438_v31  ;;  %v2701_v25 = vrot.slane %v2103_v9, 9  ;;  %v2141_v26 = vrot.slane %v3659_v54, 5  ;;  %v2370_v35 = vpack.c.bf16 %v2363_v18, %v2362_v14 }
  0x90   : > { %v1843_v45 = vsel %vm3312_vm10, %v1838_v62, %v1842_v36  ;;  %1712 = vmatprep.mubr.bf16.mxu0 %v2656_v17  ;;  %v2652_v27 = vcombine.low %v1425_v58, %v1439_v22  ;;  %v2702_v42 = vrot.slane %v2104_v16, 9  ;;  %v2364_v40 = vsel %vm2348_vm13, %v2340_v61, %v2356_v13 }
  0x91   : > { %v2680_v28 = vcombine.low %v1843_v45, %v1857_v2  ;;  %v2365_v21 = vsel %vm2349_vm14, %v2341_v49, %v2357_v19  ;;  %v2145_v33 = vrot.slane %v3670_v15, 5  ;;  %v2328_v37 = vmul.f32 %v3759_v30, %v2313_v20 }
  0x92   : > { %1713 = vmatmul.mubr.bf16.gmra.mxu0 %v2652_v27  ;;  %v2342_v54 = vadd.f32 %v3772_v50, %v2327_v3  ;;  %v2706_v34 = vcombine.low %v3799_v51, %v3809_v8  ;;  %v2142_v46 = vsel %vm3308_vm9, %v2701_v25, %v2141_v26  ;;  %v2329_v47 = vmul.f32 %v3759_v30, %v2314_v38 }
  0x93   : > { %2082 = vmatprep.mubr.bf16.mxu1 %v2680_v28  ;;  %2934 = vmatprep.mubr.bf16.mxu0 %v2705_v4  ;;  %v2371_v15 = vpack.c.bf16 %v2365_v21, %v2364_v40  ;;  %v2146_v53 = vsel %vm3308_vm9, %v2702_v42, %v2145_v33  ;;  %v2343_v48 = vadd.f32 %v3772_v50, %v2328_v37  ;;  %v2703_v52 = vrot.slane %v2105_v24, 9 }
  0x94   : > { %2083 = vmatmul.mubr.bf16.gmra.mxu1 %v2676_v39  ;;  %vm2350_vm10 = vcmp.gt.f32.partialorder %v2342_v54, 0.0  ;;  %v2358_v55 = vmul.f32 0.1, %v2342_v54  ;;  %v2330_v56 = vmul.f32 %v3759_v30, %v2315_v41  ;;  %v2344_v58 = vadd.f32 %v3772_v50, %v2329_v47 }
  0x95   : > { %2944 = vmatprep.mubr.msk.bf16.mxu1 %vm2375_vm15, %v2370_v35  ;;  %v2149_v59 = vrot.slane %v3803_v43, 5  ;;  %v2704_v39 = vrot.slane %v2106_v44, 9  ;;  %vm2351_vm1 = vcmp.gt.f32.partialorder %v2343_v48, 0.0  ;;  %v2359_v60 = vmul.f32 0.1, %v2343_v48 }
  0x96   : > { %v2707_v62 = vcombine.low %v2142_v46, %v2146_v53  ;;  %v2153_v63 = vrot.slane %v3739_v7, 5  ;;  %v2366_v0 = vsel %vm2350_vm10, %v2342_v54, %v2358_v55  ;;  %v2345_v1 = vadd.f32 %v3772_v50, %v2330_v56 }
  0x97   : > { %v2367_v2 = vsel %vm2351_vm1, %v2343_v48, %v2359_v60  ;;  %v2360_v4 = vmul.f32 0.1, %v2344_v58  ;;  %vm2352_vm2 = vcmp.gt.f32.partialorder %v2344_v58, 0.0  ;;  %v2150_v30 = vsel %vm3308_vm9, %v2703_v52, %v2149_v59 }
  0x98   : > { %v2372_v51 = vpack.c.bf16 %v2367_v2, %v2366_v0  ;;  %vm2353_vm4 = vcmp.gt.f32.partialorder %v2345_v1, 0.0  ;;  %v2361_v61 = vmul.f32 0.1, %v2345_v1  ;;  %v2154_v5 = vsel %vm3308_vm9, %v2704_v39, %v2153_v63 }
  0x99   : > { %v2368_v7 = vsel %vm2352_vm2, %v2344_v58, %v2360_v4  ;;  %v2708_v6 = vcombine.low %v2150_v30, %v2154_v5 }
  0x9a   : > { %2935 = vmatmul.mubr.bf16.vlgmr.msra.gmra.mxu0 %v2706_v34  ;;  %v2369_v50 = vsel %vm2353_vm4, %v2345_v1, %v2361_v61 }
  0x9b   : > { %2938 = vmatprep.mubr.bf16.mxu0 %v2707_v62  ;;  %v2373_v43 = vpack.c.bf16 %v2369_v50, %v2368_v7 }
  0x9c   : > { %2945 = vmatmul.mubr.msk.bf16.vlgmr.msra.gmra.mxu1 %vm2375_vm15, %v2371_v15 }
  0x9d   : > { %2948 = vmatprep.mubr.msk.bf16.mxu1 %vm2375_vm15, %v2372_v51 }
  0xa2   : > { %2939 = vmatmul.mubr.bf16.gmra.mxu0 %v2708_v6 }
  0xa4   : > { %2949 = vmatmul.mubr.msk.bf16.gmra.mxu1 %vm2375_vm15, %v2373_v43 }
  0xf2   : > { %v2757_v8 = vpop.f32.mrf.mxu0 }
  0xf4   : > { %v2758_v9 = vpop.f32.mrf.mxu0 }
  0xf5   : > { %v2759_v6 = vadd.f32 %v2758_v9, %v2757_v8 }
  0xf6   : > { %v3850_v29 = vpop.f32.mrf.mxu0 }
  0xf8   : > { %v3854_v11 = vpop.f32.mrf.mxu0 }
  0xf9   : > { %v2762_v8 = vadd.f32 %v3854_v11, %v3850_v29 }
  0xfa   : > { %v2797_v49 = vpop.f32.mrf.mxu1 }
  0xfc   : > { %v2798_v57 = vpop.f32.mrf.mxu1 }
  0xfd   : > { %v2799_v61 = vadd.f32 %v2798_v57, %v2797_v49 }
  0xfe   : > { %v3852_v10 = vpop.f32.mrf.mxu1 }
 0x100   : > { %v3856_v23 = vpop.f32.mrf.mxu1 }
 0x101   : > { %v2763_v12 = vpop.f32.mrf.mxu0 }
 0x103   : > { %v2764_v3 = vpop.f32.mrf.mxu0 }
 0x104   : > { %v2765_v5 = vadd.f32 %v2764_v3, %v2763_v12 }
 0x105   : > { %v2766_v31 = vpop.f32.mrf.mxu0 }
 0x106   : > { %v2803_v13 = vpop.f32.mrf.mxu1 }
 0x107   : > { %v2767_v14 = vpop.f32.mrf.mxu0 }
 0x108   : > { %v2804_v32 = vpop.f32.mrf.mxu1 }
 0x109   : > { %v2805_v51 = vadd.f32 %v2804_v32, %v2803_v13 }
 0x10a   : > { %v2806_v36 = vpop.f32.mrf.mxu1 }
 0x10c   : > { %v2807_v16 = vpop.f32.mrf.mxu1 }
 0x111   : > { %v3858_v17 = vpop.f32.mrf.mxu0 }
 0x113   : > { %v2770_v19 = vpop.f32.mrf.mxu0 }
 0x114   : > { %v2809_v18 = vpop.f32.mrf.mxu1  ;;  %v2771_v9 = vadd.f32 %v2770_v19, %v3858_v17 }
 0x115   : > { %v3860_v45 = vpop.f32.mrf.mxu0 }
 0x116   : > { %v2810_v22 = vpop.f32.mrf.mxu1  ;;  %3945 = vst [vmem:[#allocation3_spill] sm:$0xff] %v3860_v45  ;;  %v2808_v45 = vadd.f32 %v2807_v16, %v2806_v36 }
 0x117   : > { %v3864_v26 = vpop.f32.mrf.mxu0 }
 0x118   : > { %v3862_v25 = vpop.f32.mrf.mxu1  ;;  %3947 = vst [vmem:[#allocation5_spill] sm:$0xff] %v3864_v26  ;;  %v1290_v26 = vadd.f32 %v2805_v51, %v2765_v5 }
 0x119   : > { %3946 = vst [vmem:[#allocation4_spill] sm:$0xff] %v3862_v25 }
 0x11a   : > { %v3866_v20 = vpop.f32.mrf.mxu1 }
 0x11b   : > { %3948 = vst [vmem:[#allocation6_spill] sm:$0xff] %v3866_v20 }
 0x121   : > { %v3868_v27 = vpop.f32.mrf.mxu0 }
 0x123   : > { %v3870_v28 = vpop.f32.mrf.mxu0 }
 0x125   : > { %v2815_v35 = vpop.f32.mrf.mxu1  ;;  %v3872_v42 = vpop.f32.mrf.mxu0 }
 0x126   : > { %3949 = vst [vmem:[#allocation7_spill] sm:$0xff] %v3872_v42 }
 0x127   : > { %v2816_v38 = vpop.f32.mrf.mxu1  ;;  %v3874_v40 = vpop.f32.mrf.mxu0 }
 0x128   : > { %3950 = vst [vmem:[#allocation8_spill] sm:$0xff] %v3874_v40  ;;  %v2817_v3 = vadd.f32 %v2816_v38, %v2815_v35 }
 0x129   : > { %v3876_v21 = vpop.f32.mrf.mxu1  ;;  %v2837_v33 = vpop.f32.mrf.mxu0 }
 0x12b   : > { %v3878_v24 = vpop.f32.mrf.mxu1  ;;  %v2838_v37 = vpop.f32.mrf.mxu0 }
 0x12c   : > { %v2839_v40 = vadd.f32 %v2838_v37, %v2837_v33 }
 0x12d   : > { %v2840_v54 = vpop.f32.mrf.mxu0  ;;  %v2877_v41 = vpop.f32.mrf.mxu1 }
 0x12f   : > { %v2878_v34 = vpop.f32.mrf.mxu1  ;;  %v2841_v46 = vpop.f32.mrf.mxu0 }
 0x130   : > { %v2879_v13 = vadd.f32 %v2878_v34, %v2877_v41  ;;  %v2842_v32 = vadd.f32 %v2841_v46, %v2840_v54  ;;  %v3955_v46 = vld [vmem:[#allocation4_spill] sm:$0xff] }
 0x131   : > { %v2880_v44 = vpop.f32.mrf.mxu1  ;;  %v2843_v15 = vpop.f32.mrf.mxu0 }
 0x133   : > { %v2881_v47 = vpop.f32.mrf.mxu1  ;;  %v2844_v48 = vpop.f32.mrf.mxu0 }
 0x134   : > { %v2845_v7 = vadd.f32 %v2844_v48, %v2843_v15 }
 0x135   : > { %v2846_v55 = vpop.f32.mrf.mxu0 }
 0x136   : > { %v2883_v53 = vpop.f32.mrf.mxu1  ;;  %v1723_v49 = vadd.f32 %v2845_v7, %v1290_v26 }
 0x137   : > { %v2847_v58 = vpop.f32.mrf.mxu0 }
 0x138   : > { %v2884_v52 = vpop.f32.mrf.mxu1  ;;  %v2848_v57 = vadd.f32 %v2847_v58, %v2846_v55 }
 0x139   : > { %v2885_v42 = vadd.f32 %v2884_v52, %v2883_v53  ;;  %v3957_v53 = vld [vmem:[#allocation7_spill] sm:$0xff] }
 0x13a   : > { %v2886_v56 = vpop.f32.mrf.mxu1 }
 0x13b   : > { %v2093_v15 = vadd.f32 %v2885_v42, %v1723_v49 }
 0x13c   : > { %v2887_v59 = vpop.f32.mrf.mxu1  ;;  %v2849_v39 = vpop.f32.mrf.mxu0 }
 0x13d   : > { %v2888_v37 = vadd.f32 %v2887_v59, %v2886_v56 }
 0x13e   : > { %v2850_v62 = vpop.f32.mrf.mxu0 }
 0x13f   : > { %v2851_v42 = vadd.f32 %v2850_v62, %v2849_v39  ;;  %v3959_v62 = vld [vmem:[#allocation3_spill] sm:$0xff] }
 0x140   : > { %v3880_v0 = vpop.f32.mrf.mxu0 }
 0x141   : > { %v2889_v60 = vpop.f32.mrf.mxu1  ;;  %3951 = vst [vmem:[#allocation9_spill] sm:$0xff] %v3880_v0  ;;  %v1282_v0 = vadd.f32 %v2799_v61, %v2759_v6 }
 0x142   : > { %v3884_v2 = vpop.f32.mrf.mxu0 }
 0x143   : > { %v2890_v63 = vpop.f32.mrf.mxu1  ;;  %3953 = vst [vmem:[#allocation11_spill] sm:$0xff] %v3884_v2  ;;  %v2811_v2 = vadd.f32 %v2810_v22, %v2809_v18  ;;  %v1721_v33 = vadd.f32 %v2839_v40, %v1282_v0  ;;  %v2882_v18 = vadd.f32 %v2881_v47, %v2880_v44  ;;  %v3956_v44 = vld [vmem:[#allocation6_spill] sm:$0xff]  ;;  %v3960_v0 = vld [vmem:[#allocation5_spill] sm:$0xff] }
 0x144   : > { %v2814_v47 = vadd.f32 %v3956_v44, %v3955_v46  ;;  %v2891_v48 = vadd.f32 %v2890_v63, %v2889_v60 }
 0x145   : > { %v3882_v1 = vpop.f32.mrf.mxu1  ;;  %v2091_v17 = vadd.f32 %v2879_v13, %v1721_v33 }
 0x146   : > { %3952 = vst [vmem:[#allocation10_spill] sm:$0xff] %v3882_v1  ;;  %v2802_v1 = vadd.f32 %v3856_v23, %v3852_v10 }
 0x147   : > { %v3886_v4 = vpop.f32.mrf.mxu1 }
 0x148   : > { %3954 = vst [vmem:[#allocation12_spill] sm:$0xff] %v3886_v4  ;;  %v2768_v4 = vadd.f32 %v2767_v14, %v2766_v31  ;;  %v1285_v23 = vadd.f32 %v2802_v1, %v2762_v8  ;;  %v1298_v31 = vadd.f32 %v2811_v2, %v2771_v9  ;;  %v2777_v14 = vadd.f32 %v3870_v28, %v3868_v27  ;;  %v3961_v51 = vld [vmem:[#allocation9_spill] sm:$0xff] }
 0x149   : > { %v2774_v1 = vadd.f32 %v3960_v0, %v3959_v62 }
 0x14a   : > { %v1293_v16 = vadd.f32 %v2808_v45, %v2768_v4  ;;  %v1306_v35 = vadd.f32 %v2817_v3, %v2777_v14  ;;  %v2820_v45 = vadd.f32 %v3878_v24, %v3876_v21  ;;  %v1722_v38 = vadd.f32 %v2842_v32, %v1285_v23  ;;  %v3958_v21 = vld [vmem:[#allocation8_spill] sm:$0xff]  ;;  %v3962_v61 = vld [vmem:[#allocation11_spill] sm:$0xff] }
 0x14b   : > { %v2780_v24 = vadd.f32 %v3958_v21, %v3957_v53  ;;  %v1725_v4 = vadd.f32 %v2851_v42, %v1298_v31  ;;  %v1301_v6 = vadd.f32 %v2814_v47, %v2774_v1 }
 0x14c   : > { %v1724_v26 = vadd.f32 %v2848_v57, %v1293_v16  ;;  %v2092_v55 = vadd.f32 %v2882_v18, %v1722_v38 }
 0x14d   : > { %v1309_v2 = vadd.f32 %v2820_v45, %v2780_v24  ;;  %v2095_v13 = vadd.f32 %v2891_v48, %v1725_v4  ;;  %v3963_v49 = vld [vmem:[#allocation10_spill] sm:$0xff] }
 0x14e   : > { %v2094_v54 = vadd.f32 %v2888_v37, %v1724_v26 }
 0x14f   : > { %v3964_v57 = vld [vmem:[#allocation12_spill] sm:$0xff] }
 0x150   : > { %v2894_v8 = vadd.f32 %v3964_v57, %v3963_v49 }
 0x152   : > { %v2855_v30 = vpop.f32.mrf.mxu0 }
 0x154   : > { %v2895_v50 = vpop.f32.mrf.mxu1  ;;  %v2856_v43 = vpop.f32.mrf.mxu0 }
 0x155   : > { %v2857_v29 = vadd.f32 %v2856_v43, %v2855_v30  ;;  %v2854_v30 = vadd.f32 %v3962_v61, %v3961_v51 }
 0x156   : > { %v2896_v20 = vpop.f32.mrf.mxu1  ;;  %v2858_v25 = vpop.f32.mrf.mxu0 }
 0x157   : > { %v2897_v27 = vadd.f32 %v2896_v20, %v2895_v50  ;;  %v1727_v56 = vadd.f32 %v2857_v29, %v1306_v35  ;;  %v1726_v16 = vadd.f32 %v2854_v30, %v1301_v6 }
 0x158   : > { %v2898_v12 = vpop.f32.mrf.mxu1  ;;  %v2859_v36 = vpop.f32.mrf.mxu0 }
 0x159   : > { %v2860_v58 = vadd.f32 %v2859_v36, %v2858_v25  ;;  %v2097_v7 = vadd.f32 %v2897_v27, %v1727_v56  ;;  %v2096_v14 = vadd.f32 %v2894_v8, %v1726_v16 }
 0x15a   : > { %v2899_v10 = vpop.f32.mrf.mxu1  ;;  %v2936_v22 = vpop.f32.mrf.mxu0 }
 0x15b   : > { %v2302_v11 = vadd.f32 %v2936_v22, %v2093_v15  ;;  %v2900_v60 = vadd.f32 %v2899_v10, %v2898_v12  ;;  %v1728_v9 = vadd.f32 %v2860_v58, %v1309_v2 }
 0x15c   : > { %v2946_v19 = vpop.f32.mrf.mxu1  ;;  %v2269_v40 = vpop.f32.mrf.mxu0 }
 0x15d   : > { %v2300_v28 = vadd.f32 %v2269_v40, %v2091_v17  ;;  %v2459_v41 = vadd.f32 %v2946_v19, %v2302_v11  ;;  %v2098_v37 = vadd.f32 %v2900_v60, %v1728_v9 }
 0x15e   : > { %v2426_v34 = vpop.f32.mrf.mxu1  ;;  %v2937_v52 = vpop.f32.mrf.mxu0 }
 0x15f   : > { %v2303_v59 = vadd.f32 %v2937_v52, %v2094_v54  ;;  %2467 = vst [vmem:[%s3902_s15 + $0x10] sm:$0xff] %v2459_v41  ;;  %v2457_v39 = vadd.f32 %v2426_v34, %v2300_v28 }
 0x160   : > { %v2947_v20 = vpop.f32.mrf.mxu1  ;;  %v2272_v5 = vpop.f32.mrf.mxu0 }
 0x161   : > { %v2301_v63 = vadd.f32 %v2272_v5, %v2092_v55  ;;  %2465 = vst [vmem:[%s3902_s15] sm:$0xff] %v2457_v39  ;;  %v2460_v25 = vadd.f32 %v2947_v20, %v2303_v59 }
 0x162   : > { %v2429_v50 = vpop.f32.mrf.mxu1  ;;  %v2940_v43 = vpop.f32.mrf.mxu0 }
 0x163   : > { %v2306_v3 = vadd.f32 %v2940_v43, %v2097_v7  ;;  %2468 = vst [vmem:[%s3902_s15 + $0x18] sm:$0xff] %v2460_v25  ;;  %v2458_v32 = vadd.f32 %v2429_v50, %v2301_v63 }
 0x164   : > { %v2950_v36 = vpop.f32.mrf.mxu1  ;;  %v2285_v12 = vpop.f32.mrf.mxu0 }
 0x165   : > { %v2304_v33 = vadd.f32 %v2285_v12, %v2095_v13  ;;  %2466 = vst [vmem:[%s3902_s15 + $0x8] sm:$0xff] %v2458_v32  ;;  %v2463_v15 = vadd.f32 %v2950_v36, %v2306_v3 }
 0x166   : > { %v2442_v10 = vpop.f32.mrf.mxu1  ;;  %v2941_v23 = vpop.f32.mrf.mxu0 }
 0x167   : > { %v2307_v31 = vadd.f32 %v2941_v23, %v2098_v37  ;;  %2471 = vst [vmem:[%s3902_s15 + $0x30] sm:$0xff] %v2463_v15  ;;  %v2461_v18 = vadd.f32 %v2442_v10, %v2304_v33 }
 0x168   : > { %v2951_v22 = vpop.f32.mrf.mxu1  ;;  %v2288_v26 = vpop.f32.mrf.mxu0 }
 0x169   : > { %v2305_v29 = vadd.f32 %v2288_v26, %v2096_v14  ;;  %2469 = vst [vmem:[%s3902_s15 + $0x20] sm:$0xff] %v2461_v18  ;;  %v2464_v11 = vadd.f32 %v2951_v22, %v2307_v31 }
 0x16a   : > { %v2445_v17 = vpop.f32.mrf.mxu1 }
 0x16b   : > { %2472 = vst [vmem:[%s3902_s15 + $0x38] sm:$0xff] %v2464_v11  ;;  %v2462_v19 = vadd.f32 %v2445_v17, %v2305_v29 }
 0x16d   : > { %2470 = vst [vmem:[%s3902_s15 + $0x28] sm:$0xff] %v2462_v19 }
 0x16e PF: > { %s18_s29 = sadd.s32 1, %s3087_s29   ;;  %s3965_s27 = smov %s3083_s28 }
 0x16f   : > { %p15_p6 = scmp.ge.s32.totalorder %s18_s29, 4   ;;  %s3966_s28 = smov %s3968_s30 }
 0x171   :  { %17 = sbr.rel (!%p15_p6) target bundleno = 2 (0x2), region = 91 }

</bundles_post_ra>
